<compile_context>
chip_gen: v5e
topology: v5e:2x2
jax: 0.10.0
libtpu: 0.0.40
codegen_flags: <defaults>
</compile_context>

<pallas_src>
import functools

import numpy as np
import jax
import jax.numpy as jnp
from jax.experimental import pallas as pl
from jax.experimental.pallas import tpu as pltpu

EPS = 1e-5


# ---------------------------------------------------------------------------
# Weight preparation (done ONCE at init)
# ---------------------------------------------------------------------------

def prep_convt_1x1_weight(w, dtype=jnp.bfloat16):
    """PyTorch ConvTranspose2d weight (Cin, Cout, 4, 4) for a 1x1 input
    -> (Cin, 16*Cout) matmul weight with column order (kh, kw, co), which is
    exactly the (H, W, C) row-major layout of the 4x4 output image."""
    cin, cout, k, _ = w.shape
    return jnp.transpose(w, (0, 2, 3, 1)).reshape(cin, k * k * cout).astype(dtype)


def prep_fused_s2_weight(w, W, cout_pad=None, dtype=jnp.bfloat16):
    """Build the block-banded fused weight for ConvTranspose2d(k=4, s=2, p=1)
    on an input of spatial width W.

    out[2q+py, 2r+px, co] = sum_{dy,dx in {0,1}} x[q+py+dy-1, r+px+dx-1, ci]
                            * w[ci, co, 3-py-2dy, 3-px-2dx]
    For each (py, dy) this is one matmul  (H, W*Cin) @ (W*Cin, 2*W*Coutp)
    whose LHS rows are whole (zero-row-padded) image rows and whose RHS is a
    block-banded matrix: entry [j*Cin+ci, r*2*Coutp + px*Coutp + co] is
    w[ci, co, kh, kw] iff j == r + px + dx - 1 is in range (column padding is
    therefore implicit).  The matmul output row is already the interleaved
    (ox = 2r+px, co) image row -> lane-dense stores, no accumulation glue.
    """
    w = np.asarray(w, dtype=np.float32)
    cin, cout, k, _ = w.shape
    assert k == 4
    cp = cout if cout_pad is None else cout_pad
    L = 2 * W * cp
    wf = np.zeros((2, 2, W * cin, L), np.float32)
    for py in range(2):
        for dy in range(2):
            kh = 3 - py - 2 * dy
            for px in range(2):
                for dx in range(2):
                    kw = 3 - px - 2 * dx
                    for r in range(W):
                        j = r + px + dx - 1
                        if 0 <= j < W:
                            c0 = r * 2 * cp + px * cp
                            wf[py, dy, j * cin:(j + 1) * cin, c0:c0 + cout] += \
                                w[:, :, kh, kw]
    return jnp.asarray(wf, dtype=dtype)


# ---------------------------------------------------------------------------
# Pallas kernels
# ---------------------------------------------------------------------------

def _convt_1x1_kernel(z_ref, w_ref, o_ref, stats_ref):
    """Layer 1: ConvTranspose2d(z->4h, k=4, s=1, p=0) on a 1x1 input is a
    single matmul.  Also emits column sums / sums of squares for BN1."""
    y = jnp.dot(z_ref[...], w_ref[...], preferred_element_type=jnp.float32)
    o_ref[...] = y.astype(o_ref.dtype)
    stats_ref[0:1, :] = jnp.sum(y, axis=0, keepdims=True)
    stats_ref[1:2, :] = jnp.sum(y * y, axis=0, keepdims=True)


def _convt_s2_kernel(x_ref, scale_ref, shift_ref, w_ref, o_ref, *rest,
                     emit_stats, apply_tanh):
    """One image of ConvTranspose2d(k=4, s=2, p=1) with the previous layer's
    BatchNorm+ReLU fused on the input and (optionally) Tanh on the output.

    x_ref:     (1, H, W*Cin)    bf16  raw (pre-BN) activation of prev layer
    scale_ref: (1, W*Cin)       f32   per-lane BN scale  gamma/sqrt(var+eps)
    shift_ref: (1, W*Cin)       f32   per-lane BN shift  beta - mean*scale
    w_ref:     (2, 2, W*Cin, L) bf16  block-banded fused weight, L=2*W*Coutp
    o_ref:     (1, H, 2*L)            row q = [image row 2q | image row 2q+1]
    stats_ref: (1, 2, L)        f32   per-image [col-sum ; col-sum-of-squares]
    xs_ref:    (H+2, W*Cin)     bf16  scratch: zero-row-padded normalized input
    """
    if emit_stats:
        stats_ref, xs_ref = rest
    else:
        (xs_ref,) = rest
    H = x_ref.shape[1]
    Wc = x_ref.shape[2]
    L = w_ref.shape[3]

    # BatchNorm (precomputed scale/shift) + ReLU, fused into this consumer.
    x = x_ref[0].astype(jnp.float32)
    xn = jnp.maximum(x * scale_ref[...] + shift_ref[...], 0.0)

    # Zero-row-padded normalized image (column padding is folded into the
    # banded weight, which has no rows for out-of-range columns).
    zero_row = jnp.zeros((1, Wc), jnp.bfloat16)
    xs_ref[0:1, :] = zero_row
    xs_ref[H + 1:H + 2, :] = zero_row
    xs_ref[1:H + 1, :] = xn.astype(jnp.bfloat16)

    if emit_stats:
        col_sum = jnp.zeros((1, L), jnp.float32)
        col_sumsq = jnp.zeros((1, L), jnp.float32)

    for py in range(2):                       # output row parity
        # Contraction K = W*Cin; the two row taps (dy) are two MXU dots
        # accumulated in f32, the column taps / output interleave live in the
        # banded weight.  Output rows are lane-dense (L = 256 here).
        acc = jnp.dot(xs_ref[py:py + H, :], w_ref[py, 0],
                      preferred_element_type=jnp.float32)
        acc = acc + jnp.dot(xs_ref[py + 1:py + 1 + H, :], w_ref[py, 1],
                            preferred_element_type=jnp.float32)
        if emit_stats:
            col_sum = col_sum + jnp.sum(acc, axis=0, keepdims=True)
            col_sumsq = col_sumsq + jnp.sum(acc * acc, axis=0, keepdims=True)
        if apply_tanh:
            acc = jnp.tanh(acc)
        o_ref[0, :, py * L:(py + 1) * L] = acc.astype(o_ref.dtype)

    if emit_stats:
        stats_ref[0, 0:1, :] = col_sum
        stats_ref[0, 1:2, :] = col_sumsq


# ---------------------------------------------------------------------------
# Layer wrappers
# ---------------------------------------------------------------------------

def _conv_s2_layer(x, scale, shift, w_fused, *, emit_stats,
                   apply_tanh=False, out_dtype=jnp.bfloat16):
    """x: (N, H, W*Cin) bf16 raw activation.  Returns (N, H, 2L) activation
    (reshapes contiguously to (N, 2H, 2W, Coutp)) and optionally (N, 2, L)
    per-image BN statistics."""
    # TODO(synk): for very large batch, process several images per grid step
    # to amortize the ~0.35 us per-step overhead.
    N, H, Wc = x.shape
    L = w_fused.shape[-1]
    kernel = functools.partial(_convt_s2_kernel, emit_stats=emit_stats,
                               apply_tanh=apply_tanh)
    out_shape = [jax.ShapeDtypeStruct((N, H, 2 * L), out_dtype)]
    out_specs = [pl.BlockSpec((1, H, 2 * L), lambda i: (i, 0, 0))]
    if emit_stats:
        out_shape.append(jax.ShapeDtypeStruct((N, 2, L), jnp.float32))
        out_specs.append(pl.BlockSpec((1, 2, L), lambda i: (i, 0, 0)))
    return pl.pallas_call(
        kernel,
        grid=(N,),
        out_shape=tuple(out_shape) if emit_stats else out_shape[0],
        in_specs=[
            pl.BlockSpec((1, H, Wc), lambda i: (i, 0, 0)),
            pl.BlockSpec((1, Wc), lambda i: (0, 0)),
            pl.BlockSpec((1, Wc), lambda i: (0, 0)),
            pl.BlockSpec(w_fused.shape, lambda i: (0, 0, 0, 0)),
        ],
        out_specs=tuple(out_specs) if emit_stats else out_specs[0],
        scratch_shapes=[pltpu.VMEM((H + 2, Wc), jnp.bfloat16)],
        compiler_params=pltpu.CompilerParams(
            dimension_semantics=("parallel",)),
    )(x, scale, shift, w_fused)


def _bn_scale_shift(stat_sums, gamma, beta, *, count, reps, eps=EPS):
    """stat_sums: (2, G*C) f32 [sum; sum of squares], channel = lane % C.
    Returns per-lane (1, reps*C) f32 scale / shift for the consumer kernel.
    Train-mode batch statistics with biased variance (matches PyTorch)."""
    C = gamma.shape[0]
    s = stat_sums.reshape(2, -1, C).sum(axis=1)
    mean = s[0] / count
    var = s[1] / count - mean * mean
    scale = gamma.astype(jnp.float32) * jax.lax.rsqrt(var + eps)
    shift = beta.astype(jnp.float32) - mean * scale
    return (jnp.tile(scale, reps)[None, :].astype(jnp.float32),
            jnp.tile(shift, reps)[None, :].astype(jnp.float32))


# ---------------------------------------------------------------------------
# Generator
# ---------------------------------------------------------------------------

def init_generator_params(key, z_dim, out_channels, hidden_size):
    ks = jax.random.split(key, 10)
    h4, h2, h1 = hidden_size * 4, hidden_size * 2, hidden_size

    def convw(k, cin, cout):
        return 0.02 * jax.random.normal(k, (cin, cout, 4, 4), dtype=jnp.float32)

    raw = {
        "w1": convw(ks[0], z_dim, h4),
        "g1": 1.0 + 0.01 * jax.random.normal(ks[1], (h4,)),
        "b1": 0.01 * jax.random.normal(ks[2], (h4,)),
        "w2": convw(ks[3], h4, h2),
        "g2": 1.0 + 0.01 * jax.random.normal(ks[4], (h2,)),
        "b2": 0.01 * jax.random.normal(ks[5], (h2,)),
        "w3": convw(ks[6], h2, h1),
        "g3": 1.0 + 0.01 * jax.random.normal(ks[7], (h1,)),
        "b3": 0.01 * jax.random.normal(ks[8], (h1,)),
        "w4": convw(ks[9], h1, out_channels),
    }
    params = {
        # Pre-transformed, bf16, built once.  Spatial widths 4/8/16 are fixed
        # by the 32x32 DCGAN architecture.  Last layer padded to 4 channels so
        # its output lanes stay 128-aligned (padded channel has zero weights).
        # TODO(synk): optionally store these as fp8 on v7x for extra headroom.
        "w1": prep_convt_1x1_weight(raw["w1"]),
        "w2": prep_fused_s2_weight(raw["w2"], W=4),
        "w3": prep_fused_s2_weight(raw["w3"], W=8),
        "w4": prep_fused_s2_weight(raw["w4"], W=16, cout_pad=4),
        "g1": raw["g1"], "b1": raw["b1"],
        "g2": raw["g2"], "b2": raw["b2"],
        "g3": raw["g3"], "b3": raw["b3"],
    }
    return params, raw


def generator_forward(noise, params, *, hidden_size, out_channels):
    """noise: (N, z_dim) -> images (N, out_channels, 32, 32) NCHW (like PyTorch).
    changeNoise's view to (N, z, 1, 1) is a no-op for the 1x1-input convT."""
    N = noise.shape[0]
    h4, h2, h1 = hidden_size * 4, hidden_size * 2, hidden_size

    # Layer 1: ConvT(z -> 4h, k4, s1, p0) on a 1x1 input == one matmul.
    a1, st1 = pl.pallas_call(
        _convt_1x1_kernel,
        out_shape=(jax.ShapeDtypeStruct((N, 16 * h4), jnp.bfloat16),
                   jax.ShapeDtypeStruct((2, 16 * h4), jnp.float32)),
    )(noise.astype(jnp.bfloat16), params["w1"])
    sc1, sh1 = _bn_scale_shift(st1, params["g1"], params["b1"],
                               count=N * 16, reps=4)

    # Layer 2: [BN1+ReLU fused] ConvT(4h -> 2h): 4x4 -> 8x8.
    a2, st2 = _conv_s2_layer(a1.reshape(N, 4, 4 * h4), sc1, sh1, params["w2"],
                             emit_stats=True)
    sc2, sh2 = _bn_scale_shift(st2.sum(axis=0), params["g2"], params["b2"],
                               count=N * 64, reps=8)

    # Layer 3: [BN2+ReLU fused] ConvT(2h -> h): 8x8 -> 16x16.
    a3, st3 = _conv_s2_layer(a2.reshape(N, 8, 8 * h2), sc2, sh2, params["w3"],
                             emit_stats=True)
    sc3, sh3 = _bn_scale_shift(st3.sum(axis=0), params["g3"], params["b3"],
                               count=N * 256, reps=16)

    # Layer 4: [BN3+ReLU fused] ConvT(h -> out): 16x16 -> 32x32, Tanh fused.
    a4 = _conv_s2_layer(a3.reshape(N, 16, 16 * h1), sc3, sh3, params["w4"],
                        emit_stats=False, apply_tanh=True,
                        out_dtype=jnp.float32)

    # Free (contiguous) reshape, drop the padded 4th channel, NCHW like PyTorch.
    # TODO(synk): the final NHWC->NCHW transpose stays a (tiny, 24 KB) XLA op.
    img = a4.reshape(N, 32, 32, 4)[..., :out_channels]
    return jnp.transpose(img, (0, 3, 1, 2))


# TODO(synk): BatchNorm2d running_mean/running_var buffer updates are not
# reproduced (they do not affect the train-mode forward output).


# ---------------------------------------------------------------------------
# Pure-jnp references (used only for the in-script consistency checks)
# ---------------------------------------------------------------------------

def _convt_s2_scatter_ref(x_nhwc, w):
    """Reference ConvTranspose2d(k=4, s=2, p=1) via 16-pass scatter-add."""
    N, H, W, _ = x_nhwc.shape
    cout = w.shape[1]
    Ho, Wo = 2 * H, 2 * W
    out = jnp.zeros((N, Ho + 2, Wo + 2, cout), jnp.float32)
    for kh in range(4):
        for kw in range(4):
            tap = jnp.einsum("nhwc,cd->nhwd", x_nhwc, w[:, :, kh, kw])
            out = out.at[:, kh:kh + Ho:2, kw:kw + Wo:2, :].add(tap)
    return out[:, 1:Ho + 1, 1:Wo + 1, :]


def _convt_s2_banded_ref(x_nhwc, wf, cout):
    """Same op via the block-banded fused-weight formulation (f32, no Pallas)."""
    N, H, W, cin = x_nhwc.shape
    L = wf.shape[-1]
    xp = jnp.pad(x_nhwc.reshape(N, H, W * cin), ((0, 0), (1, 1), (0, 0)))
    out = jnp.zeros((N, H, 2, L), jnp.float32)
    for py in range(2):
        acc = (jnp.einsum("nhk,kl->nhl", xp[:, py:py + H], wf[py, 0]) +
               jnp.einsum("nhk,kl->nhl", xp[:, py + 1:py + 1 + H], wf[py, 1]))
        out = out.at[:, :, py, :].set(acc)
    return out.reshape(N, 2 * H, 2 * W, L // (2 * W))[..., :cout]


def _reference_forward(noise, raw, *, hidden_size, out_channels, eps=EPS):
    def bn_relu(x, g, b):
        mean = x.mean(axis=(0, 1, 2))
        var = ((x - mean) ** 2).mean(axis=(0, 1, 2))
        return jnp.maximum((x - mean) * jax.lax.rsqrt(var + eps) * g + b, 0.0)
    h = jnp.einsum("nc,cdhw->nhwd", noise, raw["w1"])            # (N,4,4,4h)
    h = bn_relu(h, raw["g1"], raw["b1"])
    h = bn_relu(_convt_s2_scatter_ref(h, raw["w2"]), raw["g2"], raw["b2"])
    h = bn_relu(_convt_s2_scatter_ref(h, raw["w3"]), raw["g3"], raw["b3"])
    h = jnp.tanh(_convt_s2_scatter_ref(h, raw["w4"]))
    return jnp.transpose(h, (0, 3, 1, 2))


if __name__ == "__main__":
    Z_DIM, HIDDEN, OUT_CH, BATCH = 64, 16, 3, 2

    key = jax.random.PRNGKey(0)
    k_params, k_noise, k_check = jax.random.split(key, 3)

    # (1) f32 algebra self-check: banded fused-weight formulation == scatter-add.
    kc1, kc2 = jax.random.split(k_check)
    xc = jax.random.normal(kc1, (2, 4, 5, 6), dtype=jnp.float32)
    wc = jax.random.normal(kc2, (6, 3, 4, 4), dtype=jnp.float32)
    wf = prep_fused_s2_weight(wc, W=5, dtype=jnp.float32)
    assert bool(jnp.allclose(_convt_s2_scatter_ref(xc, wc),
                             _convt_s2_banded_ref(xc, wf, cout=3),
                             atol=1e-4)), "banded convT formulation mismatch"

    params, raw = init_generator_params(k_params, Z_DIM, OUT_CH, HIDDEN)
    noise = jax.random.normal(k_noise, (BATCH, Z_DIM), dtype=jnp.float32)

    fwd = jax.jit(functools.partial(generator_forward,
                                    hidden_size=HIDDEN, out_channels=OUT_CH))
    img = jax.block_until_ready(fwd(noise, params))

    assert img.shape == (BATCH, OUT_CH, 32, 32), img.shape
    assert img.dtype == jnp.float32
    assert bool(jnp.all(jnp.isfinite(img)))
    assert bool(jnp.all(jnp.abs(img) <= 1.0))          # tanh range

    # (2) end-to-end check vs pure-jnp f32 reference (bf16 rounding only).
    ref = _reference_forward(noise, raw, hidden_size=HIDDEN, out_channels=OUT_CH)
    max_diff = float(jnp.max(jnp.abs(img - ref)))
    assert max_diff < 0.1, max_diff

    print("KERNEL_OK")
</pallas_src>

<mosaic_0001>
module attributes {stable_mosaic.version = 11 : i64} {
  func.func @_convt_1x1_kernel(%arg0: memref<2x64xbf16, #tpu.memory_space<vmem>>, %arg1: memref<64x1024xbf16, #tpu.memory_space<vmem>>, %arg2: memref<2x1024xbf16, #tpu.memory_space<vmem>>, %arg3: memref<2x1024xf32, #tpu.memory_space<vmem>>) attributes {dimension_semantics = [], scalar_prefetch = 0 : i64, scratch_operands = 0 : i64, tpu.core_type = #tpu.core_type<tc>} {
    %c0 = arith.constant 0 : index
    %c0_0 = arith.constant 0 : index
    %0 = vector.load %arg0[%c0, %c0_0] : memref<2x64xbf16, #tpu.memory_space<vmem>>, vector<2x64xbf16>
    %c0_1 = arith.constant 0 : index
    %c0_2 = arith.constant 0 : index
    %1 = vector.load %arg1[%c0_1, %c0_2] : memref<64x1024xbf16, #tpu.memory_space<vmem>>, vector<64x1024xbf16>
    %cst = arith.constant dense<0.000000e+00> : vector<2x1024xf32>
    %2 = tpu.matmul %0, %1, %cst {dimension_numbers = #tpu.dot_dimension_numbers<[1], [0], [0], [1], [0, 0, 1, 1], [], []>} : vector<2x64xbf16>, vector<64x1024xbf16>, vector<2x1024xf32> -> vector<2x1024xf32>
    %3 = arith.truncf %2 : vector<2x1024xf32> to vector<2x1024xbf16>
    %c0_3 = arith.constant 0 : index
    %c0_4 = arith.constant 0 : index
    %4 = vector.load %arg2[%c0_3, %c0_4] : memref<2x1024xbf16, #tpu.memory_space<vmem>>, vector<2x1024xbf16>
    tpu.vector_store %arg2[%c0_3, %c0_4], %3 {strides = array<i32>} : memref<2x1024xbf16, #tpu.memory_space<vmem>>, vector<2x1024xbf16>,
    %cst_5 = arith.constant dense<0.000000e+00> : vector<1024xf32>
    %5 = vector.multi_reduction <add>, %2, %cst_5 [0] : vector<2x1024xf32> to vector<1024xf32>
    %6 = vector.shape_cast %5 : vector<1024xf32> to vector<1x1024xf32>
    %c0_6 = arith.constant 0 : index
    %c0_7 = arith.constant 0 : index
    %7 = vector.load %arg3[%c0_6, %c0_7] : memref<2x1024xf32, #tpu.memory_space<vmem>>, vector<1x1024xf32>
    tpu.vector_store %arg3[%c0_6, %c0_7], %6 {strides = array<i32>} : memref<2x1024xf32, #tpu.memory_space<vmem>>, vector<1x1024xf32>,
    %8 = arith.mulf %2, %2 : vector<2x1024xf32>
    %cst_8 = arith.constant dense<0.000000e+00> : vector<1024xf32>
    %9 = vector.multi_reduction <add>, %8, %cst_8 [0] : vector<2x1024xf32> to vector<1024xf32>
    %10 = vector.shape_cast %9 : vector<1024xf32> to vector<1x1024xf32>
    %c1 = arith.constant 1 : index
    %c0_9 = arith.constant 0 : index
    %11 = vector.load %arg3[%c1, %c0_9] : memref<2x1024xf32, #tpu.memory_space<vmem>>, vector<1x1024xf32>
    tpu.vector_store %arg3[%c1, %c0_9], %10 {strides = array<i32>} : memref<2x1024xf32, #tpu.memory_space<vmem>>, vector<1x1024xf32>,
    return
  }
}

module attributes {stable_mosaic.version = 11 : i64} {
  func.func @_convt_s2_kernel(%arg0: i32, %arg1: memref<1x4x256xbf16, #tpu.memory_space<vmem>>, %arg2: memref<1x256xf32, #tpu.memory_space<vmem>>, %arg3: memref<1x256xf32, #tpu.memory_space<vmem>>, %arg4: memref<2x2x256x256xbf16, #tpu.memory_space<vmem>>, %arg5: memref<1x4x512xbf16, #tpu.memory_space<vmem>>, %arg6: memref<1x2x256xf32, #tpu.memory_space<vmem>>, %arg7: memref<6x256xbf16, #tpu.memory_space<vmem>>) attributes {dimension_semantics = [#tpu.dimension_semantics<parallel>], iteration_bounds = array<i64: 2>, scalar_prefetch = 0 : i64, scratch_operands = 1 : i64, tpu.core_type = #tpu.core_type<tc>, window_params = [{transform_indices = @transform_0, window_bounds = array<i64: 1, 4, 256>}, {pipeline_mode = #tpu.pipeline_mode<synchronous>, transform_indices = @transform_1, window_bounds = array<i64: 1, 256>}, {pipeline_mode = #tpu.pipeline_mode<synchronous>, transform_indices = @transform_2, window_bounds = array<i64: 1, 256>}, {pipeline_mode = #tpu.pipeline_mode<synchronous>, transform_indices = @transform_3, window_bounds = array<i64: 2, 2, 256, 256>}, {transform_indices = @transform_4, window_bounds = array<i64: 1, 4, 512>}, {transform_indices = @transform_5, window_bounds = array<i64: 1, 2, 256>}]} {
    %c0 = arith.constant 0 : index
    %c0_0 = arith.constant 0 : index
    %c0_1 = arith.constant 0 : index
    %0 = vector.load %arg1[%c0, %c0_0, %c0_1] : memref<1x4x256xbf16, #tpu.memory_space<vmem>>, vector<1x4x256xbf16>
    %1 = vector.shape_cast %0 : vector<1x4x256xbf16> to vector<4x256xbf16>
    %2 = arith.extf %1 : vector<4x256xbf16> to vector<4x256xf32>
    %c0_2 = arith.constant 0 : index
    %c0_3 = arith.constant 0 : index
    %3 = vector.load %arg2[%c0_2, %c0_3] : memref<1x256xf32, #tpu.memory_space<vmem>>, vector<1x256xf32>
    %4 = vector.broadcast %3 : vector<1x256xf32> to vector<4x256xf32>
    %5 = arith.mulf %2, %4 : vector<4x256xf32>
    %c0_4 = arith.constant 0 : index
    %c0_5 = arith.constant 0 : index
    %6 = vector.load %arg3[%c0_4, %c0_5] : memref<1x256xf32, #tpu.memory_space<vmem>>, vector<1x256xf32>
    %7 = vector.broadcast %6 : vector<1x256xf32> to vector<4x256xf32>
    %8 = arith.addf %5, %7 : vector<4x256xf32>
    %cst = arith.constant 0.000000e+00 : f32
    %9 = vector.broadcast %cst : f32 to vector<4x256xf32>
    %10 = arith.maximumf %8, %9 : vector<4x256xf32>
    %cst_6 = arith.constant 0.000000e+00 : bf16
    %11 = vector.broadcast %cst_6 : bf16 to vector<1x256xbf16>
    %c0_7 = arith.constant 0 : index
    %c0_8 = arith.constant 0 : index
    %12 = vector.load %arg7[%c0_7, %c0_8] : memref<6x256xbf16, #tpu.memory_space<vmem>>, vector<1x256xbf16>
    tpu.vector_store %arg7[%c0_7, %c0_8], %11 {strides = array<i32>} : memref<6x256xbf16, #tpu.memory_space<vmem>>, vector<1x256xbf16>,
    %c5 = arith.constant 5 : index
    %c0_9 = arith.constant 0 : index
    %13 = vector.load %arg7[%c5, %c0_9] : memref<6x256xbf16, #tpu.memory_space<vmem>>, vector<1x256xbf16>
    tpu.vector_store %arg7[%c5, %c0_9], %11 {strides = array<i32>} : memref<6x256xbf16, #tpu.memory_space<vmem>>, vector<1x256xbf16>,
    %14 = arith.truncf %10 : vector<4x256xf32> to vector<4x256xbf16>
    %c1 = arith.constant 1 : index
    %c0_10 = arith.constant 0 : index
    %15 = vector.load %arg7[%c1, %c0_10] : memref<6x256xbf16, #tpu.memory_space<vmem>>, vector<4x256xbf16>
    tpu.vector_store %arg7[%c1, %c0_10], %14 {strides = array<i32>} : memref<6x256xbf16, #tpu.memory_space<vmem>>, vector<4x256xbf16>,
    %cst_11 = arith.constant 0.000000e+00 : f32
    %16 = vector.broadcast %cst_11 : f32 to vector<1x256xf32>
    %cst_12 = arith.constant 0.000000e+00 : f32
    %17 = vector.broadcast %cst_12 : f32 to vector<1x256xf32>
    %c0_13 = arith.constant 0 : index
    %c0_14 = arith.constant 0 : index
    %18 = vector.load %arg7[%c0_13, %c0_14] : memref<6x256xbf16, #tpu.memory_space<vmem>>, vector<4x256xbf16>
    %c0_15 = arith.constant 0 : index
    %c0_16 = arith.constant 0 : index
    %c0_17 = arith.constant 0 : index
    %c0_18 = arith.constant 0 : index
    %19 = vector.load %arg4[%c0_15, %c0_16, %c0_17, %c0_18] : memref<2x2x256x256xbf16, #tpu.memory_space<vmem>>, vector<1x1x256x256xbf16>
    %20 = vector.shape_cast %19 : vector<1x1x256x256xbf16> to vector<256x256xbf16>
    %cst_19 = arith.constant dense<0.000000e+00> : vector<4x256xf32>
    %21 = tpu.matmul %18, %20, %cst_19 {dimension_numbers = #tpu.dot_dimension_numbers<[1], [0], [0], [1], [0, 0, 1, 1], [], []>} : vector<4x256xbf16>, vector<256x256xbf16>, vector<4x256xf32> -> vector<4x256xf32>
    %c1_20 = arith.constant 1 : index
    %c0_21 = arith.constant 0 : index
    %22 = vector.load %arg7[%c1_20, %c0_21] : memref<6x256xbf16, #tpu.memory_space<vmem>>, vector<4x256xbf16>
    %c0_22 = arith.constant 0 : index
    %c1_23 = arith.constant 1 : index
    %c0_24 = arith.constant 0 : index
    %c0_25 = arith.constant 0 : index
    %23 = vector.load %arg4[%c0_22, %c1_23, %c0_24, %c0_25] : memref<2x2x256x256xbf16, #tpu.memory_space<vmem>>, vector<1x1x256x256xbf16>
    %24 = vector.shape_cast %23 : vector<1x1x256x256xbf16> to vector<256x256xbf16>
    %cst_26 = arith.constant dense<0.000000e+00> : vector<4x256xf32>
    %25 = tpu.matmul %22, %24, %cst_26 {dimension_numbers = #tpu.dot_dimension_numbers<[1], [0], [0], [1], [0, 0, 1, 1], [], []>} : vector<4x256xbf16>, vector<256x256xbf16>, vector<4x256xf32> -> vector<4x256xf32>
    %26 = arith.addf %21, %25 : vector<4x256xf32>
    %cst_27 = arith.constant dense<0.000000e+00> : vector<256xf32>
    %27 = vector.multi_reduction <add>, %26, %cst_27 [0] : vector<4x256xf32> to vector<256xf32>
    %28 = vector.shape_cast %27 : vector<256xf32> to vector<1x256xf32>
    %29 = arith.addf %16, %28 : vector<1x256xf32>
    %30 = arith.mulf %26, %26 : vector<4x256xf32>
    %cst_28 = arith.constant dense<0.000000e+00> : vector<256xf32>
    %31 = vector.multi_reduction <add>, %30, %cst_28 [0] : vector<4x256xf32> to vector<256xf32>
    %32 = vector.shape_cast %31 : vector<256xf32> to vector<1x256xf32>
    %33 = arith.addf %17, %32 : vector<1x256xf32>
    %34 = arith.truncf %26 : vector<4x256xf32> to vector<4x256xbf16>
    %c0_29 = arith.constant 0 : index
    %c0_30 = arith.constant 0 : index
    %c0_31 = arith.constant 0 : index
    %35 = vector.load %arg5[%c0_29, %c0_30, %c0_31] : memref<1x4x512xbf16, #tpu.memory_space<vmem>>, vector<1x4x256xbf16>
    %36 = vector.shape_cast %35 : vector<1x4x256xbf16> to vector<4x256xbf16>
    %37 = vector.shape_cast %34 : vector<4x256xbf16> to vector<1x4x256xbf16>
    tpu.vector_store %arg5[%c0_29, %c0_30, %c0_31], %37 {strides = array<i32>} : memref<1x4x512xbf16, #tpu.memory_space<vmem>>, vector<1x4x256xbf16>,
    %c1_32 = arith.constant 1 : index
    %c0_33 = arith.constant 0 : index
    %38 = vector.load %arg7[%c1_32, %c0_33] : memref<6x256xbf16, #tpu.memory_space<vmem>>, vector<4x256xbf16>
    %c1_34 = arith.constant 1 : index
    %c0_35 = arith.constant 0 : index
    %c0_36 = arith.constant 0 : index
    %c0_37 = arith.constant 0 : index
    %39 = vector.load %arg4[%c1_34, %c0_35, %c0_36, %c0_37] : memref<2x2x256x256xbf16, #tpu.memory_space<vmem>>, vector<1x1x256x256xbf16>
    %40 = vector.shape_cast %39 : vector<1x1x256x256xbf16> to vector<256x256xbf16>
    %cst_38 = arith.constant dense<0.000000e+00> : vector<4x256xf32>
    %41 = tpu.matmul %38, %40, %cst_38 {dimension_numbers = #tpu.dot_dimension_numbers<[1], [0], [0], [1], [0, 0, 1, 1], [], []>} : vector<4x256xbf16>, vector<256x256xbf16>, vector<4x256xf32> -> vector<4x256xf32>
    %c2 = arith.constant 2 : index
    %c0_39 = arith.constant 0 : index
    %42 = vector.load %arg7[%c2, %c0_39] : memref<6x256xbf16, #tpu.memory_space<vmem>>, vector<4x256xbf16>
    %c1_40 = arith.constant 1 : index
    %c1_41 = arith.constant 1 : index
    %c0_42 = arith.constant 0 : index
    %c0_43 = arith.constant 0 : index
    %43 = vector.load %arg4[%c1_40, %c1_41, %c0_42, %c0_43] : memref<2x2x256x256xbf16, #tpu.memory_space<vmem>>, vector<1x1x256x256xbf16>
    %44 = vector.shape_cast %43 : vector<1x1x256x256xbf16> to vector<256x256xbf16>
    %cst_44 = arith.constant dense<0.000000e+00> : vector<4x256xf32>
    %45 = tpu.matmul %42, %44, %cst_44 {dimension_numbers = #tpu.dot_dimension_numbers<[1], [0], [0], [1], [0, 0, 1, 1], [], []>} : vector<4x256xbf16>, vector<256x256xbf16>, vector<4x256xf32> -> vector<4x256xf32>
    %46 = arith.addf %41, %45 : vector<4x256xf32>
    %cst_45 = arith.constant dense<0.000000e+00> : vector<256xf32>
    %47 = vector.multi_reduction <add>, %46, %cst_45 [0] : vector<4x256xf32> to vector<256xf32>
    %48 = vector.shape_cast %47 : vector<256xf32> to vector<1x256xf32>
    %49 = arith.addf %29, %48 : vector<1x256xf32>
    %50 = arith.mulf %46, %46 : vector<4x256xf32>
    %cst_46 = arith.constant dense<0.000000e+00> : vector<256xf32>
    %51 = vector.multi_reduction <add>, %50, %cst_46 [0] : vector<4x256xf32> to vector<256xf32>
    %52 = vector.shape_cast %51 : vector<256xf32> to vector<1x256xf32>
    %53 = arith.addf %33, %52 : vector<1x256xf32>
    %54 = arith.truncf %46 : vector<4x256xf32> to vector<4x256xbf16>
    %c0_47 = arith.constant 0 : index
    %c0_48 = arith.constant 0 : index
    %c256 = arith.constant 256 : index
    %55 = vector.load %arg5[%c0_47, %c0_48, %c256] : memref<1x4x512xbf16, #tpu.memory_space<vmem>>, vector<1x4x256xbf16>
    %56 = vector.shape_cast %55 : vector<1x4x256xbf16> to vector<4x256xbf16>
    %57 = vector.shape_cast %54 : vector<4x256xbf16> to vector<1x4x256xbf16>
    tpu.vector_store %arg5[%c0_47, %c0_48, %c256], %57 {strides = array<i32>} : memref<1x4x512xbf16, #tpu.memory_space<vmem>>, vector<1x4x256xbf16>,
    %c0_49 = arith.constant 0 : index
    %c0_50 = arith.constant 0 : index
    %c0_51 = arith.constant 0 : index
    %58 = vector.load %arg6[%c0_49, %c0_50, %c0_51] : memref<1x2x256xf32, #tpu.memory_space<vmem>>, vector<1x1x256xf32>
    %59 = vector.shape_cast %58 : vector<1x1x256xf32> to vector<1x256xf32>
    %60 = vector.shape_cast %49 : vector<1x256xf32> to vector<1x1x256xf32>
    tpu.vector_store %arg6[%c0_49, %c0_50, %c0_51], %60 {strides = array<i32>} : memref<1x2x256xf32, #tpu.memory_space<vmem>>, vector<1x1x256xf32>,
    %c0_52 = arith.constant 0 : index
    %c1_53 = arith.constant 1 : index
    %c0_54 = arith.constant 0 : index
    %61 = vector.load %arg6[%c0_52, %c1_53, %c0_54] : memref<1x2x256xf32, #tpu.memory_space<vmem>>, vector<1x1x256xf32>
    %62 = vector.shape_cast %61 : vector<1x1x256xf32> to vector<1x256xf32>
    %63 = vector.shape_cast %53 : vector<1x256xf32> to vector<1x1x256xf32>
    tpu.vector_store %arg6[%c0_52, %c1_53, %c0_54], %63 {strides = array<i32>} : memref<1x2x256xf32, #tpu.memory_space<vmem>>, vector<1x1x256xf32>,
    return
  }
  func.func @transform_0(%arg0: i32) -> (i32, i32, i32) {
    %c0_i32 = arith.constant 0 : i32
    %c0_i32_0 = arith.constant 0 : i32
    %c0_i32_1 = arith.constant 0 : i32
    return %arg0, %c0_i32, %c0_i32_0 : i32, i32, i32
  }
  func.func @transform_1(%arg0: i32) -> (i32, i32) {
    %c0_i32 = arith.constant 0 : i32
    %c0_i32_0 = arith.constant 0 : i32
    %c0_i32_1 = arith.constant 0 : i32
    return %c0_i32, %c0_i32_0 : i32, i32
  }
  func.func @transform_2(%arg0: i32) -> (i32, i32) {
    %c0_i32 = arith.constant 0 : i32
    %c0_i32_0 = arith.constant 0 : i32
    %c0_i32_1 = arith.constant 0 : i32
    return %c0_i32, %c0_i32_0 : i32, i32
  }
  func.func @transform_3(%arg0: i32) -> (i32, i32, i32, i32) {
    %c0_i32 = arith.constant 0 : i32
    %c0_i32_0 = arith.constant 0 : i32
    %c0_i32_1 = arith.constant 0 : i32
    %c0_i32_2 = arith.constant 0 : i32
    %c0_i32_3 = arith.constant 0 : i32
    return %c0_i32, %c0_i32_0, %c0_i32_1, %c0_i32_2 : i32, i32, i32, i32
  }
  func.func @transform_4(%arg0: i32) -> (i32, i32, i32) {
    %c0_i32 = arith.constant 0 : i32
    %c0_i32_0 = arith.constant 0 : i32
    %c0_i32_1 = arith.constant 0 : i32
    return %arg0, %c0_i32, %c0_i32_0 : i32, i32, i32
  }
  func.func @transform_5(%arg0: i32) -> (i32, i32, i32) {
    %c0_i32 = arith.constant 0 : i32
    %c0_i32_0 = arith.constant 0 : i32
    %c0_i32_1 = arith.constant 0 : i32
    return %arg0, %c0_i32, %c0_i32_0 : i32, i32, i32
  }
}

module attributes {stable_mosaic.version = 11 : i64} {
  func.func @_convt_s2_kernel(%arg0: i32, %arg1: memref<1x8x256xbf16, #tpu.memory_space<vmem>>, %arg2: memref<1x256xf32, #tpu.memory_space<vmem>>, %arg3: memref<1x256xf32, #tpu.memory_space<vmem>>, %arg4: memref<2x2x256x256xbf16, #tpu.memory_space<vmem>>, %arg5: memref<1x8x512xbf16, #tpu.memory_space<vmem>>, %arg6: memref<1x2x256xf32, #tpu.memory_space<vmem>>, %arg7: memref<10x256xbf16, #tpu.memory_space<vmem>>) attributes {dimension_semantics = [#tpu.dimension_semantics<parallel>], iteration_bounds = array<i64: 2>, scalar_prefetch = 0 : i64, scratch_operands = 1 : i64, tpu.core_type = #tpu.core_type<tc>, window_params = [{transform_indices = @transform_0, window_bounds = array<i64: 1, 8, 256>}, {pipeline_mode = #tpu.pipeline_mode<synchronous>, transform_indices = @transform_1, window_bounds = array<i64: 1, 256>}, {pipeline_mode = #tpu.pipeline_mode<synchronous>, transform_indices = @transform_2, window_bounds = array<i64: 1, 256>}, {pipeline_mode = #tpu.pipeline_mode<synchronous>, transform_indices = @transform_3, window_bounds = array<i64: 2, 2, 256, 256>}, {transform_indices = @transform_4, window_bounds = array<i64: 1, 8, 512>}, {transform_indices = @transform_5, window_bounds = array<i64: 1, 2, 256>}]} {
    %c0 = arith.constant 0 : index
    %c0_0 = arith.constant 0 : index
    %c0_1 = arith.constant 0 : index
    %0 = vector.load %arg1[%c0, %c0_0, %c0_1] : memref<1x8x256xbf16, #tpu.memory_space<vmem>>, vector<1x8x256xbf16>
    %1 = vector.shape_cast %0 : vector<1x8x256xbf16> to vector<8x256xbf16>
    %2 = arith.extf %1 : vector<8x256xbf16> to vector<8x256xf32>
    %c0_2 = arith.constant 0 : index
    %c0_3 = arith.constant 0 : index
    %3 = vector.load %arg2[%c0_2, %c0_3] : memref<1x256xf32, #tpu.memory_space<vmem>>, vector<1x256xf32>
    %4 = vector.broadcast %3 : vector<1x256xf32> to vector<8x256xf32>
    %5 = arith.mulf %2, %4 : vector<8x256xf32>
    %c0_4 = arith.constant 0 : index
    %c0_5 = arith.constant 0 : index
    %6 = vector.load %arg3[%c0_4, %c0_5] : memref<1x256xf32, #tpu.memory_space<vmem>>, vector<1x256xf32>
    %7 = vector.broadcast %6 : vector<1x256xf32> to vector<8x256xf32>
    %8 = arith.addf %5, %7 : vector<8x256xf32>
    %cst = arith.constant 0.000000e+00 : f32
    %9 = vector.broadcast %cst : f32 to vector<8x256xf32>
    %10 = arith.maximumf %8, %9 : vector<8x256xf32>
    %cst_6 = arith.constant 0.000000e+00 : bf16
    %11 = vector.broadcast %cst_6 : bf16 to vector<1x256xbf16>
    %c0_7 = arith.constant 0 : index
    %c0_8 = arith.constant 0 : index
    %12 = vector.load %arg7[%c0_7, %c0_8] : memref<10x256xbf16, #tpu.memory_space<vmem>>, vector<1x256xbf16>
    tpu.vector_store %arg7[%c0_7, %c0_8], %11 {strides = array<i32>} : memref<10x256xbf16, #tpu.memory_space<vmem>>, vector<1x256xbf16>,
    %c9 = arith.constant 9 : index
    %c0_9 = arith.constant 0 : index
    %13 = vector.load %arg7[%c9, %c0_9] : memref<10x256xbf16, #tpu.memory_space<vmem>>, vector<1x256xbf16>
    tpu.vector_store %arg7[%c9, %c0_9], %11 {strides = array<i32>} : memref<10x256xbf16, #tpu.memory_space<vmem>>, vector<1x256xbf16>,
    %14 = arith.truncf %10 : vector<8x256xf32> to vector<8x256xbf16>
    %c1 = arith.constant 1 : index
    %c0_10 = arith.constant 0 : index
    %15 = vector.load %arg7[%c1, %c0_10] : memref<10x256xbf16, #tpu.memory_space<vmem>>, vector<8x256xbf16>
    tpu.vector_store %arg7[%c1, %c0_10], %14 {strides = array<i32>} : memref<10x256xbf16, #tpu.memory_space<vmem>>, vector<8x256xbf16>,
    %cst_11 = arith.constant 0.000000e+00 : f32
    %16 = vector.broadcast %cst_11 : f32 to vector<1x256xf32>
    %cst_12 = arith.constant 0.000000e+00 : f32
    %17 = vector.broadcast %cst_12 : f32 to vector<1x256xf32>
    %c0_13 = arith.constant 0 : index
    %c0_14 = arith.constant 0 : index
    %18 = vector.load %arg7[%c0_13, %c0_14] : memref<10x256xbf16, #tpu.memory_space<vmem>>, vector<8x256xbf16>
    %c0_15 = arith.constant 0 : index
    %c0_16 = arith.constant 0 : index
    %c0_17 = arith.constant 0 : index
    %c0_18 = arith.constant 0 : index
    %19 = vector.load %arg4[%c0_15, %c0_16, %c0_17, %c0_18] : memref<2x2x256x256xbf16, #tpu.memory_space<vmem>>, vector<1x1x256x256xbf16>
    %20 = vector.shape_cast %19 : vector<1x1x256x256xbf16> to vector<256x256xbf16>
    %cst_19 = arith.constant dense<0.000000e+00> : vector<8x256xf32>
    %21 = tpu.matmul %18, %20, %cst_19 {dimension_numbers = #tpu.dot_dimension_numbers<[1], [0], [0], [1], [0, 0, 1, 1], [], []>} : vector<8x256xbf16>, vector<256x256xbf16>, vector<8x256xf32> -> vector<8x256xf32>
    %c1_20 = arith.constant 1 : index
    %c0_21 = arith.constant 0 : index
    %22 = vector.load %arg7[%c1_20, %c0_21] : memref<10x256xbf16, #tpu.memory_space<vmem>>, vector<8x256xbf16>
    %c0_22 = arith.constant 0 : index
    %c1_23 = arith.constant 1 : index
    %c0_24 = arith.constant 0 : index
    %c0_25 = arith.constant 0 : index
    %23 = vector.load %arg4[%c0_22, %c1_23, %c0_24, %c0_25] : memref<2x2x256x256xbf16, #tpu.memory_space<vmem>>, vector<1x1x256x256xbf16>
    %24 = vector.shape_cast %23 : vector<1x1x256x256xbf16> to vector<256x256xbf16>
    %cst_26 = arith.constant dense<0.000000e+00> : vector<8x256xf32>
    %25 = tpu.matmul %22, %24, %cst_26 {dimension_numbers = #tpu.dot_dimension_numbers<[1], [0], [0], [1], [0, 0, 1, 1], [], []>} : vector<8x256xbf16>, vector<256x256xbf16>, vector<8x256xf32> -> vector<8x256xf32>
    %26 = arith.addf %21, %25 : vector<8x256xf32>
    %cst_27 = arith.constant dense<0.000000e+00> : vector<256xf32>
    %27 = vector.multi_reduction <add>, %26, %cst_27 [0] : vector<8x256xf32> to vector<256xf32>
    %28 = vector.shape_cast %27 : vector<256xf32> to vector<1x256xf32>
    %29 = arith.addf %16, %28 : vector<1x256xf32>
    %30 = arith.mulf %26, %26 : vector<8x256xf32>
    %cst_28 = arith.constant dense<0.000000e+00> : vector<256xf32>
    %31 = vector.multi_reduction <add>, %30, %cst_28 [0] : vector<8x256xf32> to vector<256xf32>
    %32 = vector.shape_cast %31 : vector<256xf32> to vector<1x256xf32>
    %33 = arith.addf %17, %32 : vector<1x256xf32>
    %34 = arith.truncf %26 : vector<8x256xf32> to vector<8x256xbf16>
    %c0_29 = arith.constant 0 : index
    %c0_30 = arith.constant 0 : index
    %c0_31 = arith.constant 0 : index
    %35 = vector.load %arg5[%c0_29, %c0_30, %c0_31] : memref<1x8x512xbf16, #tpu.memory_space<vmem>>, vector<1x8x256xbf16>
    %36 = vector.shape_cast %35 : vector<1x8x256xbf16> to vector<8x256xbf16>
    %37 = vector.shape_cast %34 : vector<8x256xbf16> to vector<1x8x256xbf16>
    tpu.vector_store %arg5[%c0_29, %c0_30, %c0_31], %37 {strides = array<i32>} : memref<1x8x512xbf16, #tpu.memory_space<vmem>>, vector<1x8x256xbf16>,
    %c1_32 = arith.constant 1 : index
    %c0_33 = arith.constant 0 : index
    %38 = vector.load %arg7[%c1_32, %c0_33] : memref<10x256xbf16, #tpu.memory_space<vmem>>, vector<8x256xbf16>
    %c1_34 = arith.constant 1 : index
    %c0_35 = arith.constant 0 : index
    %c0_36 = arith.constant 0 : index
    %c0_37 = arith.constant 0 : index
    %39 = vector.load %arg4[%c1_34, %c0_35, %c0_36, %c0_37] : memref<2x2x256x256xbf16, #tpu.memory_space<vmem>>, vector<1x1x256x256xbf16>
    %40 = vector.shape_cast %39 : vector<1x1x256x256xbf16> to vector<256x256xbf16>
    %cst_38 = arith.constant dense<0.000000e+00> : vector<8x256xf32>
    %41 = tpu.matmul %38, %40, %cst_38 {dimension_numbers = #tpu.dot_dimension_numbers<[1], [0], [0], [1], [0, 0, 1, 1], [], []>} : vector<8x256xbf16>, vector<256x256xbf16>, vector<8x256xf32> -> vector<8x256xf32>
    %c2 = arith.constant 2 : index
    %c0_39 = arith.constant 0 : index
    %42 = vector.load %arg7[%c2, %c0_39] : memref<10x256xbf16, #tpu.memory_space<vmem>>, vector<8x256xbf16>
    %c1_40 = arith.constant 1 : index
    %c1_41 = arith.constant 1 : index
    %c0_42 = arith.constant 0 : index
    %c0_43 = arith.constant 0 : index
    %43 = vector.load %arg4[%c1_40, %c1_41, %c0_42, %c0_43] : memref<2x2x256x256xbf16, #tpu.memory_space<vmem>>, vector<1x1x256x256xbf16>
    %44 = vector.shape_cast %43 : vector<1x1x256x256xbf16> to vector<256x256xbf16>
    %cst_44 = arith.constant dense<0.000000e+00> : vector<8x256xf32>
    %45 = tpu.matmul %42, %44, %cst_44 {dimension_numbers = #tpu.dot_dimension_numbers<[1], [0], [0], [1], [0, 0, 1, 1], [], []>} : vector<8x256xbf16>, vector<256x256xbf16>, vector<8x256xf32> -> vector<8x256xf32>
    %46 = arith.addf %41, %45 : vector<8x256xf32>
    %cst_45 = arith.constant dense<0.000000e+00> : vector<256xf32>
    %47 = vector.multi_reduction <add>, %46, %cst_45 [0] : vector<8x256xf32> to vector<256xf32>
    %48 = vector.shape_cast %47 : vector<256xf32> to vector<1x256xf32>
    %49 = arith.addf %29, %48 : vector<1x256xf32>
    %50 = arith.mulf %46, %46 : vector<8x256xf32>
    %cst_46 = arith.constant dense<0.000000e+00> : vector<256xf32>
    %51 = vector.multi_reduction <add>, %50, %cst_46 [0] : vector<8x256xf32> to vector<256xf32>
    %52 = vector.shape_cast %51 : vector<256xf32> to vector<1x256xf32>
    %53 = arith.addf %33, %52 : vector<1x256xf32>
    %54 = arith.truncf %46 : vector<8x256xf32> to vector<8x256xbf16>
    %c0_47 = arith.constant 0 : index
    %c0_48 = arith.constant 0 : index
    %c256 = arith.constant 256 : index
    %55 = vector.load %arg5[%c0_47, %c0_48, %c256] : memref<1x8x512xbf16, #tpu.memory_space<vmem>>, vector<1x8x256xbf16>
    %56 = vector.shape_cast %55 : vector<1x8x256xbf16> to vector<8x256xbf16>
    %57 = vector.shape_cast %54 : vector<8x256xbf16> to vector<1x8x256xbf16>
    tpu.vector_store %arg5[%c0_47, %c0_48, %c256], %57 {strides = array<i32>} : memref<1x8x512xbf16, #tpu.memory_space<vmem>>, vector<1x8x256xbf16>,
    %c0_49 = arith.constant 0 : index
    %c0_50 = arith.constant 0 : index
    %c0_51 = arith.constant 0 : index
    %58 = vector.load %arg6[%c0_49, %c0_50, %c0_51] : memref<1x2x256xf32, #tpu.memory_space<vmem>>, vector<1x1x256xf32>
    %59 = vector.shape_cast %58 : vector<1x1x256xf32> to vector<1x256xf32>
    %60 = vector.shape_cast %49 : vector<1x256xf32> to vector<1x1x256xf32>
    tpu.vector_store %arg6[%c0_49, %c0_50, %c0_51], %60 {strides = array<i32>} : memref<1x2x256xf32, #tpu.memory_space<vmem>>, vector<1x1x256xf32>,
    %c0_52 = arith.constant 0 : index
    %c1_53 = arith.constant 1 : index
    %c0_54 = arith.constant 0 : index
    %61 = vector.load %arg6[%c0_52, %c1_53, %c0_54] : memref<1x2x256xf32, #tpu.memory_space<vmem>>, vector<1x1x256xf32>
    %62 = vector.shape_cast %61 : vector<1x1x256xf32> to vector<1x256xf32>
    %63 = vector.shape_cast %53 : vector<1x256xf32> to vector<1x1x256xf32>
    tpu.vector_store %arg6[%c0_52, %c1_53, %c0_54], %63 {strides = array<i32>} : memref<1x2x256xf32, #tpu.memory_space<vmem>>, vector<1x1x256xf32>,
    return
  }
  func.func @transform_0(%arg0: i32) -> (i32, i32, i32) {
    %c0_i32 = arith.constant 0 : i32
    %c0_i32_0 = arith.constant 0 : i32
    %c0_i32_1 = arith.constant 0 : i32
    return %arg0, %c0_i32, %c0_i32_0 : i32, i32, i32
  }
  func.func @transform_1(%arg0: i32) -> (i32, i32) {
    %c0_i32 = arith.constant 0 : i32
    %c0_i32_0 = arith.constant 0 : i32
    %c0_i32_1 = arith.constant 0 : i32
    return %c0_i32, %c0_i32_0 : i32, i32
  }
  func.func @transform_2(%arg0: i32) -> (i32, i32) {
    %c0_i32 = arith.constant 0 : i32
    %c0_i32_0 = arith.constant 0 : i32
    %c0_i32_1 = arith.constant 0 : i32
    return %c0_i32, %c0_i32_0 : i32, i32
  }
  func.func @transform_3(%arg0: i32) -> (i32, i32, i32, i32) {
    %c0_i32 = arith.constant 0 : i32
    %c0_i32_0 = arith.constant 0 : i32
    %c0_i32_1 = arith.constant 0 : i32
    %c0_i32_2 = arith.constant 0 : i32
    %c0_i32_3 = arith.constant 0 : i32
    return %c0_i32, %c0_i32_0, %c0_i32_1, %c0_i32_2 : i32, i32, i32, i32
  }
  func.func @transform_4(%arg0: i32) -> (i32, i32, i32) {
    %c0_i32 = arith.constant 0 : i32
    %c0_i32_0 = arith.constant 0 : i32
    %c0_i32_1 = arith.constant 0 : i32
    return %arg0, %c0_i32, %c0_i32_0 : i32, i32, i32
  }
  func.func @transform_5(%arg0: i32) -> (i32, i32, i32) {
    %c0_i32 = arith.constant 0 : i32
    %c0_i32_0 = arith.constant 0 : i32
    %c0_i32_1 = arith.constant 0 : i32
    return %arg0, %c0_i32, %c0_i32_0 : i32, i32, i32
  }
}

module attributes {stable_mosaic.version = 11 : i64} {
  func.func @_convt_s2_kernel(%arg0: i32, %arg1: memref<1x16x256xbf16, #tpu.memory_space<vmem>>, %arg2: memref<1x256xf32, #tpu.memory_space<vmem>>, %arg3: memref<1x256xf32, #tpu.memory_space<vmem>>, %arg4: memref<2x2x256x128xbf16, #tpu.memory_space<vmem>>, %arg5: memref<1x16x256xf32, #tpu.memory_space<vmem>>, %arg6: memref<18x256xbf16, #tpu.memory_space<vmem>>) attributes {dimension_semantics = [#tpu.dimension_semantics<parallel>], iteration_bounds = array<i64: 2>, scalar_prefetch = 0 : i64, scratch_operands = 1 : i64, tpu.core_type = #tpu.core_type<tc>, window_params = [{transform_indices = @transform_0, window_bounds = array<i64: 1, 16, 256>}, {pipeline_mode = #tpu.pipeline_mode<synchronous>, transform_indices = @transform_1, window_bounds = array<i64: 1, 256>}, {pipeline_mode = #tpu.pipeline_mode<synchronous>, transform_indices = @transform_2, window_bounds = array<i64: 1, 256>}, {pipeline_mode = #tpu.pipeline_mode<synchronous>, transform_indices = @transform_3, window_bounds = array<i64: 2, 2, 256, 128>}, {transform_indices = @transform_4, window_bounds = array<i64: 1, 16, 256>}]} {
    %c0 = arith.constant 0 : index
    %c0_0 = arith.constant 0 : index
    %c0_1 = arith.constant 0 : index
    %0 = vector.load %arg1[%c0, %c0_0, %c0_1] : memref<1x16x256xbf16, #tpu.memory_space<vmem>>, vector<1x16x256xbf16>
    %1 = vector.shape_cast %0 : vector<1x16x256xbf16> to vector<16x256xbf16>
    %2 = arith.extf %1 : vector<16x256xbf16> to vector<16x256xf32>
    %c0_2 = arith.constant 0 : index
    %c0_3 = arith.constant 0 : index
    %3 = vector.load %arg2[%c0_2, %c0_3] : memref<1x256xf32, #tpu.memory_space<vmem>>, vector<1x256xf32>
    %4 = vector.broadcast %3 : vector<1x256xf32> to vector<16x256xf32>
    %5 = arith.mulf %2, %4 : vector<16x256xf32>
    %c0_4 = arith.constant 0 : index
    %c0_5 = arith.constant 0 : index
    %6 = vector.load %arg3[%c0_4, %c0_5] : memref<1x256xf32, #tpu.memory_space<vmem>>, vector<1x256xf32>
    %7 = vector.broadcast %6 : vector<1x256xf32> to vector<16x256xf32>
    %8 = arith.addf %5, %7 : vector<16x256xf32>
    %cst = arith.constant 0.000000e+00 : f32
    %9 = vector.broadcast %cst : f32 to vector<16x256xf32>
    %10 = arith.maximumf %8, %9 : vector<16x256xf32>
    %cst_6 = arith.constant 0.000000e+00 : bf16
    %11 = vector.broadcast %cst_6 : bf16 to vector<1x256xbf16>
    %c0_7 = arith.constant 0 : index
    %c0_8 = arith.constant 0 : index
    %12 = vector.load %arg6[%c0_7, %c0_8] : memref<18x256xbf16, #tpu.memory_space<vmem>>, vector<1x256xbf16>
    tpu.vector_store %arg6[%c0_7, %c0_8], %11 {strides = array<i32>} : memref<18x256xbf16, #tpu.memory_space<vmem>>, vector<1x256xbf16>,
    %c17 = arith.constant 17 : index
    %c0_9 = arith.constant 0 : index
    %13 = vector.load %arg6[%c17, %c0_9] : memref<18x256xbf16, #tpu.memory_space<vmem>>, vector<1x256xbf16>
    tpu.vector_store %arg6[%c17, %c0_9], %11 {strides = array<i32>} : memref<18x256xbf16, #tpu.memory_space<vmem>>, vector<1x256xbf16>,
    %14 = arith.truncf %10 : vector<16x256xf32> to vector<16x256xbf16>
    %c1 = arith.constant 1 : index
    %c0_10 = arith.constant 0 : index
    %15 = vector.load %arg6[%c1, %c0_10] : memref<18x256xbf16, #tpu.memory_space<vmem>>, vector<16x256xbf16>
    tpu.vector_store %arg6[%c1, %c0_10], %14 {strides = array<i32>} : memref<18x256xbf16, #tpu.memory_space<vmem>>, vector<16x256xbf16>,
    %c0_11 = arith.constant 0 : index
    %c0_12 = arith.constant 0 : index
    %16 = vector.load %arg6[%c0_11, %c0_12] : memref<18x256xbf16, #tpu.memory_space<vmem>>, vector<16x256xbf16>
    %c0_13 = arith.constant 0 : index
    %c0_14 = arith.constant 0 : index
    %c0_15 = arith.constant 0 : index
    %c0_16 = arith.constant 0 : index
    %17 = vector.load %arg4[%c0_13, %c0_14, %c0_15, %c0_16] : memref<2x2x256x128xbf16, #tpu.memory_space<vmem>>, vector<1x1x256x128xbf16>
    %18 = vector.shape_cast %17 : vector<1x1x256x128xbf16> to vector<256x128xbf16>
    %cst_17 = arith.constant dense<0.000000e+00> : vector<16x128xf32>
    %19 = tpu.matmul %16, %18, %cst_17 {dimension_numbers = #tpu.dot_dimension_numbers<[1], [0], [0], [1], [0, 0, 1, 1], [], []>} : vector<16x256xbf16>, vector<256x128xbf16>, vector<16x128xf32> -> vector<16x128xf32>
    %c1_18 = arith.constant 1 : index
    %c0_19 = arith.constant 0 : index
    %20 = vector.load %arg6[%c1_18, %c0_19] : memref<18x256xbf16, #tpu.memory_space<vmem>>, vector<16x256xbf16>
    %c0_20 = arith.constant 0 : index
    %c1_21 = arith.constant 1 : index
    %c0_22 = arith.constant 0 : index
    %c0_23 = arith.constant 0 : index
    %21 = vector.load %arg4[%c0_20, %c1_21, %c0_22, %c0_23] : memref<2x2x256x128xbf16, #tpu.memory_space<vmem>>, vector<1x1x256x128xbf16>
    %22 = vector.shape_cast %21 : vector<1x1x256x128xbf16> to vector<256x128xbf16>
    %cst_24 = arith.constant dense<0.000000e+00> : vector<16x128xf32>
    %23 = tpu.matmul %20, %22, %cst_24 {dimension_numbers = #tpu.dot_dimension_numbers<[1], [0], [0], [1], [0, 0, 1, 1], [], []>} : vector<16x256xbf16>, vector<256x128xbf16>, vector<16x128xf32> -> vector<16x128xf32>
    %24 = arith.addf %19, %23 : vector<16x128xf32>
    %25 = math.tanh %24 : vector<16x128xf32>
    %c0_25 = arith.constant 0 : index
    %c0_26 = arith.constant 0 : index
    %c0_27 = arith.constant 0 : index
    %26 = vector.load %arg5[%c0_25, %c0_26, %c0_27] : memref<1x16x256xf32, #tpu.memory_space<vmem>>, vector<1x16x128xf32>
    %27 = vector.shape_cast %26 : vector<1x16x128xf32> to vector<16x128xf32>
    %28 = vector.shape_cast %25 : vector<16x128xf32> to vector<1x16x128xf32>
    tpu.vector_store %arg5[%c0_25, %c0_26, %c0_27], %28 {strides = array<i32>} : memref<1x16x256xf32, #tpu.memory_space<vmem>>, vector<1x16x128xf32>,
    %c1_28 = arith.constant 1 : index
    %c0_29 = arith.constant 0 : index
    %29 = vector.load %arg6[%c1_28, %c0_29] : memref<18x256xbf16, #tpu.memory_space<vmem>>, vector<16x256xbf16>
    %c1_30 = arith.constant 1 : index
    %c0_31 = arith.constant 0 : index
    %c0_32 = arith.constant 0 : index
    %c0_33 = arith.constant 0 : index
    %30 = vector.load %arg4[%c1_30, %c0_31, %c0_32, %c0_33] : memref<2x2x256x128xbf16, #tpu.memory_space<vmem>>, vector<1x1x256x128xbf16>
    %31 = vector.shape_cast %30 : vector<1x1x256x128xbf16> to vector<256x128xbf16>
    %cst_34 = arith.constant dense<0.000000e+00> : vector<16x128xf32>
    %32 = tpu.matmul %29, %31, %cst_34 {dimension_numbers = #tpu.dot_dimension_numbers<[1], [0], [0], [1], [0, 0, 1, 1], [], []>} : vector<16x256xbf16>, vector<256x128xbf16>, vector<16x128xf32> -> vector<16x128xf32>
    %c2 = arith.constant 2 : index
    %c0_35 = arith.constant 0 : index
    %33 = vector.load %arg6[%c2, %c0_35] : memref<18x256xbf16, #tpu.memory_space<vmem>>, vector<16x256xbf16>
    %c1_36 = arith.constant 1 : index
    %c1_37 = arith.constant 1 : index
    %c0_38 = arith.constant 0 : index
    %c0_39 = arith.constant 0 : index
    %34 = vector.load %arg4[%c1_36, %c1_37, %c0_38, %c0_39] : memref<2x2x256x128xbf16, #tpu.memory_space<vmem>>, vector<1x1x256x128xbf16>
    %35 = vector.shape_cast %34 : vector<1x1x256x128xbf16> to vector<256x128xbf16>
    %cst_40 = arith.constant dense<0.000000e+00> : vector<16x128xf32>
    %36 = tpu.matmul %33, %35, %cst_40 {dimension_numbers = #tpu.dot_dimension_numbers<[1], [0], [0], [1], [0, 0, 1, 1], [], []>} : vector<16x256xbf16>, vector<256x128xbf16>, vector<16x128xf32> -> vector<16x128xf32>
    %37 = arith.addf %32, %36 : vector<16x128xf32>
    %38 = math.tanh %37 : vector<16x128xf32>
    %c0_41 = arith.constant 0 : index
    %c0_42 = arith.constant 0 : index
    %c128 = arith.constant 128 : index
    %39 = vector.load %arg5[%c0_41, %c0_42, %c128] : memref<1x16x256xf32, #tpu.memory_space<vmem>>, vector<1x16x128xf32>
    %40 = vector.shape_cast %39 : vector<1x16x128xf32> to vector<16x128xf32>
    %41 = vector.shape_cast %38 : vector<16x128xf32> to vector<1x16x128xf32>
    tpu.vector_store %arg5[%c0_41, %c0_42, %c128], %41 {strides = array<i32>} : memref<1x16x256xf32, #tpu.memory_space<vmem>>, vector<1x16x128xf32>,
    return
  }
  func.func @transform_0(%arg0: i32) -> (i32, i32, i32) {
    %c0_i32 = arith.constant 0 : i32
    %c0_i32_0 = arith.constant 0 : i32
    %c0_i32_1 = arith.constant 0 : i32
    return %arg0, %c0_i32, %c0_i32_0 : i32, i32, i32
  }
  func.func @transform_1(%arg0: i32) -> (i32, i32) {
    %c0_i32 = arith.constant 0 : i32
    %c0_i32_0 = arith.constant 0 : i32
    %c0_i32_1 = arith.constant 0 : i32
    return %c0_i32, %c0_i32_0 : i32, i32
  }
  func.func @transform_2(%arg0: i32) -> (i32, i32) {
    %c0_i32 = arith.constant 0 : i32
    %c0_i32_0 = arith.constant 0 : i32
    %c0_i32_1 = arith.constant 0 : i32
    return %c0_i32, %c0_i32_0 : i32, i32
  }
  func.func @transform_3(%arg0: i32) -> (i32, i32, i32, i32) {
    %c0_i32 = arith.constant 0 : i32
    %c0_i32_0 = arith.constant 0 : i32
    %c0_i32_1 = arith.constant 0 : i32
    %c0_i32_2 = arith.constant 0 : i32
    %c0_i32_3 = arith.constant 0 : i32
    return %c0_i32, %c0_i32_0, %c0_i32_1, %c0_i32_2 : i32, i32, i32, i32
  }
  func.func @transform_4(%arg0: i32) -> (i32, i32, i32) {
    %c0_i32 = arith.constant 0 : i32
    %c0_i32_0 = arith.constant 0 : i32
    %c0_i32_1 = arith.constant 0 : i32
    return %arg0, %c0_i32, %c0_i32_0 : i32, i32, i32
  }
}

</mosaic_0001>

<bundles_post_ra>
// kernel: tile.38
= control target key start
LH: loop header
LB: loop body
LE: loop exit
PB: predicated region body
PF: predicated region fallthrough
CT: control target
= control target key end

     0   :  { %s22_s0 = inlined_call_operand.vmem [shape: f32[64], index: 0, kind: input, shape index: {}]   ;;  %s23_s1 = inlined_call_operand.vmem [shape: f32[4,64], index: 1, kind: output, shape index: {}]  }
   0x1   :  { %v4_v0 = vld [vmem:[%s22_s0] ss:$0 sm:$0xff] }
   0x2   :  { %5 = vst [vmem:[%s23_s1] sm:$0xf] %v4_v0 }

// kernel: tile.39
= control target key start
LH: loop header
LB: loop body
LE: loop exit
PB: predicated region body
PF: predicated region fallthrough
CT: control target
= control target key end

     0   :  { %s6_s8 = smov 3  ;;  %vm8_vm0 = vcmask 523264   ;;  %s31_s9 = smov 64   ;;  %vm15_vm1 = vcmask 1048064   ;;  %s51_s0 = inlined_call_operand.vmem [shape: f32[4,64], index: 0, kind: input, shape index: {}]   ;;  %s52_s1 = inlined_call_operand.vmem [shape: f32[1,256], index: 1, kind: output, shape index: {}]  }
   0x1   :  { %v4_v0 = vld [vmem:[%s51_s0] sm:$0xf]  ;;  %s11_s0 = smov 3 }
   0x2   :  { %5 = vst [vmem:[#allocation1] sm:$0xf] %v4_v0 }
   0x9   :  { %v12_v1 = vld [vmem:[#allocation1 + $0x1] ss:$2 sm:%s11_s0]   ;;  %v7_v2 = vld [vmem:[#allocation1] ss:$2 sm:%s6_s8]  }
   0xa   :  { %13 = vrot.lane.b32.xlu0 %v12_v1, %s31_s9  ;;  %9 = vst.msk [vmem:[#allocation0] ss:$8 sm:$0x3] %vm8_vm0, %v7_v2  }
  0x7c   :  { %v14_v3 = vpop.permute.xlu0 %13  }
  0x7d   :  { %16 = vst.msk [vmem:[#allocation0] ss:$8 sm:$0x3] %vm15_vm1, %v14_v3  }
  0x84   :  { %v19_v4 = vld [vmem:[#allocation0] sm:$0x1]  ;;  %v24_v5 = vld [vmem:[#allocation0 + $0x8] sm:$0x1] }
  0x85   :  { %22 = vst [vmem:[%s52_s1] sm:$0x1] %v19_v4 }
  0x86   :  { %29 = vst [vmem:[%s52_s1 + $0x1] sm:$0x1] %v24_v5 }

// kernel: tile.48
= control target key start
LH: loop header
LB: loop body
LE: loop exit
PB: predicated region body
PF: predicated region fallthrough
CT: control target
= control target key end

     0   :  { %s22_s0 = inlined_call_operand.vmem [shape: f32[32], index: 0, kind: input, shape index: {}]   ;;  %s23_s1 = inlined_call_operand.vmem [shape: f32[8,32], index: 1, kind: output, shape index: {}]  }
   0x1   :  { %v4_v0 = vld [vmem:[%s22_s0] ss:$0 sm:$0xff] }
   0x2   :  { %5 = vst [vmem:[%s23_s1] sm:$0xff] %v4_v0 }

// kernel: tile.49
= control target key start
LH: loop header
LB: loop body
LE: loop exit
PB: predicated region body
PF: predicated region fallthrough
CT: control target
= control target key end

     0   :  { %s7_s6 = smov 3  ;;  %s46_s9 = smov 96   ;;  %vm4_vm0 = vcmask 261120   ;;  %vm11_vm1 = vcmask 1048320   ;;  %vm18_vm2 = vcmask 785920   ;;  %vm25_vm3 = vcmask 523520   ;;  %s77_s0 = inlined_call_operand.vmem [shape: f32[8,32], index: 0, kind: input, shape index: {}]   ;;  %s78_s1 = inlined_call_operand.vmem [shape: f32[1,256], index: 1, kind: output, shape index: {}]  }
   0x1   :  { %v39_v0 = vld [vmem:[%s77_s0 + $0x3] ss:$4 sm:%s7_s6]   ;;  %s21_s10 = smov 3  ;;  %s14_s13 = smov 3 }
   0x2   :  { %9 = vrot.lane.b32.xlu0 %v39_v0, %s46_s9  ;;  %v41_v1 = vld [vmem:[%s77_s0 + $0x1] ss:$4 sm:%s21_s10]   ;;  %s47_s14 = smov 32   ;;  %s48_s17 = smov 64  }
   0x3   :  { %23 = vrot.lane.b32.xlu1 %v41_v1, %s47_s14  ;;  %v40_v2 = vld [vmem:[%s77_s0 + $0x2] ss:$4 sm:%s14_s13]   ;;  %s2_s18 = smov 3 }
   0x4   :  { %v3_v3 = vld [vmem:[%s77_s0] ss:$4 sm:%s2_s18]  }
   0x5   :  { %5 = vst.msk [vmem:[#allocation0] ss:$8 sm:$0x3] %vm4_vm0, %v3_v3  }
   0xa   :  { %16 = vrot.lane.b32.xlu0 %v40_v2, %s48_s17 }
  0x74   :  { %v10_v4 = vpop.permute.xlu0 %9  }
  0x75   :  { %12 = vst.msk [vmem:[#allocation0] ss:$8 sm:$0x3] %vm11_vm1, %v10_v4   ;;  %v24_v5 = vpop.permute.xlu1 %23  }
  0x7c   :  { %v17_v6 = vpop.permute.xlu0 %16  }
  0x7d   :  { %19 = vst.msk [vmem:[#allocation0] ss:$8 sm:$0x3] %vm18_vm2, %v17_v6  }
  0x7e   :  { %26 = vst.msk [vmem:[#allocation0] ss:$8 sm:$0x3] %vm25_vm3, %v24_v5  }
  0x85   :  { %v29_v7 = vld [vmem:[#allocation0] sm:$0x1]  ;;  %v34_v8 = vld [vmem:[#allocation0 + $0x8] sm:$0x1] }
  0x86   :  { %32 = vst [vmem:[%s78_s1] sm:$0x1] %v29_v7 }
  0x87   :  { %42 = vst [vmem:[%s78_s1 + $0x1] sm:$0x1] %v34_v8 }

// kernel: tile.58
= control target key start
LH: loop header
LB: loop body
LE: loop exit
PB: predicated region body
PF: predicated region fallthrough
CT: control target
= control target key end

     0   :  { %s28_s0 = inlined_call_operand.vmem [shape: f32[16], index: 0, kind: input, shape index: {}]   ;;  %s29_s1 = inlined_call_operand.vmem [shape: f32[16,16], index: 1, kind: output, shape index: {}]  }
   0x1   :  { %v4_v0 = vld [vmem:[%s28_s0] ss:$0 sm:$0xff] }
   0x2   :  { %5 = vst [vmem:[%s29_s1] sm:$0xff] %v4_v0 }
   0x3   :  { %8 = vst [vmem:[%s29_s1 + $0x8] sm:$0xff] %v4_v0 }

// kernel: tile.59
= control target key start
LH: loop header
LB: loop body
LE: loop exit
PB: predicated region body
PF: predicated region fallthrough
CT: control target
= control target key end

     0   :  { %s7_s6 = smov 3  ;;  %s21_s9 = smov 3  ;;  %vm4_vm0 = vcmask 130048   ;;  %vm11_vm1 = vcmask 1048448   ;;  %vm18_vm2 = vcmask 917248   ;;  %vm25_vm3 = vcmask 786048   ;;  %s129_s0 = inlined_call_operand.vmem [shape: f32[16,16], index: 0, kind: input, shape index: {}]   ;;  %s130_s1 = inlined_call_operand.vmem [shape: f32[1,256], index: 1, kind: output, shape index: {}]  }
   0x1   :  { %v67_v0 = vld [vmem:[%s129_s0 + $0x7] ss:$8 sm:%s7_s6]   ;;  %s82_s10 = smov 112   ;;  %v69_v1 = vld [vmem:[%s129_s0 + $0x5] ss:$8 sm:%s21_s9]   ;;  %s83_s13 = smov 80  }
   0x2   :  { %9 = vrot.lane.b32.xlu0 %v67_v0, %s82_s10  ;;  %23 = vrot.lane.b32.xlu1 %v69_v1, %s83_s13  ;;  %s14_s14 = smov 3  ;;  %s28_s15 = smov 3  ;;  %vm32_vm4 = vcmask 654848   ;;  %vm39_vm5 = vcmask 523648   ;;  %vm46_vm6 = vcmask 392448   ;;  %vm53_vm7 = vcmask 261248  }
   0x3   :  { %s35_s16 = smov 3  ;;  %v68_v3 = vld [vmem:[%s129_s0 + $0x6] ss:$8 sm:%s14_s14]   ;;  %s84_s21 = smov 48   ;;  %v70_v4 = vld [vmem:[%s129_s0 + $0x4] ss:$8 sm:%s28_s15]  }
   0x4   :  { %v71_v2 = vld [vmem:[%s129_s0 + $0x3] ss:$8 sm:%s35_s16]   ;;  %s42_s24 = smov 3  ;;  %s85_s25 = smov 96  }
   0x5   :  { %37 = vrot.lane.b32.xlu2 %v71_v2, %s84_s21  ;;  %s86_s26 = smov 64   ;;  %s49_s27 = smov 3  ;;  %v72_v5 = vld [vmem:[%s129_s0 + $0x2] ss:$8 sm:%s42_s24]  }
   0x6   :  { %v73_v6 = vld [vmem:[%s129_s0 + $0x1] ss:$8 sm:%s49_s27]   ;;  %s87_s3 = smov 32   ;;  %s88_s4 = smov 16  }
   0x7   :  { %s2_s5 = smov 3 }
   0x8   :  { %v3_v7 = vld [vmem:[%s129_s0] ss:$8 sm:%s2_s5]  }
   0x9   :  { %5 = vst.msk [vmem:[#allocation0] ss:$8 sm:$0x3] %vm4_vm0, %v3_v7  }
   0xa   :  { %16 = vrot.lane.b32.xlu0 %v68_v3, %s85_s25  ;;  %30 = vrot.lane.b32.xlu1 %v70_v4, %s86_s26 }
   0xd   :  { %44 = vrot.lane.b32.xlu2 %v72_v5, %s87_s3 }
  0x12   :  { %51 = vrot.lane.b32.xlu0 %v73_v6, %s88_s4 }
  0x5f   :  { %v38_v8 = vpop.permute.xlu2 %37  }
  0x67   :  { %v45_v9 = vpop.permute.xlu2 %44  }
  0x74   :  { %v10_v10 = vpop.permute.xlu0 %9   ;;  %v24_v11 = vpop.permute.xlu1 %23  }
  0x75   :  { %12 = vst.msk [vmem:[#allocation0] ss:$8 sm:$0x3] %vm11_vm1, %v10_v10  }
  0x7c   :  { %v17_v12 = vpop.permute.xlu0 %16   ;;  %v31_v13 = vpop.permute.xlu1 %30  }
  0x7d   :  { %19 = vst.msk [vmem:[#allocation0] ss:$8 sm:$0x3] %vm18_vm2, %v17_v12  }
  0x7e   :  { %26 = vst.msk [vmem:[#allocation0] ss:$8 sm:$0x3] %vm25_vm3, %v24_v11  }
  0x7f   :  { %33 = vst.msk [vmem:[#allocation0] ss:$8 sm:$0x3] %vm32_vm4, %v31_v13  }
  0x80   :  { %40 = vst.msk [vmem:[#allocation0] ss:$8 sm:$0x3] %vm39_vm5, %v38_v8  }
  0x81   :  { %47 = vst.msk [vmem:[#allocation0] ss:$8 sm:$0x3] %vm46_vm6, %v45_v9  }
  0x84   :  { %v52_v14 = vpop.permute.xlu0 %51  }
  0x85   :  { %54 = vst.msk [vmem:[#allocation0] ss:$8 sm:$0x3] %vm53_vm7, %v52_v14  }
  0x8c   :  { %v57_v15 = vld [vmem:[#allocation0] sm:$0x1]  ;;  %v62_v16 = vld [vmem:[#allocation0 + $0x8] sm:$0x1] }
  0x8d   :  { %60 = vst [vmem:[%s130_s1] sm:$0x1] %v57_v15 }
  0x8e   :  { %74 = vst [vmem:[%s130_s1 + $0x1] sm:$0x1] %v62_v16 }

// kernel: generator_forward.4
= control target key start
LH: loop header
LB: loop body
LE: loop exit
PB: predicated region body
PF: predicated region fallthrough
CT: control target
= control target key end

     0   :  { %9 = vsyncpa [#allocation3], 0  ;;  %s746_s15 = smov [#allocation2]   ;;  %s747_s17 = smov 512   ;;  %s861_s0 = inlined_call_operand.vmem [shape: bf16[2,64], index: 0, kind: input, shape index: {}]   ;;  %s862_s1 = inlined_call_operand.hbm [shape: bf16[64,1024], index: 1, kind: input, shape index: {}]   ;;  %s863_s2 = inlined_call_operand.vmem [shape: bf16[2,1024], index: 2, kind: output, shape index: {0}]   ;;  %s864_s3 = inlined_call_operand.vmem [shape: f32[2,1024], index: 3, kind: output, shape index: {1}]  }
   0x1   :  { %s16_s14 = sshll.u32 %s862_s1, 4  ;;  %s18_s16 = sshll.u32 %s746_s15, 4  ;;  %s17_s14 = int_to_ptr.hbm [resolvable:$true] %s16_s14  ;;  %s19_s16 = int_to_ptr.vmem [resolvable:$true] %s18_s16 }
   0x2   :  { %s748_s18 = smov 32  }
   0x3   :  { %24 = dma.hbm_to_vmem [thread:$0]  %s17_s14, 4096, %s19_s16, [#allocation3], %s747_s17, %s747_s17, %s748_s18  }
   0x4   :  { %744 = dma.done.wait [#allocation3], 4096  }
   0x5   :  { %745 = vsyncadd [#allocation3], 4294963200  ;;  %v646_v0 = vld [vmem:[#allocation2 + $0xc0] sm:$0xf]  ;;  %v709_v2 = vld [vmem:[#allocation2 + $0xc4] sm:$0xf] }
   0x6   :  { %v713_v1 = vld [vmem:[#allocation2 + $0xdc] sm:$0xf0]  ;;  %v648_v4 = vld [vmem:[#allocation2 + $0xe0] sm:$0xf0]  ;;  %v654_v5 = vld [vmem:[#allocation2 + $0xc8] sm:$0xf] }
   0x7   :  { %v647_v3 = vor.u32 %v713_v1, %v646_v0  ;;  %v714_v6 = vld [vmem:[#allocation2 + $0xe4] sm:$0xf0]  ;;  %v651_v7 = vor.u32 %v709_v2, %v648_v4  ;;  %v710_v9 = vld [vmem:[#allocation2 + $0xcc] sm:$0xf]  ;;  %v614_v11 = vld [vmem:[#allocation2 + $0x80] sm:$0xf] }
   0x8   :  { %v655_v8 = vor.u32 %v714_v6, %v654_v5  ;;  %v656_v10 = vld [vmem:[#allocation2 + $0xe8] sm:$0xf0]  ;;  %v705_v13 = vld [vmem:[#allocation2 + $0x9c] sm:$0xf0]  ;;  %v701_v14 = vld [vmem:[#allocation2 + $0x84] sm:$0xf] }
   0x9   :  { %231 = vmatpush.bf16.msra.mxu0 %v647_v3  ;;  %v659_v12 = vor.u32 %v710_v9, %v656_v10  ;;  %v616_v15 = vld [vmem:[#allocation2 + $0xa0] sm:$0xf0]  ;;  %244 = vmatpush.bf16.msra.mxu1 %v651_v7  ;;  %v615_v16 = vor.u32 %v705_v13, %v614_v11  ;;  %v622_v18 = vld [vmem:[#allocation2 + $0x88] sm:$0xf]  ;;  %v702_v20 = vld [vmem:[#allocation2 + $0x8c] sm:$0xf] }
   0xa   :  { %257 = vmatpush.bf16.msra.mxu2 %v655_v8  ;;  %v619_v17 = vor.u32 %v701_v14, %v616_v15  ;;  %v706_v19 = vld [vmem:[#allocation2 + $0xa4] sm:$0xf0]  ;;  %v624_v22 = vld [vmem:[#allocation2 + $0xa8] sm:$0xf0]  ;;  %v582_v23 = vld [vmem:[#allocation2 + $0x40] sm:$0xf] }
   0xb   :  { %270 = vmatpush.bf16.msra.mxu3 %v659_v12  ;;  %v623_v21 = vor.u32 %v706_v19, %v622_v18  ;;  %v697_v24 = vld [vmem:[#allocation2 + $0x5c] sm:$0xf0]  ;;  %v627_v25 = vor.u32 %v702_v20, %v624_v22  ;;  %v693_v26 = vld [vmem:[#allocation2 + $0x44] sm:$0xf]  ;;  %v590_v28 = vld [vmem:[#allocation2 + $0x48] sm:$0xf] }
   0xc   :  { %v584_v27 = vld [vmem:[#allocation2 + $0x60] sm:$0xf0]  ;;  %v583_v29 = vor.u32 %v697_v24, %v582_v23  ;;  %v698_v30 = vld [vmem:[#allocation2 + $0x64] sm:$0xf0]  ;;  %v694_v31 = vld [vmem:[#allocation2 + $0x4c] sm:$0xf] }
   0xd   :  { %232 = vmatpush.bf16.msra.mxu0 %v615_v16  ;;  %v592_v32 = vld [vmem:[#allocation2 + $0x68] sm:$0xf0]  ;;  %245 = vmatpush.bf16.msra.mxu1 %v619_v17  ;;  %v587_v33 = vor.u32 %v693_v26, %v584_v27  ;;  %v591_v34 = vor.u32 %v698_v30, %v590_v28  ;;  %v550_v35 = vld [vmem:[#allocation2] sm:$0xf]  ;;  %v685_v37 = vld [vmem:[#allocation2 + $0x4] sm:$0xf] }
   0xe   :  { %258 = vmatpush.bf16.msra.mxu2 %v623_v21  ;;  %v689_v36 = vld [vmem:[#allocation2 + $0x1c] sm:$0xf0]  ;;  %v595_v38 = vor.u32 %v694_v31, %v592_v32  ;;  %v552_v39 = vld [vmem:[#allocation2 + $0x20] sm:$0xf0]  ;;  %v558_v40 = vld [vmem:[#allocation2 + $0x8] sm:$0xf] }
   0xf   :  { %271 = vmatpush.bf16.msra.mxu3 %v627_v25  ;;  %v690_v41 = vld [vmem:[#allocation2 + $0x24] sm:$0xf0]  ;;  %v686_v42 = vld [vmem:[#allocation2 + $0xc] sm:$0xf]  ;;  %v551_v44 = vor.u32 %v689_v36, %v550_v35  ;;  %v670_v45 = vld [vmem:[#allocation2 + $0xd8] sm:$0xf]  ;;  %v555_v48 = vor.u32 %v685_v37, %v552_v39 }
  0x10   :  { %v560_v43 = vld [vmem:[#allocation2 + $0x28] sm:$0xf0]  ;;  %v716_v46 = vld [vmem:[#allocation2 + $0xf4] sm:$0xf0]  ;;  %v712_v47 = vld [vmem:[#allocation2 + $0xdc] sm:$0xf]  ;;  %v559_v49 = vor.u32 %v690_v41, %v558_v40 }
  0x11   :  { %233 = vmatpush.bf16.msra.mxu0 %v583_v29  ;;  %246 = vmatpush.bf16.msra.mxu1 %v587_v33  ;;  %vm223_vm0 = vcmask 523264   ;;  %v672_v50 = vld [vmem:[#allocation2 + $0xf8] sm:$0xf0]  ;;  %v563_v51 = vor.u32 %v686_v42, %v560_v43  ;;  %v671_v52 = vor.u32 %v716_v46, %v670_v45  ;;  %v662_v53 = vld [vmem:[#allocation2 + $0xd0] sm:$0xf]  ;;  %vm354_vm1 = vcmask 1041408  }
  0x12   :  { %259 = vmatpush.bf16.msra.mxu2 %v591_v34  ;;  %v715_v54 = vld [vmem:[#allocation2 + $0xec] sm:$0xf0]  ;;  %v711_v55 = vld [vmem:[#allocation2 + $0xd4] sm:$0xf]  ;;  %v675_v56 = vor.u32 %v712_v47, %v672_v50  ;;  %v638_v58 = vld [vmem:[#allocation2 + $0x98] sm:$0xf] }
  0x13   :  { %272 = vmatpush.bf16.msra.mxu3 %v595_v38  ;;  %v664_v57 = vld [vmem:[#allocation2 + $0xf0] sm:$0xf0]  ;;  %v708_v59 = vld [vmem:[#allocation2 + $0xb4] sm:$0xf0]  ;;  %v775_v60 = vld [vmem:[%s861_s0] sm:$0x1]  ;;  %v663_v63 = vor.u32 %v715_v54, %v662_v53 }
  0x14   :  { %v704_v61 = vld [vmem:[#allocation2 + $0x9c] sm:$0xf]  ;;  %v667_v0 = vor.u32 %v711_v55, %v664_v57  ;;  %v639_v1 = vor.u32 %v708_v59, %v638_v58  ;;  %v630_v2 = vld [vmem:[#allocation2 + $0x90] sm:$0xf]  ;;  %v703_v4 = vld [vmem:[#allocation2 + $0x94] sm:$0xf] }
  0x15   :  { %234 = vmatpush.bf16.msra.mxu0 %v551_v44  ;;  %v640_v62 = vld [vmem:[#allocation2 + $0xb8] sm:$0xf0]  ;;  %247 = vmatpush.bf16.msra.mxu1 %v555_v48  ;;  %v707_v3 = vld [vmem:[#allocation2 + $0xac] sm:$0xf0]  ;;  %v632_v6 = vld [vmem:[#allocation2 + $0xb0] sm:$0xf0] }
  0x16   :  { %260 = vmatpush.bf16.msra.mxu2 %v559_v49  ;;  %v643_v5 = vor.u32 %v704_v61, %v640_v62  ;;  %v606_v7 = vld [vmem:[#allocation2 + $0x58] sm:$0xf]  ;;  %v696_v9 = vld [vmem:[#allocation2 + $0x5c] sm:$0xf]  ;;  %v631_v11 = vor.u32 %v707_v3, %v630_v2  ;;  %v635_v12 = vor.u32 %v703_v4, %v632_v6  ;;  %v598_v14 = vld [vmem:[#allocation2 + $0x50] sm:$0xf] }
  0x17   :  { %273 = vmatpush.bf16.msra.mxu3 %v563_v51  ;;  %v700_v8 = vld [vmem:[#allocation2 + $0x74] sm:$0xf0]  ;;  %v608_v10 = vld [vmem:[#allocation2 + $0x78] sm:$0xf0]  ;;  %v699_v15 = vld [vmem:[#allocation2 + $0x6c] sm:$0xf0] }
  0x18   :  { %676 = vmatmul.msk.bf16.vlgmr.msra.gmra.mxu0 %vm223_vm0, %v775_v60  ;;  %677 = vmatmul.msk.bf16.vlgmr.msra.gmra.mxu1 %vm223_vm0, %v775_v60  ;;  %v607_v13 = vor.u32 %v700_v8, %v606_v7  ;;  %v695_v16 = vld [vmem:[#allocation2 + $0x54] sm:$0xf]  ;;  %v611_v17 = vor.u32 %v696_v9, %v608_v10  ;;  %v574_v19 = vld [vmem:[#allocation2 + $0x18] sm:$0xf]  ;;  %v688_v21 = vld [vmem:[#allocation2 + $0x1c] sm:$0xf]  ;;  %v599_v23 = vor.u32 %v699_v15, %v598_v14 }
  0x19   :  { %678 = vmatmul.msk.bf16.vlgmr.msra.gmra.mxu2 %vm223_vm0, %v775_v60  ;;  %283 = vmatpush.bf16.msrb.mxu0 %v663_v63  ;;  %v600_v18 = vld [vmem:[#allocation2 + $0x70] sm:$0xf0]  ;;  %v692_v20 = vld [vmem:[#allocation2 + $0x34] sm:$0xf0]  ;;  %v576_v22 = vld [vmem:[#allocation2 + $0x38] sm:$0xf0] }
  0x1a   :  { %309 = vmatpush.bf16.msrb.mxu2 %v671_v52  ;;  %679 = vmatmul.msk.bf16.vlgmr.msra.gmra.mxu3 %vm223_vm0, %v775_v60  ;;  %v603_v24 = vor.u32 %v695_v16, %v600_v18  ;;  %v575_v25 = vor.u32 %v692_v20, %v574_v19  ;;  %v566_v26 = vld [vmem:[#allocation2 + $0x10] sm:$0xf]  ;;  %v579_v28 = vor.u32 %v688_v21, %v576_v22  ;;  %v687_v29 = vld [vmem:[#allocation2 + $0x14] sm:$0xf]  ;;  %vm346_vm2 = vcmask 1040384  }
  0x1b   :  { %322 = vmatpush.bf16.msrb.mxu3 %v675_v56  ;;  %296 = vmatpush.bf16.msrb.mxu1 %v667_v0  ;;  %v691_v27 = vld [vmem:[#allocation2 + $0x2c] sm:$0xf0]  ;;  %v568_v30 = vld [vmem:[#allocation2 + $0x30] sm:$0xf0]  ;;  %vm350_vm3 = vcmask 1042434   ;;  %vm356_vm4 = vcmask 1044484  }
  0x1c   :  { %v567_v31 = vor.u32 %v691_v27, %v566_v26  ;;  %v571_v32 = vor.u32 %v687_v29, %v568_v30  ;;  %vm360_vm5 = vcmask 1046534   ;;  %vm364_vm6 = vcmask 1045508  }
  0x1d   :  { %284 = vmatpush.bf16.msrb.mxu0 %v631_v11  ;;  %vm366_vm7 = vcmask 1043456  }
  0x1e   :  { %310 = vmatpush.bf16.msrb.mxu2 %v639_v1 }
  0x1f   :  { %323 = vmatpush.bf16.msrb.mxu3 %v643_v5  ;;  %297 = vmatpush.bf16.msrb.mxu1 %v635_v12 }
  0x21   :  { %285 = vmatpush.bf16.msrb.mxu0 %v599_v23 }
  0x22   :  { %311 = vmatpush.bf16.msrb.mxu2 %v607_v13 }
  0x23   :  { %324 = vmatpush.bf16.msrb.mxu3 %v611_v17  ;;  %298 = vmatpush.bf16.msrb.mxu1 %v603_v24 }
  0x25   :  { %286 = vmatpush.bf16.msrb.mxu0 %v567_v31 }
  0x26   :  { %312 = vmatpush.bf16.msrb.mxu2 %v575_v25 }
  0x27   :  { %325 = vmatpush.bf16.msrb.mxu3 %v579_v28  ;;  %299 = vmatpush.bf16.msrb.mxu1 %v571_v32 }
  0x28   :  { %680 = vmatmul.msk.bf16.vlgmr.msrb.gmra.mxu0 %vm223_vm0, %v775_v60 }
  0x29   :  { %682 = vmatmul.msk.bf16.vlgmr.msrb.gmra.mxu2 %vm223_vm0, %v775_v60 }
  0x2a   :  { %681 = vmatmul.msk.bf16.vlgmr.msrb.gmra.mxu1 %vm223_vm0, %v775_v60  ;;  %683 = vmatmul.msk.bf16.vlgmr.msrb.gmra.mxu3 %vm223_vm0, %v775_v60 }
  0x95   :  { %v236_v33 = vpop.f32.mrf.mxu0  ;;  %v249_v34 = vpop.f32.mrf.mxu1 }
  0x96   :  { %v370_v35 = vsel %vm354_vm1, %v236_v33, 0.0  ;;  %v450_v36 = vmul.f32 %v236_v33, %v236_v33  ;;  %v377_v37 = vsel %vm354_vm1, %v249_v34, 0.0  ;;  %v451_v38 = vmul.f32 %v249_v34, %v249_v34 }
  0x97   :  { %v371_v39 = vrot.slane %v370_v35, 4  ;;  %v378_v41 = vrot.slane %v377_v37, 4  ;;  %v331_v51 = vpack.c.bf16 %v249_v34, %v236_v33 }
  0x98   :  { %v458_v40 = vsel %vm354_vm1, %v450_v36, 0.0  ;;  %v465_v43 = vsel %vm354_vm1, %v451_v38, 0.0 }
  0x99   :  { %v372_v46 = vadd.f32 %v371_v39, %v370_v35  ;;  %v459_v47 = vrot.slane %v458_v40, 4  ;;  %v379_v49 = vadd.f32 %v378_v41, %v377_v37  ;;  %v466_v50 = vrot.slane %v465_v43, 4 }
  0x9a   :  { %v339_v61 = vrot.slane %v331_v51, 3 }
  0x9b   :  { %v373_v53 = vrot.slane %v372_v46, 2  ;;  %v460_v54 = vadd.f32 %v459_v47, %v458_v40  ;;  %v380_v56 = vrot.slane %v379_v49, 2  ;;  %v467_v58 = vadd.f32 %v466_v50, %v465_v43 }
  0x9c   :  { %v262_v42 = vpop.f32.mrf.mxu2  ;;  %v349_v16 = vsel %vm346_vm2, %v331_v51, %v339_v61 }
  0x9d   :  { %v275_v44 = vpop.f32.mrf.mxu3  ;;  %v238_v45 = vpop.f32.mrf.mxu0  ;;  %v384_v52 = vsel %vm354_vm1, %v262_v42, 0.0  ;;  %v452_v55 = vmul.f32 %v262_v42, %v262_v42  ;;  %v799_v0 = vadd.f32 %v373_v53, %v372_v46  ;;  %v461_v1 = vrot.slane %v460_v54, 2 }
  0x9e   :  { %v251_v48 = vpop.f32.mrf.mxu1  ;;  %v391_v57 = vsel %vm354_vm1, %v275_v44, 0.0  ;;  %v385_v59 = vrot.slane %v384_v52, 4  ;;  %v453_v62 = vmul.f32 %v275_v44, %v275_v44  ;;  %v802_v5 = vadd.f32 %v380_v56, %v379_v49 }
  0x9f   :  { %v472_v2 = vsel %vm354_vm1, %v452_v55, 0.0  ;;  %v392_v3 = vrot.slane %v391_v57, 4  ;;  %v332_v6 = vpack.c.bf16 %v275_v44, %v262_v42  ;;  %v468_v10 = vrot.slane %v467_v58, 2 }
  0xa0   :  { %v386_v11 = vadd.f32 %v385_v59, %v384_v52  ;;  %v473_v12 = vrot.slane %v472_v2, 4  ;;  %v479_v13 = vsel %vm354_vm1, %v453_v62, 0.0  ;;  %v375_v15 = vrot.slane %v799_v0, 1 }
  0xa1   :  { %v393_v17 = vadd.f32 %v392_v3, %v391_v57  ;;  %v809_v19 = vadd.f32 %v461_v1, %v460_v54  ;;  %v382_v20 = vrot.slane %v802_v5, 1  ;;  %v340_v21 = vrot.slane %v332_v6, 6 }
  0xa2   :  { %v341_v22 = vrot.slane %v332_v6, 1  ;;  %v812_v23 = vadd.f32 %v468_v10, %v467_v58  ;;  %v387_v24 = vrot.slane %v386_v11, 2  ;;  %v480_v25 = vrot.slane %v479_v13, 4 }
  0xa3   :  { %v474_v28 = vadd.f32 %v473_v12, %v472_v2  ;;  %v394_v33 = vrot.slane %v393_v17, 2  ;;  %v463_v38 = vrot.slane %v809_v19, 1 }
  0xa4   :  { %v264_v60 = vpop.f32.mrf.mxu2  ;;  %v353_v39 = vsel %vm350_vm3, %v340_v21, %v341_v22  ;;  %v388_v43 = vadd.f32 %v387_v24, %v386_v11  ;;  %v481_v44 = vadd.f32 %v480_v25, %v479_v13 }
  0xa5   :  { %v277_v63 = vpop.f32.mrf.mxu3  ;;  %v288_v4 = vpop.f32.mrf.mxu0  ;;  %v475_v47 = vrot.slane %v474_v28, 2  ;;  %v395_v51 = vadd.f32 %v394_v33, %v393_v17  ;;  %v355_v55 = vsel %vm354_vm1, %v349_v16, %v353_v39 }
  0xa6   :  { %v398_v7 = vsel %vm354_vm1, %v288_v4, 0.0  ;;  %v454_v8 = vmul.f32 %v288_v4, %v288_v4  ;;  %v389_v59 = vrot.slane %v388_v43, 1  ;;  %v482_v60 = vrot.slane %v481_v44, 2 }
  0xa7   :  { %v301_v9 = vpop.f32.mrf.mxu1  ;;  %v399_v14 = vrot.slane %v398_v7, 4  ;;  %v476_v1 = vadd.f32 %v475_v47, %v474_v28 }
  0xa8   :  { %v486_v18 = vsel %vm354_vm1, %v454_v8, 0.0  ;;  %v405_v26 = vsel %vm354_vm1, %v301_v9, 0.0  ;;  %v333_v34 = vpack.c.bf16 %v301_v9, %v288_v4  ;;  %v455_v35 = vmul.f32 %v301_v9, %v301_v9 }
  0xa9   :  { %v400_v29 = vadd.f32 %v399_v14, %v398_v7  ;;  %v487_v30 = vrot.slane %v486_v18, 4  ;;  %v406_v31 = vrot.slane %v405_v26, 4  ;;  %v396_v7 = vrot.slane %v395_v51, 1 }
  0xaa   :  { %v493_v45 = vsel %vm354_vm1, %v455_v35, 0.0  ;;  %v342_v52 = vrot.slane %v333_v34, 4  ;;  %v343_v53 = vrot.slane %v333_v34, 7  ;;  %v483_v16 = vadd.f32 %v482_v60, %v481_v44 }
  0xab   :  { %v407_v40 = vadd.f32 %v406_v31, %v405_v26  ;;  %v401_v48 = vrot.slane %v400_v29, 2  ;;  %v488_v49 = vadd.f32 %v487_v30, %v486_v18  ;;  %v494_v50 = vrot.slane %v493_v45, 4 }
  0xac   :  { %v314_v27 = vpop.f32.mrf.mxu2  ;;  %v359_v8 = vsel %vm356_vm4, %v342_v52, %v343_v53 }
  0xad   :  { %v327_v32 = vpop.f32.mrf.mxu3  ;;  %v412_v36 = vsel %vm354_vm1, %v314_v27, 0.0  ;;  %v290_v37 = vpop.f32.mrf.mxu0  ;;  %v456_v46 = vmul.f32 %v314_v27, %v314_v27  ;;  %v408_v56 = vrot.slane %v407_v40, 2  ;;  %v495_v57 = vadd.f32 %v494_v50, %v493_v45 }
  0xae   :  { %v413_v41 = vrot.slane %v412_v36, 4  ;;  %v402_v2 = vadd.f32 %v401_v48, %v400_v29  ;;  %v489_v3 = vrot.slane %v488_v49, 2  ;;  %v334_v4 = vpack.c.bf16 %v327_v32, %v314_v27 }
  0xaf   :  { %v303_v42 = vpop.f32.mrf.mxu1  ;;  %v500_v58 = vsel %vm354_vm1, %v456_v46, 0.0  ;;  %v496_v9 = vrot.slane %v495_v57, 2  ;;  %v409_v11 = vadd.f32 %v408_v56, %v407_v40  ;;  %v419_v18 = vsel %vm354_vm1, %v327_v32, 0.0 }
  0xb0   :  { %v414_v54 = vadd.f32 %v413_v41, %v412_v36  ;;  %v501_v62 = vrot.slane %v500_v58, 4  ;;  %v344_v13 = vrot.slane %v334_v4, 2  ;;  %v345_v14 = vrot.slane %v334_v4, 5 }
  0xb1   :  { %v457_v21 = vmul.f32 %v327_v32, %v327_v32  ;;  %v403_v22 = vrot.slane %v402_v2, 1  ;;  %v490_v24 = vadd.f32 %v489_v3, %v488_v49  ;;  %v420_v26 = vrot.slane %v419_v18, 4 }
  0xb2   :  { %v415_v61 = vrot.slane %v414_v54, 2  ;;  %v502_v10 = vadd.f32 %v501_v62, %v500_v58  ;;  %v363_v25 = vsel %vm360_vm5, %v344_v13, %v345_v14  ;;  %v497_v27 = vadd.f32 %v496_v9, %v495_v57 }
  0xb3   :  { %v365_v29 = vsel %vm364_vm6, %v359_v8, %v363_v25  ;;  %v507_v30 = vsel %vm354_vm1, %v457_v21, 0.0  ;;  %v410_v31 = vrot.slane %v409_v11, 1  ;;  %v421_v35 = vadd.f32 %v420_v26, %v419_v18 }
  0xb4   :  { %v316_v63 = vpop.f32.mrf.mxu2  ;;  %v416_v12 = vadd.f32 %v415_v61, %v414_v54  ;;  %v503_v17 = vrot.slane %v502_v10, 2  ;;  %v367_v34 = vsel %vm366_vm7, %v355_v55, %v365_v29  ;;  %v383_v32 = vadd.f32 %v382_v20, %v802_v5 }
  0xb5   :  { %v329_v6 = vpop.f32.mrf.mxu3  ;;  %v477_v36 = vrot.slane %v476_v1, 1  ;;  %v484_v37 = vrot.slane %v483_v16, 1  ;;  %369 = vst [vmem:[%s863_s2] sm:$0xff] %v367_v34  ;;  %v508_v39 = vrot.slane %v507_v30, 4  ;;  %v470_v40 = vrot.slane %v812_v23, 1 }
  0xb6   :  { %v504_v28 = vadd.f32 %v503_v17, %v502_v10  ;;  %v417_v33 = vrot.slane %v416_v12, 1  ;;  %v390_v41 = vadd.f32 %v389_v59, %v388_v43  ;;  %v397_v42 = vadd.f32 %v396_v7, %v395_v51 }
  0xb7   :  { %v422_v44 = vrot.slane %v421_v35, 2  ;;  %v491_v45 = vrot.slane %v490_v24, 1  ;;  %v498_v46 = vrot.slane %v497_v27, 1  ;;  %v509_v48 = vadd.f32 %v508_v39, %v507_v30 }
  0xb8   :  { %v505_v47 = vrot.slane %v504_v28, 1  ;;  %v404_v49 = vadd.f32 %v403_v22, %v402_v2  ;;  %v411_v50 = vadd.f32 %v410_v31, %v409_v11  ;;  %v418_v52 = vadd.f32 %v417_v33, %v416_v12 }
  0xb9   :  { %v423_v5 = vadd.f32 %v422_v44, %v421_v35  ;;  %v434_v20 = vrot.slane %v383_v32, 7  ;;  %v478_v53 = vadd.f32 %v477_v36, %v476_v1  ;;  %v485_v54 = vadd.f32 %v484_v37, %v483_v16 }
  0xba   :  { %v510_v55 = vrot.slane %v509_v48, 2  ;;  %v471_v56 = vadd.f32 %v470_v40, %v812_v23  ;;  %v435_v57 = vrot.slane %v390_v41, 6  ;;  %v436_v58 = vrot.slane %v397_v42, 5 }
  0xbb   :  { %v424_v60 = vrot.slane %v423_v5, 1  ;;  %v492_v43 = vadd.f32 %v491_v45, %v490_v24  ;;  %v499_v51 = vadd.f32 %v498_v46, %v497_v27  ;;  %v506_v59 = vadd.f32 %v505_v47, %v504_v28 }
  0xbc   :  { %v511_v61 = vadd.f32 %v510_v55, %v509_v48  ;;  %v437_v62 = vrot.slane %v404_v49, 4  ;;  %v438_v63 = vrot.slane %v411_v50, 3  ;;  %v439_v3 = vrot.slane %v418_v52, 2 }
  0xbd   :  { %v425_v2 = vadd.f32 %v424_v60, %v423_v5  ;;  %v523_v4 = vrot.slane %v478_v53, 6  ;;  %v524_v6 = vrot.slane %v485_v54, 5  ;;  %v376_v1 = vadd.f32 %v375_v15, %v799_v0 }
  0xbe   :  { %v512_v7 = vrot.slane %v511_v61, 1  ;;  %v522_v8 = vrot.slane %v471_v56, 7  ;;  %v442_v23 = vsel %vm350_vm3, %v435_v57, %v436_v58  ;;  %v525_v10 = vrot.slane %v492_v43, 4 }
  0xbf   :  { %v440_v9 = vrot.slane %v425_v2, 1  ;;  %v526_v11 = vrot.slane %v499_v51, 3  ;;  %v527_v12 = vrot.slane %v506_v59, 2  ;;  %v464_v14 = vadd.f32 %v463_v38, %v809_v19 }
  0xc0   :  { %v513_v13 = vadd.f32 %v512_v7, %v511_v61  ;;  %v441_v16 = vsel %vm346_vm2, %v376_v1, %v434_v20  ;;  %v444_v17 = vsel %vm356_vm4, %v437_v62, %v438_v63  ;;  %v530_v15 = vsel %vm350_vm3, %v523_v4, %v524_v6 }
  0xc1   :  { %v445_v18 = vsel %vm360_vm5, %v439_v3, %v440_v9  ;;  %v443_v0 = vsel %vm354_vm1, %v441_v16, %v442_v23  ;;  %v529_v25 = vsel %vm346_vm2, %v464_v14, %v522_v8  ;;  %v532_v26 = vsel %vm356_vm4, %v525_v10, %v526_v11 }
  0xc2   :  { %v446_v21 = vsel %vm364_vm6, %v444_v17, %v445_v18  ;;  %v528_v22 = vrot.slane %v513_v13, 1  ;;  %v531_v38 = vsel %vm354_vm1, %v529_v25, %v530_v15 }
  0xc3   :  { %v447_v24 = vsel %vm366_vm7, %v443_v0, %v446_v21 }
  0xc4   :  { %449 = vst [vmem:[%s864_s3] ss:$2 sm:$0xff] %v447_v24  ;;  %v533_v19 = vsel %vm360_vm5, %v527_v12, %v528_v22 }
  0xc5   :  { %v534_v27 = vsel %vm364_vm6, %v532_v26, %v533_v19 }
  0xc6   :  { %v535_v28 = vsel %vm366_vm7, %v531_v38, %v534_v27 }
  0xc7   :  { %684 = vst [vmem:[%s864_s3 + $0x1] ss:$2 sm:$0xff] %v535_v28 }
  0xc8   :  { %547 = vsyncpa [#allocation3], 1 }

// kernel: generator_forward.5
= control target key start
LH: loop header
LB: loop body
LE: loop exit
PB: predicated region body
PF: predicated region fallthrough
CT: control target
= control target key end

     0   :  { %11 = vsyncpa [#allocation4], 0  ;;  %s2320_s18 = smov 0   ;;  %s2428_s0 = inlined_call_operand.vmem [shape: bf16[2,4,256], index: 0, kind: input, shape index: {}]   ;;  %s2429_s1 = inlined_call_operand.vmem [shape: f32[1,256], index: 1, kind: input, shape index: {}]   ;;  %s2430_s2 = inlined_call_operand.vmem [shape: f32[1,256], index: 2, kind: input, shape index: {}]   ;;  %s2431_s3 = inlined_call_operand.hbm [shape: bf16[2,2,256,256], index: 3, kind: input, shape index: {}]   ;;  %s2432_s4 = inlined_call_operand.vmem [shape: bf16[2,4,512], index: 4, kind: output, shape index: {0}]   ;;  %s2433_s5 = inlined_call_operand.vmem [shape: f32[2,2,256], index: 5, kind: output, shape index: {1}]  }
   0x1 LB: > { %s180_s21 = sshll.u32 %s2431_s3, 4  ;;  %s2329_s22 = sadd.s32 4294967295, %s2285_s18   ;;  %s2285_s18 = sphi %s2320_s18, %s17_s18   ;;  %s181_s21 = int_to_ptr.hbm [resolvable:$true] %s180_s21 }
   0x2   : > { %p1567_p0 = scmp.ge.s32.totalorder %s2285_s18, 1  ;;  %p163_p1 = scmp.lt.s32.totalorder %s2285_s18, 3 }
   0x3   : > { %p2232_p2 = scmp.eq.s32.totalorder %s2329_s22, 0  ;;  %s2287_s23 = smov [#allocation3]  }
   0x4   : > { %p164_p3 = pnand %p1567_p0, %p163_p1  ;;  %s182_s24 = sshll.u32 %s2287_s23, 4  ;;  %s183_s24 = int_to_ptr.vmem [resolvable:$true] %s182_s24 }
   0x5   : > { %s2288_s25 = smov 128   ;;  %s2289_s26 = smov 8  }
   0x6   : > { %p2228_p4 = pneg %p164_p3  ;;  %206 = sbr.rel (%p164_p3) target bundleno = 311 (0x137), region = 36 }
   0x8   : > { %p2229_p5 = pnand %p2232_p2, %p2228_p4 }
   0xa   : > { %2231 = dma.hbm_to_vmem [thread:$0]  (!%p2229_p5), %s181_s21, 16384, %s183_s24, [#allocation4], %s2288_s25, %s2288_s25, %s2289_s26  }
   0xb   : > { %2280 = dma.done.wait (%p2232_p2), [#allocation4], 16384  }
   0xc   : > { %2282 = vsyncadd (%p2232_p2), [#allocation4], 4294950912  ;;  %v1636_v0 = vld [vmem:[#allocation3 + $0x170] sm:$0xf]  ;;  %v2143_v1 = vld [vmem:[#allocation3 + $0x174] sm:$0xf0] }
   0xd   : > { %v2142_v2 = vld [vmem:[#allocation3 + $0x174] sm:$0xf]  ;;  %v1637_v3 = vor.u32 %v2143_v1, %v1636_v0  ;;  %v1638_v4 = vld [vmem:[#allocation3 + $0x178] sm:$0xf0]  ;;  %v1700_v9 = vld [vmem:[#allocation3 + $0x1f0] sm:$0xf] }
   0xe   : > { %v2158_v5 = vld [vmem:[#allocation3 + $0x1f4] sm:$0xf]  ;;  %v1702_v6 = vld [vmem:[#allocation3 + $0x1f8] sm:$0xf0]  ;;  %v1641_v7 = vor.u32 %v2142_v2, %v1638_v4  ;;  %v2159_v10 = vld [vmem:[#allocation3 + $0x1f4] sm:$0xf0] }
   0xf   : > { %v1705_v8 = vor.u32 %v2158_v5, %v1702_v6  ;;  %v1628_v11 = vld [vmem:[#allocation3 + $0x160] sm:$0xf]  ;;  %569 = vmatpush.bf16.msra.mxu0 %v1637_v3  ;;  %v1701_v12 = vor.u32 %v2159_v10, %v1700_v9  ;;  %v2141_v13 = vld [vmem:[#allocation3 + $0x164] sm:$0xf0]  ;;  %v2140_v14 = vld [vmem:[#allocation3 + $0x164] sm:$0xf] }
  0x10   : > { %v1630_v15 = vld [vmem:[#allocation3 + $0x168] sm:$0xf0]  ;;  %595 = vmatpush.bf16.msra.mxu2 %v1641_v7  ;;  %v1629_v16 = vor.u32 %v2141_v13, %v1628_v11  ;;  %v2156_v18 = vld [vmem:[#allocation3 + $0x1e4] sm:$0xf]  ;;  %v1692_v20 = vld [vmem:[#allocation3 + $0x1e0] sm:$0xf] }
  0x11   : > { %608 = vmatpush.bf16.msra.mxu3 %v1705_v8  ;;  %v1633_v17 = vor.u32 %v2140_v14, %v1630_v15  ;;  %v1694_v19 = vld [vmem:[#allocation3 + $0x1e8] sm:$0xf0]  ;;  %582 = vmatpush.bf16.msra.mxu1 %v1701_v12  ;;  %v2157_v22 = vld [vmem:[#allocation3 + $0x1e4] sm:$0xf0]  ;;  %v1620_v23 = vld [vmem:[#allocation3 + $0x150] sm:$0xf] }
  0x12   : > { %v1697_v21 = vor.u32 %v2156_v18, %v1694_v19  ;;  %v2139_v24 = vld [vmem:[#allocation3 + $0x154] sm:$0xf0]  ;;  %v1693_v25 = vor.u32 %v2157_v22, %v1692_v20  ;;  %v2138_v26 = vld [vmem:[#allocation3 + $0x154] sm:$0xf]  ;;  %v1622_v27 = vld [vmem:[#allocation3 + $0x158] sm:$0xf0] }
  0x13   : > { %v2154_v28 = vld [vmem:[#allocation3 + $0x1d4] sm:$0xf]  ;;  %570 = vmatpush.bf16.msra.mxu0 %v1629_v16  ;;  %v1621_v29 = vor.u32 %v2139_v24, %v1620_v23  ;;  %v1686_v30 = vld [vmem:[#allocation3 + $0x1d8] sm:$0xf0]  ;;  %v1684_v31 = vld [vmem:[#allocation3 + $0x1d0] sm:$0xf]  ;;  %v1625_v33 = vor.u32 %v2138_v26, %v1622_v27 }
  0x14   : > { %v2155_v32 = vld [vmem:[#allocation3 + $0x1d4] sm:$0xf0]  ;;  %596 = vmatpush.bf16.msra.mxu2 %v1633_v17  ;;  %v1689_v34 = vor.u32 %v2154_v28, %v1686_v30  ;;  %v1612_v35 = vld [vmem:[#allocation3 + $0x140] sm:$0xf]  ;;  %v2137_v36 = vld [vmem:[#allocation3 + $0x144] sm:$0xf0] }
  0x15   : > { %609 = vmatpush.bf16.msra.mxu3 %v1697_v21  ;;  %v2136_v37 = vld [vmem:[#allocation3 + $0x144] sm:$0xf]  ;;  %583 = vmatpush.bf16.msra.mxu1 %v1693_v25  ;;  %v1685_v38 = vor.u32 %v2155_v32, %v1684_v31  ;;  %v1614_v39 = vld [vmem:[#allocation3 + $0x148] sm:$0xf0]  ;;  %v1676_v42 = vld [vmem:[#allocation3 + $0x1c0] sm:$0xf]  ;;  %v1613_v44 = vor.u32 %v2137_v36, %v1612_v35 }
  0x16   : > { %v2152_v40 = vld [vmem:[#allocation3 + $0x1c4] sm:$0xf]  ;;  %v1678_v41 = vld [vmem:[#allocation3 + $0x1c8] sm:$0xf0]  ;;  %v2153_v43 = vld [vmem:[#allocation3 + $0x1c4] sm:$0xf0]  ;;  %v1617_v45 = vor.u32 %v2136_v37, %v1614_v39 }
  0x17   : > { %571 = vmatpush.bf16.msra.mxu0 %v1621_v29  ;;  %p240_p6 = scmp.lt.s32.totalorder %s2329_s22, 1  ;;  %v1681_v46 = vor.u32 %v2152_v40, %v1678_v41  ;;  %v1604_v47 = vld [vmem:[#allocation3 + $0x130] sm:$0xf]  ;;  %v2135_v48 = vld [vmem:[#allocation3 + $0x134] sm:$0xf0]  ;;  %v1677_v50 = vor.u32 %v2153_v43, %v1676_v42  ;;  %vm263_vm0 = vcmask 1043456  }
  0x18   : > { %597 = vmatpush.bf16.msra.mxu2 %v1625_v33  ;;  %v2134_v49 = vld [vmem:[#allocation3 + $0x134] sm:$0xf]  ;;  %v1606_v51 = vld [vmem:[#allocation3 + $0x138] sm:$0xf0]  ;;  %v1668_v54 = vld [vmem:[#allocation3 + $0x1b0] sm:$0xf]  ;;  %v1605_v56 = vor.u32 %v2135_v48, %v1604_v47 }
  0x19   : > { %610 = vmatpush.bf16.msra.mxu3 %v1689_v34  ;;  %584 = vmatpush.bf16.msra.mxu1 %v1685_v38  ;;  %v2150_v52 = vld [vmem:[#allocation3 + $0x1b4] sm:$0xf]  ;;  %v1670_v53 = vld [vmem:[#allocation3 + $0x1b8] sm:$0xf0]  ;;  %v2151_v55 = vld [vmem:[#allocation3 + $0x1b4] sm:$0xf0]  ;;  %v1609_v57 = vor.u32 %v2134_v49, %v1606_v51 }
  0x1a   : > { %s2445_s22 = smov (!%p240_p6, %s2329_s22), 1  ;;  %v1673_v58 = vor.u32 %v2150_v52, %v1670_v53  ;;  %v1596_v59 = vld [vmem:[#allocation3 + $0x120] sm:$0xf]  ;;  %v2133_v60 = vld [vmem:[#allocation3 + $0x124] sm:$0xf0]  ;;  %v1669_v62 = vor.u32 %v2151_v55, %v1668_v54  ;;  %vm276_vm1 = vcmask 1040384  }
  0x1b   : > { %572 = vmatpush.bf16.msra.mxu0 %v1613_v44  ;;  %v2132_v61 = vld [vmem:[#allocation3 + $0x124] sm:$0xf]  ;;  %v1598_v63 = vld [vmem:[#allocation3 + $0x128] sm:$0xf0]  ;;  %v1660_v2 = vld [vmem:[#allocation3 + $0x1a0] sm:$0xf]  ;;  %v1597_v4 = vor.u32 %v2133_v60, %v1596_v59 }
  0x1c   : > { %598 = vmatpush.bf16.msra.mxu2 %v1617_v45  ;;  %v2148_v0 = vld [vmem:[#allocation3 + $0x1a4] sm:$0xf]  ;;  %v1662_v1 = vld [vmem:[#allocation3 + $0x1a8] sm:$0xf0]  ;;  %v2149_v3 = vld [vmem:[#allocation3 + $0x1a4] sm:$0xf0]  ;;  %v1601_v5 = vor.u32 %v2132_v61, %v1598_v63 }
  0x1d   : > { %611 = vmatpush.bf16.msra.mxu3 %v1681_v46  ;;  %585 = vmatpush.bf16.msra.mxu1 %v1677_v50  ;;  %s2093_s27 = sshll.u32 %s2445_s22, 2  ;;  %v1665_v6 = vor.u32 %v2148_v0, %v1662_v1  ;;  %v1588_v7 = vld [vmem:[#allocation3 + $0x110] sm:$0xf]  ;;  %v2131_v8 = vld [vmem:[#allocation3 + $0x114] sm:$0xf0]  ;;  %v1661_v10 = vor.u32 %v2149_v3, %v1660_v2  ;;  %vm279_vm4 = vcmask 1044484  }
  0x1e   : > { %v2130_v9 = vld [vmem:[#allocation3 + $0x114] sm:$0xf]  ;;  %v1590_v11 = vld [vmem:[#allocation3 + $0x118] sm:$0xf0]  ;;  %v1652_v14 = vld [vmem:[#allocation3 + $0x190] sm:$0xf]  ;;  %v1589_v17 = vor.u32 %v2131_v8, %v1588_v7  ;;  %s244_s30 = scalar_lea.vmem %s2428_s0, %s2093_s27  ;;  %s254_s16 = scalar_lea.vmem %s2433_s5, %s2093_s27 }
  0x1f   : > { %573 = vmatpush.bf16.msra.mxu0 %v1605_v56  ;;  %v2146_v12 = vld [vmem:[#allocation3 + $0x194] sm:$0xf]  ;;  %v1654_v13 = vld [vmem:[#allocation3 + $0x198] sm:$0xf0]  ;;  %v2147_v15 = vld [vmem:[#allocation3 + $0x194] sm:$0xf0]  ;;  %v1593_v21 = vor.u32 %v2130_v9, %v1590_v11 }
  0x20   : > { %599 = vmatpush.bf16.msra.mxu2 %v1609_v57  ;;  %v1580_v16 = vld [vmem:[#allocation3 + $0x100] sm:$0xf]  ;;  %v2129_v18 = vld [vmem:[#allocation3 + $0x104] sm:$0xf0]  ;;  %v2128_v19 = vld [vmem:[#allocation3 + $0x104] sm:$0xf]  ;;  %v1657_v22 = vor.u32 %v2146_v12, %v1654_v13  ;;  %v1653_v26 = vor.u32 %v2147_v15, %v1652_v14 }
  0x21   : > { %612 = vmatpush.bf16.msra.mxu3 %v1673_v58  ;;  %586 = vmatpush.bf16.msra.mxu1 %v1669_v62  ;;  %v1582_v20 = vld [vmem:[#allocation3 + $0x108] sm:$0xf0]  ;;  %v2144_v23 = vld [vmem:[#allocation3 + $0x184] sm:$0xf]  ;;  %v1764_v25 = vld [vmem:[#allocation3 + $0x70] sm:$0xf]  ;;  %v1581_v33 = vor.u32 %v2129_v18, %v1580_v16 }
  0x22   : > { %v1646_v24 = vld [vmem:[#allocation3 + $0x188] sm:$0xf0]  ;;  %v2111_v27 = vld [vmem:[#allocation3 + $0x74] sm:$0xf0]  ;;  %v2110_v28 = vld [vmem:[#allocation3 + $0x74] sm:$0xf]  ;;  %v1585_v37 = vor.u32 %v2128_v19, %v1582_v20 }
  0x23   : > { %574 = vmatpush.bf16.msra.mxu0 %v1597_v4  ;;  %v1766_v29 = vld [vmem:[#allocation3 + $0x78] sm:$0xf0]  ;;  %v2126_v30 = vld [vmem:[#allocation3 + $0xf4] sm:$0xf]  ;;  %v1644_v32 = vld [vmem:[#allocation3 + $0x180] sm:$0xf]  ;;  %v1649_v38 = vor.u32 %v2144_v23, %v1646_v24  ;;  %v1765_v42 = vor.u32 %v2111_v27, %v1764_v25 }
  0x24   : > { %600 = vmatpush.bf16.msra.mxu2 %v1601_v5  ;;  %v1830_v31 = vld [vmem:[#allocation3 + $0xf8] sm:$0xf0]  ;;  %v2145_v34 = vld [vmem:[#allocation3 + $0x184] sm:$0xf0]  ;;  %v1828_v35 = vld [vmem:[#allocation3 + $0xf0] sm:$0xf]  ;;  %v1769_v43 = vor.u32 %v2110_v28, %v1766_v29 }
  0x25   : > { %613 = vmatpush.bf16.msra.mxu3 %v1665_v6  ;;  %587 = vmatpush.bf16.msra.mxu1 %v1661_v10  ;;  %v2127_v36 = vld [vmem:[#allocation3 + $0xf4] sm:$0xf0]  ;;  %v1756_v39 = vld [vmem:[#allocation3 + $0x60] sm:$0xf]  ;;  %v2109_v40 = vld [vmem:[#allocation3 + $0x64] sm:$0xf0]  ;;  %v1833_v47 = vor.u32 %v2126_v30, %v1830_v31  ;;  %v1645_v48 = vor.u32 %v2145_v34, %v1644_v32 }
  0x26   : > { %v2108_v41 = vld [vmem:[#allocation3 + $0x64] sm:$0xf]  ;;  %v1758_v44 = vld [vmem:[#allocation3 + $0x68] sm:$0xf0]  ;;  %v1829_v49 = vor.u32 %v2127_v36, %v1828_v35  ;;  %v1757_v50 = vor.u32 %v2109_v40, %v1756_v39  ;;  %v1820_v51 = vld [vmem:[#allocation3 + $0xe0] sm:$0xf] }
  0x27   : > { %575 = vmatpush.bf16.msra.mxu0 %v1589_v17  ;;  %v2124_v45 = vld [vmem:[#allocation3 + $0xe4] sm:$0xf]  ;;  %v1822_v46 = vld [vmem:[#allocation3 + $0xe8] sm:$0xf0]  ;;  %v2125_v52 = vld [vmem:[#allocation3 + $0xe4] sm:$0xf0]  ;;  %v1761_v53 = vor.u32 %v2108_v41, %v1758_v44 }
  0x28   : > { %601 = vmatpush.bf16.msra.mxu2 %v1593_v21  ;;  %v1825_v54 = vor.u32 %v2124_v45, %v1822_v46  ;;  %v2346_v55 = vld [vmem:[#allocation3 + $0x50] sm:$0xf]  ;;  %v2348_v56 = vld [vmem:[#allocation3 + $0x54] sm:$0xf0]  ;;  %v2350_v57 = vld [vmem:[#allocation3 + $0x54] sm:$0xf]  ;;  %v1821_v8 = vor.u32 %v2125_v52, %v1820_v51 }
  0x29   : > { %614 = vmatpush.bf16.msra.mxu3 %v1657_v22  ;;  %588 = vmatpush.bf16.msra.mxu1 %v1653_v26  ;;  %v1750_v58 = vld [vmem:[#allocation3 + $0x58] sm:$0xf0]  ;;  %v256_v59 = vld [vmem:[%s244_s30] sm:$0xf]  ;;  %v2122_v61 = vld [vmem:[#allocation3 + $0xd4] sm:$0xf]  ;;  %v1749_v14 = vor.u32 %v2348_v56, %v2346_v55 }
  0x2a   : > { %v258_v60 = vld [vmem:[%s2429_s1] sm:$0x3]  ;;  %v1814_v62 = vld [vmem:[#allocation3 + $0xd8] sm:$0xf0]  ;;  %v257_v63 = vunpack.c.l.bf16 %v256_v59  ;;  %vm277_vm2 = vsmask.f32 256  ;;  %v1753_v15 = vor.u32 %v2350_v57, %v1750_v58 }
  0x2b   : > { %576 = vmatpush.bf16.msra.mxu0 %v1581_v33  ;;  %v260_v0 = vperm.slane %v258_v60, 0  ;;  %v261_v1 = vperm.slane %v258_v60, 1  ;;  %v267_v2 = vld [vmem:[%s2430_s2] sm:$0x3]  ;;  %v2123_v4 = vld [vmem:[#allocation3 + $0xd4] sm:$0xf0]  ;;  %vm2359_vm3 = vmand %vm276_vm1, %vm277_vm2  ;;  %v1817_v21 = vor.u32 %v2122_v61, %v1814_v62 }
  0x2c   : > { %602 = vmatpush.bf16.msra.mxu2 %v1585_v37  ;;  %v1812_v3 = vld [vmem:[#allocation3 + $0xd0] sm:$0xf]  ;;  %v269_v5 = vperm.slane %v267_v2, 0  ;;  %v270_v6 = vperm.slane %v267_v2, 1  ;;  %vm280_vm5 = vsmask.f32 4352 }
  0x2d   : > { %615 = vmatpush.bf16.msra.mxu3 %v1649_v38  ;;  %589 = vmatpush.bf16.msra.mxu1 %v1645_v48  ;;  %v262_v9 = vrot.slane %v261_v1, 4  ;;  %vm2363_vm6 = vmand %vm279_vm4, %vm280_vm5  ;;  %v283_v11 = vld [vmem:[#allocation2] sm:$0x11]  ;;  %vm286_vm7 = vcmask 1042434   ;;  %vm287_vm8 = vsmask.f32 7946  ;;  %v1813_v26 = vor.u32 %v2123_v4, %v1812_v3 }
  0x2e   : > { %v1740_v12 = vld [vmem:[#allocation3 + $0x40] sm:$0xf]  ;;  %v271_v13 = vrot.slane %v270_v6, 4  ;;  %vm282_vm9 = vmor %vm2363_vm6, %vm2359_vm3  ;;  %vm289_vm10 = vcmask 1046534   ;;  %vm290_vm11 = vsmask.f32 7962 }
  0x2f   : > { %788 = vmatpush.bf16.msrb.mxu0 %v1765_v42  ;;  %v2105_v16 = vld [vmem:[#allocation3 + $0x44] sm:$0xf0]  ;;  %v264_v17 = vsel %vm263_vm0, %v260_v0, %v262_v9  ;;  %v284_v18 = vsel %vm282_vm9, 0, %v283_v11  ;;  %vm2375_vm12 = vmand %vm286_vm7, %vm287_vm8  ;;  %v293_v20 = vld [vmem:[#allocation2] sm:$0x44]  ;;  %vm311_vm2 = vcmask 1042432  }
  0x30   : > { %814 = vmatpush.bf16.msrb.mxu2 %v1769_v43  ;;  %v2104_v22 = vld [vmem:[#allocation3 + $0x44] sm:$0xf]  ;;  %v1742_v23 = vld [vmem:[#allocation3 + $0x48] sm:$0xf0]  ;;  %v266_v24 = vmul.f32 %v264_v17, %v257_v63  ;;  %v272_v25 = vsel %vm263_vm0, %v269_v5, %v271_v13  ;;  %285 = vst [vmem:[#allocation2] sm:$0x11] %v284_v18  ;;  %vm291_vm13 = vmand %vm289_vm10, %vm290_vm11  ;;  %v1741_v33 = vor.u32 %v2105_v16, %v1740_v12 }
  0x31   : > { %827 = vmatpush.bf16.msrb.mxu3 %v1833_v47  ;;  %801 = vmatpush.bf16.msrb.mxu1 %v1829_v49  ;;  %v2120_v27 = vld [vmem:[#allocation3 + $0xc4] sm:$0xf]  ;;  %v1806_v28 = vld [vmem:[#allocation3 + $0xc8] sm:$0xf0]  ;;  %vm292_vm14 = vmor %vm291_vm13, %vm2375_vm12  ;;  %v1745_v34 = vor.u32 %v2104_v22, %v1742_v23  ;;  %vm312_vm15 = vsmask.f32 2306 }
  0x32   : > { %v1804_v29 = vld [vmem:[#allocation3 + $0xc0] sm:$0xf]  ;;  %v2121_v30 = vld [vmem:[#allocation3 + $0xc4] sm:$0xf0]  ;;  %v274_v31 = vadd.f32 %v272_v25, %v266_v24  ;;  %v294_v32 = vsel %vm292_vm14, 0, %v293_v20  ;;  %v1809_v35 = vor.u32 %v2120_v27, %v1806_v28  ;;  %vm314_vm3 = vcmask 1046532   ;;  %vm2386_vm5 = vmand %vm311_vm2, %vm312_vm15 }
  0x33   : > { %789 = vmatpush.bf16.msrb.mxu0 %v1757_v50  ;;  %295 = vst [vmem:[#allocation2] sm:$0x44] %v294_v32  ;;  %v1805_v37 = vor.u32 %v2121_v30, %v1804_v29  ;;  %v1732_v38 = vld [vmem:[#allocation3 + $0x30] sm:$0xf]  ;;  %v2103_v39 = vld [vmem:[#allocation3 + $0x34] sm:$0xf0] }
  0x34   : > { %815 = vmatpush.bf16.msrb.mxu2 %v1761_v53  ;;  %v275_v36 = vmax.f32 %v274_v31, 0.0  ;;  %v2102_v40 = vld [vmem:[#allocation3 + $0x34] sm:$0xf]  ;;  %v1733_v41 = vor.u32 %v2103_v39, %v1732_v38  ;;  %v1734_v42 = vld [vmem:[#allocation3 + $0x38] sm:$0xf0]  ;;  %s2094_s10 = sshll.u32 %s2445_s22, 3 }
  0x35   : > { %828 = vmatpush.bf16.msrb.mxu3 %v1825_v54  ;;  %802 = vmatpush.bf16.msrb.mxu1 %v1821_v8  ;;  %v2118_v43 = vld [vmem:[#allocation3 + $0xb4] sm:$0xf]  ;;  %v1798_v44 = vld [vmem:[#allocation3 + $0xb8] sm:$0xf0]  ;;  %v1737_v45 = vor.u32 %v2102_v40, %v1734_v42  ;;  %v1796_v47 = vld [vmem:[#allocation3 + $0xb0] sm:$0xf]  ;;  %s2404_s13 = scalar_lea.vmem %s2432_s4, %s2094_s10 }
  0x36   : > { %297 = vst [vmem:[#allocation1] ss:$2 sm:$0xff] %v275_v36  ;;  %v1801_v46 = vor.u32 %v2118_v43, %v1798_v44  ;;  %v2119_v48 = vld [vmem:[#allocation3 + $0xb4] sm:$0xf0]  ;;  %vm315_vm4 = vsmask.f32 6418 }
  0x37   : > { %790 = vmatpush.bf16.msrb.mxu0 %v1749_v14  ;;  %v1797_v49 = vor.u32 %v2119_v48, %v1796_v47  ;;  %v1724_v50 = vld [vmem:[#allocation3 + $0x20] sm:$0xf]  ;;  %v2101_v51 = vld [vmem:[#allocation3 + $0x24] sm:$0xf0]  ;;  %v2100_v53 = vld [vmem:[#allocation3 + $0x24] sm:$0xf] }
  0x38   : > { %816 = vmatpush.bf16.msrb.mxu2 %v1753_v15  ;;  %v1725_v52 = vor.u32 %v2101_v51, %v1724_v50  ;;  %v1726_v54 = vld [vmem:[#allocation3 + $0x28] sm:$0xf0]  ;;  %v2116_v55 = vld [vmem:[#allocation3 + $0xa4] sm:$0xf]  ;;  %v1788_v58 = vld [vmem:[#allocation3 + $0xa0] sm:$0xf] }
  0x39   : > { %829 = vmatpush.bf16.msrb.mxu3 %v1817_v21  ;;  %803 = vmatpush.bf16.msrb.mxu1 %v1813_v26  ;;  %v1729_v56 = vor.u32 %v2100_v53, %v1726_v54  ;;  %v1790_v57 = vld [vmem:[#allocation3 + $0xa8] sm:$0xf0]  ;;  %v2117_v59 = vld [vmem:[#allocation3 + $0xa4] sm:$0xf0]  ;;  %v1716_v2 = vld [vmem:[#allocation3 + $0x10] sm:$0xf] }
  0x3a   : > { %v1793_v63 = vor.u32 %v2116_v55, %v1790_v57  ;;  %v1789_v0 = vor.u32 %v2117_v59, %v1788_v58  ;;  %v2099_v3 = vld [vmem:[#allocation3 + $0x14] sm:$0xf0]  ;;  %v2098_v4 = vld [vmem:[#allocation3 + $0x14] sm:$0xf]  ;;  %v1718_v6 = vld [vmem:[#allocation3 + $0x18] sm:$0xf0] }
  0x3b   : > { %791 = vmatpush.bf16.msrb.mxu0 %v1741_v33  ;;  %v1717_v5 = vor.u32 %v2099_v3, %v1716_v2  ;;  %v2114_v7 = vld [vmem:[#allocation3 + $0x94] sm:$0xf]  ;;  %v1782_v8 = vld [vmem:[#allocation3 + $0x98] sm:$0xf0]  ;;  %vm2392_vm6 = vmand %vm314_vm3, %vm315_vm4  ;;  %v1721_v12 = vor.u32 %v2098_v4, %v1718_v6  ;;  %vm877_vm8 = vcmask 1041408  }
  0x3c   : > { %817 = vmatpush.bf16.msrb.mxu2 %v1745_v34  ;;  %v1785_v13 = vor.u32 %v2114_v7, %v1782_v8  ;;  %v1780_v14 = vld [vmem:[#allocation3 + $0x90] sm:$0xf]  ;;  %v2115_v15 = vld [vmem:[#allocation3 + $0x94] sm:$0xf0]  ;;  %v1708_v17 = vld [vmem:[#allocation3] sm:$0xf] }
  0x3d   : > { %830 = vmatpush.bf16.msrb.mxu3 %v1809_v35  ;;  %804 = vmatpush.bf16.msrb.mxu1 %v1805_v37  ;;  %v298_v60 = vld.sshfl [vmem:[#allocation1] sm:$0xff pattern:$0x75316420]  ;;  %v299_v61 = vld.sshfl [vmem:[#allocation1 + $0x8] sm:$0xff pattern:$0x75316420]  ;;  %v1781_v16 = vor.u32 %v2115_v15, %v1780_v14  ;;  %vm317_vm7 = vmor %vm2392_vm6, %vm2386_vm5 }
  0x3e   : > { %v302_v1 = vpack.c.bf16 %v299_v61, %v298_v60  ;;  %v2097_v18 = vld [vmem:[#allocation3 + $0x4] sm:$0xf0]  ;;  %v2096_v19 = vld [vmem:[#allocation3 + $0x4] sm:$0xf]  ;;  %v1710_v21 = vld [vmem:[#allocation3 + $0x8] sm:$0xf0] }
  0x3f   : > { %792 = vmatpush.bf16.msrb.mxu0 %v1733_v41  ;;  %v2112_v22 = vld [vmem:[#allocation3 + $0x84] sm:$0xf]  ;;  %v318_v23 = vld [vmem:[#allocation2] sm:$0x77]  ;;  %v1709_v24 = vor.u32 %v2097_v18, %v1708_v17  ;;  %v1713_v25 = vor.u32 %v2096_v19, %v1710_v21  ;;  %v1774_v26 = vld [vmem:[#allocation3 + $0x88] sm:$0xf0] }
  0x40   : > { %818 = vmatpush.bf16.msrb.mxu2 %v1737_v45  ;;  %v304_v9 = vshrl.u32 %v302_v1, 16  ;;  %v307_v10 = vshll.u32 %v302_v1, 16  ;;  %v1777_v28 = vor.u32 %v2112_v22, %v1774_v26  ;;  %v1772_v29 = vld [vmem:[#allocation3 + $0x80] sm:$0xf]  ;;  %v2113_v30 = vld [vmem:[#allocation3 + $0x84] sm:$0xf0] }
  0x41   : > { %831 = vmatpush.bf16.msrb.mxu3 %v1801_v46  ;;  %805 = vmatpush.bf16.msrb.mxu1 %v1797_v49  ;;  %v1773_v32 = vor.u32 %v2113_v30, %v1772_v29  ;;  %v1892_v38 = vld [vmem:[#allocation3 + $0x370] sm:$0xf]  ;;  %v2207_v39 = vld [vmem:[#allocation3 + $0x374] sm:$0xf0]  ;;  %v2206_v44 = vld [vmem:[#allocation3 + $0x374] sm:$0xf] }
  0x42   : > { %v306_v20 = vrot.slane %v304_v9, 7  ;;  %v1894_v45 = vld [vmem:[#allocation3 + $0x378] sm:$0xf0]  ;;  %v2222_v46 = vld [vmem:[#allocation3 + $0x3f4] sm:$0xf]  ;;  %v1893_v54 = vor.u32 %v2207_v39, %v1892_v38 }
  0x43   : > { %793 = vmatpush.bf16.msrb.mxu0 %v1725_v52  ;;  %v1958_v47 = vld [vmem:[#allocation3 + $0x3f8] sm:$0xf0]  ;;  %v1956_v50 = vld [vmem:[#allocation3 + $0x3f0] sm:$0xf]  ;;  %v2223_v51 = vld [vmem:[#allocation3 + $0x3f4] sm:$0xf0]  ;;  %v1897_v55 = vor.u32 %v2206_v44, %v1894_v45 }
  0x44   : > { %819 = vmatpush.bf16.msrb.mxu2 %v1729_v56  ;;  %v309_v27 = vor.u32 %v307_v10, %v306_v20  ;;  %v1884_v56 = vld [vmem:[#allocation3 + $0x360] sm:$0xf]  ;;  %v2205_v57 = vld [vmem:[#allocation3 + $0x364] sm:$0xf0]  ;;  %v1961_v58 = vor.u32 %v2222_v46, %v1958_v47  ;;  %v1957_v59 = vor.u32 %v2223_v51, %v1956_v50  ;;  %v2204_v60 = vld [vmem:[#allocation3 + $0x364] sm:$0xf] }
  0x45   : > { %832 = vmatpush.bf16.msrb.mxu3 %v1793_v63  ;;  %806 = vmatpush.bf16.msrb.mxu1 %v1789_v0  ;;  %v1886_v61 = vld [vmem:[#allocation3 + $0x368] sm:$0xf0]  ;;  %v2220_v62 = vld [vmem:[#allocation3 + $0x3e4] sm:$0xf]  ;;  %v1948_v0 = vld [vmem:[#allocation3 + $0x3e0] sm:$0xf]  ;;  %v1885_v2 = vor.u32 %v2205_v57, %v1884_v56 }
  0x46   : > { %v319_v31 = vsel %vm317_vm7, %v309_v27, %v318_v23  ;;  %v1950_v63 = vld [vmem:[#allocation3 + $0x3e8] sm:$0xf0]  ;;  %v2221_v1 = vld [vmem:[#allocation3 + $0x3e4] sm:$0xf0]  ;;  %v1889_v3 = vor.u32 %v2204_v60, %v1886_v61  ;;  %v1876_v4 = vld [vmem:[#allocation3 + $0x350] sm:$0xf] }
  0x47   : > { %794 = vmatpush.bf16.msrb.mxu0 %v1717_v5  ;;  %320 = vst [vmem:[#allocation2] sm:$0x77] %v319_v31  ;;  %v2203_v5 = vld [vmem:[#allocation3 + $0x354] sm:$0xf0]  ;;  %v1953_v6 = vor.u32 %v2220_v62, %v1950_v63  ;;  %v1949_v7 = vor.u32 %v2221_v1, %v1948_v0  ;;  %v2202_v8 = vld [vmem:[#allocation3 + $0x354] sm:$0xf] }
  0x48   : > { %820 = vmatpush.bf16.msrb.mxu2 %v1721_v12  ;;  %v1878_v9 = vld [vmem:[#allocation3 + $0x358] sm:$0xf0]  ;;  %v2218_v10 = vld [vmem:[#allocation3 + $0x3d4] sm:$0xf]  ;;  %v1940_v12 = vld [vmem:[#allocation3 + $0x3d0] sm:$0xf]  ;;  %v1877_v15 = vor.u32 %v2203_v5, %v1876_v4 }
  0x49   : > { %833 = vmatpush.bf16.msrb.mxu3 %v1785_v13  ;;  %807 = vmatpush.bf16.msrb.mxu1 %v1781_v16  ;;  %v1942_v11 = vld [vmem:[#allocation3 + $0x3d8] sm:$0xf0]  ;;  %v2219_v13 = vld [vmem:[#allocation3 + $0x3d4] sm:$0xf0]  ;;  %v1881_v16 = vor.u32 %v2202_v8, %v1878_v9  ;;  %v1868_v17 = vld [vmem:[#allocation3 + $0x340] sm:$0xf] }
  0x4a   : > { %v2201_v18 = vld [vmem:[#allocation3 + $0x344] sm:$0xf0]  ;;  %v1945_v19 = vor.u32 %v2218_v10, %v1942_v11  ;;  %v1941_v20 = vor.u32 %v2219_v13, %v1940_v12  ;;  %v2200_v21 = vld [vmem:[#allocation3 + $0x344] sm:$0xf]  ;;  %v1870_v22 = vld [vmem:[#allocation3 + $0x348] sm:$0xf0] }
  0x4b   : > { %795 = vmatpush.bf16.msrb.mxu0 %v1709_v24  ;;  %v2216_v23 = vld [vmem:[#allocation3 + $0x3c4] sm:$0xf]  ;;  %v1932_v26 = vld [vmem:[#allocation3 + $0x3c0] sm:$0xf]  ;;  %v2217_v27 = vld [vmem:[#allocation3 + $0x3c4] sm:$0xf0]  ;;  %v1869_v29 = vor.u32 %v2201_v18, %v1868_v17  ;;  %v1873_v30 = vor.u32 %v2200_v21, %v1870_v22 }
  0x4c   : > { %821 = vmatpush.bf16.msrb.mxu2 %v1713_v25  ;;  %v1934_v25 = vld [vmem:[#allocation3 + $0x3c8] sm:$0xf0]  ;;  %v1860_v31 = vld [vmem:[#allocation3 + $0x330] sm:$0xf]  ;;  %v1926_v39 = vld [vmem:[#allocation3 + $0x3b8] sm:$0xf0] }
  0x4d   : > { %834 = vmatpush.bf16.msrb.mxu3 %v1777_v28  ;;  %808 = vmatpush.bf16.msrb.mxu1 %v1773_v32  ;;  %v2199_v32 = vld [vmem:[#allocation3 + $0x334] sm:$0xf0]  ;;  %v1852_v45 = vld [vmem:[#allocation3 + $0x320] sm:$0xf]  ;;  %v2197_v46 = vld [vmem:[#allocation3 + $0x324] sm:$0xf0] }
  0x4e   : > { %v354_v33 = vld [vmem:[#allocation2] sm:$0x77]  ;;  %v1854_v50 = vld [vmem:[#allocation3 + $0x328] sm:$0xf0]  ;;  %v2212_v51 = vld [vmem:[#allocation3 + $0x3a4] sm:$0xf] }
  0x4f   : > { %v389_v34 = vunpack.c.l.b16 %v354_v33  ;;  %v390_v35 = vunpack.c.h.b16 %v354_v33  ;;  %v321_v14 = vld [vmem:[#allocation2] sm:$0x33]  ;;  %v1937_v33 = vor.u32 %v2216_v23, %v1934_v25  ;;  %v1844_v57 = vld [vmem:[#allocation3 + $0x310] sm:$0xf]  ;;  %v2194_v62 = vld [vmem:[#allocation3 + $0x314] sm:$0xf] }
  0x50   : > { %v622_v24 = vunpack.c.l.b16 %v321_v14  ;;  %v623_v28 = vunpack.c.h.b16 %v321_v14  ;;  %v1846_v63 = vld [vmem:[#allocation3 + $0x318] sm:$0xf0]  ;;  %v2210_v0 = vld [vmem:[#allocation3 + $0x394] sm:$0xf]  ;;  %v2193_v8 = vld [vmem:[#allocation3 + $0x304] sm:$0xf0] }
  0x51   : > { %v391_v36 = vpack.c.b16 %v389_v34, %v389_v34  ;;  %v392_v37 = vpack.c.b16 %v390_v35, %v390_v35  ;;  %v1933_v34 = vor.u32 %v2217_v27, %v1932_v26  ;;  %v2198_v35 = vld [vmem:[#allocation3 + $0x334] sm:$0xf]  ;;  %v1910_v1 = vld [vmem:[#allocation3 + $0x398] sm:$0xf0]  ;;  %v2192_v9 = vld [vmem:[#allocation3 + $0x304] sm:$0xf] }
  0x52   : > { %v624_v38 = vpack.c.b16 %v622_v24, %v622_v24  ;;  %v1913_v11 = vor.u32 %v2210_v0, %v1910_v1  ;;  %v1838_v13 = vld [vmem:[#allocation3 + $0x308] sm:$0xf0]  ;;  %v2208_v14 = vld [vmem:[#allocation3 + $0x384] sm:$0xf]  ;;  %v2175_v17 = vld [vmem:[#allocation3 + $0x274] sm:$0xf0] }
  0x53   : > { %v394_v40 = vshrl.u32 %v391_v36, 16  ;;  %v396_v41 = vshll.u32 %v391_v36, 16  ;;  %v401_v42 = vshrl.u32 %v392_v37, 16  ;;  %v403_v43 = vshll.u32 %v392_v37, 16  ;;  %v1862_v36 = vld [vmem:[#allocation3 + $0x338] sm:$0xf0] }
  0x54   : > { %v2214_v37 = vld [vmem:[#allocation3 + $0x3b4] sm:$0xf]  ;;  %v1865_v44 = vor.u32 %v2198_v35, %v1862_v36  ;;  %v2086_v21 = vld [vmem:[#allocation3 + $0x2f8] sm:$0xf0]  ;;  %v1841_v24 = vor.u32 %v2192_v9, %v1838_v13  ;;  %v1900_v25 = vld [vmem:[#allocation3 + $0x380] sm:$0xf] }
  0x55   : > { %v398_v48 = vrot.slane %v396_v41, 1  ;;  %v405_v49 = vrot.slane %v403_v43, 1  ;;  %v2215_v41 = vld [vmem:[#allocation3 + $0x3b4] sm:$0xf0]  ;;  %v1861_v43 = vor.u32 %v2199_v32, %v1860_v31  ;;  %v1929_v47 = vor.u32 %v2214_v37, %v1926_v39  ;;  %v2174_v18 = vld [vmem:[#allocation3 + $0x274] sm:$0xf] }
  0x56   : > { %v2209_v26 = vld [vmem:[#allocation3 + $0x384] sm:$0xf0]  ;;  %v2191_v31 = vld [vmem:[#allocation3 + $0x2f4] sm:$0xf0]  ;;  %v2012_v32 = vld [vmem:[#allocation3 + $0x260] sm:$0xf] }
  0x57   : > { %v399_v52 = vor.u32 %v398_v48, %v394_v40  ;;  %v406_v53 = vor.u32 %v405_v49, %v401_v42  ;;  %v1924_v40 = vld [vmem:[#allocation3 + $0x3b0] sm:$0xf]  ;;  %v625_v42 = vpack.c.b16 %v623_v28, %v623_v28  ;;  %v2196_v49 = vld [vmem:[#allocation3 + $0x324] sm:$0xf]  ;;  %v2173_v35 = vld [vmem:[#allocation3 + $0x264] sm:$0xf0] }
  0x58   : > { %v1925_v48 = vor.u32 %v2215_v41, %v1924_v40  ;;  %v1857_v56 = vor.u32 %v2196_v49, %v1854_v50  ;;  %v2172_v36 = vld [vmem:[#allocation3 + $0x264] sm:$0xf]  ;;  %v2014_v37 = vld [vmem:[#allocation3 + $0x268] sm:$0xf0]  ;;  %v2004_v49 = vld [vmem:[#allocation3 + $0x250] sm:$0xf] }
  0x59   : > { %603 = vmatmul.bf16.vlgmr.msra.gmra.mxu2 %v399_v52  ;;  %577 = vmatmul.bf16.vlgmr.msra.gmra.mxu0 %v399_v52  ;;  %v1918_v52 = vld [vmem:[#allocation3 + $0x3a8] sm:$0xf0]  ;;  %v2188_v39 = vld [vmem:[#allocation3 + $0x2e4] sm:$0xf]  ;;  %v2171_v50 = vld [vmem:[#allocation3 + $0x254] sm:$0xf0] }
  0x5a   : > { %616 = vmatmul.bf16.vlgmr.msra.gmra.mxu3 %v406_v53  ;;  %590 = vmatmul.bf16.vlgmr.msra.gmra.mxu1 %v406_v53  ;;  %v1916_v53 = vld [vmem:[#allocation3 + $0x3a0] sm:$0xf]  ;;  %v1921_v60 = vor.u32 %v2212_v51, %v1918_v52  ;;  %v2078_v40 = vld [vmem:[#allocation3 + $0x2e8] sm:$0xf0]  ;;  %v2170_v51 = vld [vmem:[#allocation3 + $0x254] sm:$0xf] }
  0x5b   : > { %1120 = vmatpush.bf16.msra.mxu0 %v1893_v54  ;;  %1146 = vmatpush.bf16.msra.mxu2 %v1897_v55  ;;  %v2213_v54 = vld [vmem:[#allocation3 + $0x3a4] sm:$0xf0]  ;;  %v1853_v55 = vor.u32 %v2197_v46, %v1852_v45  ;;  %v2076_v45 = vld [vmem:[#allocation3 + $0x2e0] sm:$0xf]  ;;  %v2006_v52 = vld [vmem:[#allocation3 + $0x258] sm:$0xf0] }
  0x5c   : > { %1159 = vmatpush.bf16.msra.mxu3 %v1961_v58  ;;  %1133 = vmatpush.bf16.msra.mxu1 %v1957_v59  ;;  %v2195_v58 = vld [vmem:[#allocation3 + $0x314] sm:$0xf0]  ;;  %v1917_v61 = vor.u32 %v2213_v54, %v1916_v53  ;;  %v2189_v46 = vld [vmem:[#allocation3 + $0x2e4] sm:$0xf0]  ;;  %v2186_v53 = vld [vmem:[#allocation3 + $0x2d4] sm:$0xf] }
  0x5d   : > { %v917_v59 = vld [vmem:[#allocation2] sm:$0x66]  ;;  %v1845_v5 = vor.u32 %v2195_v58, %v1844_v57  ;;  %v2068_v57 = vld [vmem:[#allocation3 + $0x2d0] sm:$0xf]  ;;  %v1998_v0 = vld [vmem:[#allocation3 + $0x248] sm:$0xf0] }
  0x5e   : > { %v952_v4 = vunpack.c.l.b16 %v917_v59  ;;  %v953_v10 = vunpack.c.h.b16 %v917_v59  ;;  %v2070_v54 = vld [vmem:[#allocation3 + $0x2d8] sm:$0xf0]  ;;  %v2187_v58 = vld [vmem:[#allocation3 + $0x2d4] sm:$0xf0]  ;;  %v2009_v59 = vor.u32 %v2170_v51, %v2006_v52  ;;  %v2184_v1 = vld [vmem:[#allocation3 + $0x2c4] sm:$0xf] }
  0x5f   : > { %1121 = vmatpush.bf16.msra.mxu0 %v1885_v2  ;;  %1147 = vmatpush.bf16.msra.mxu2 %v1889_v3  ;;  %v1908_v2 = vld [vmem:[#allocation3 + $0x390] sm:$0xf]  ;;  %v2211_v3 = vld [vmem:[#allocation3 + $0x394] sm:$0xf0]  ;;  %v1990_v13 = vld [vmem:[#allocation3 + $0x238] sm:$0xf0] }
  0x60   : > { %1160 = vmatpush.bf16.msra.mxu3 %v1953_v6  ;;  %1134 = vmatpush.bf16.msra.mxu1 %v1949_v7  ;;  %v1849_v6 = vor.u32 %v2194_v62, %v1846_v63  ;;  %v1836_v7 = vld [vmem:[#allocation3 + $0x300] sm:$0xf]  ;;  %v1909_v12 = vor.u32 %v2211_v3, %v1908_v2  ;;  %v954_v22 = vpack.c.b16 %v952_v4, %v952_v4  ;;  %v2169_v62 = vld [vmem:[#allocation3 + $0x244] sm:$0xf0]  ;;  %v2168_v63 = vld [vmem:[#allocation3 + $0x244] sm:$0xf] }
  0x61   : > { %v1837_v23 = vor.u32 %v2193_v8, %v1836_v7  ;;  %v955_v27 = vpack.c.b16 %v953_v10, %v953_v10  ;;  %v2062_v2 = vld [vmem:[#allocation3 + $0x2c8] sm:$0xf0]  ;;  %v2069_v3 = vor.u32 %v2187_v58, %v2068_v57  ;;  %v883_v7 = vld [vmem:[#allocation2] sm:$0x77]  ;;  %v2001_v8 = vor.u32 %v2168_v63, %v1998_v0  ;;  %v1988_v10 = vld [vmem:[#allocation3 + $0x230] sm:$0xf] }
  0x62   : > { %v956_v41 = vrot.slane %v954_v22, 1  ;;  %v2065_v9 = vor.u32 %v2184_v1, %v2062_v2  ;;  %v1964_v52 = vld [vmem:[#allocation3 + $0x200] sm:$0xf]  ;;  %v2030_v57 = vld [vmem:[#allocation3 + $0x288] sm:$0xf0] }
  0x63   : > { %1122 = vmatpush.bf16.msra.mxu0 %v1877_v15  ;;  %1148 = vmatpush.bf16.msra.mxu2 %v1881_v16  ;;  %v1902_v15 = vld [vmem:[#allocation3 + $0x388] sm:$0xf0]  ;;  %v2020_v16 = vld [vmem:[#allocation3 + $0x270] sm:$0xf]  ;;  %v2177_v63 = vld [vmem:[#allocation3 + $0x284] sm:$0xf0] }
  0x64   : > { %1161 = vmatpush.bf16.msra.mxu3 %v1945_v19  ;;  %1135 = vmatpush.bf16.msra.mxu1 %v1941_v20  ;;  %v2022_v19 = vld [vmem:[#allocation3 + $0x278] sm:$0xf0]  ;;  %v2190_v20 = vld [vmem:[#allocation3 + $0x2f4] sm:$0xf]  ;;  %v1905_v28 = vor.u32 %v2208_v14, %v1902_v15 }
  0x65   : > { %v2182_v14 = vld [vmem:[#allocation3 + $0x2b4] sm:$0xf]  ;;  %v2054_v15 = vld [vmem:[#allocation3 + $0x2b8] sm:$0xf0] }
  0x67   : > { %1123 = vmatpush.bf16.msra.mxu0 %v1869_v29  ;;  %1149 = vmatpush.bf16.msra.mxu2 %v1873_v30  ;;  %v2021_v29 = vor.u32 %v2175_v17, %v2020_v16  ;;  %v2084_v30 = vld [vmem:[#allocation3 + $0x2f0] sm:$0xf]  ;;  %v1173_v17 = vunpack.c.l.b16 %v883_v7 }
  0x68   : > { %1162 = vmatpush.bf16.msra.mxu3 %v1937_v33  ;;  %1136 = vmatpush.bf16.msra.mxu1 %v1933_v34  ;;  %v2025_v33 = vor.u32 %v2174_v18, %v2022_v19  ;;  %v2089_v34 = vor.u32 %v2190_v20, %v2086_v21  ;;  %v2052_v19 = vld [vmem:[#allocation3 + $0x2b0] sm:$0xf]  ;;  %v2183_v20 = vld [vmem:[#allocation3 + $0x2b4] sm:$0xf0]  ;;  %v1174_v21 = vunpack.c.h.b16 %v883_v7 }
  0x69   : > { %822 = vmatmul.bf16.vlgmr.msrb.gmra.mxu2 %v624_v38  ;;  %796 = vmatmul.bf16.vlgmr.msrb.gmra.mxu0 %v624_v38  ;;  %v1901_v38 = vor.u32 %v2209_v26, %v1900_v25  ;;  %v2165_v25 = vld [vmem:[#allocation3 + $0x224] sm:$0xf0]  ;;  %v2164_v26 = vld [vmem:[#allocation3 + $0x224] sm:$0xf] }
  0x6a   : > { %835 = vmatmul.bf16.vlgmr.msrb.gmra.mxu3 %v625_v42  ;;  %809 = vmatmul.bf16.vlgmr.msrb.gmra.mxu1 %v625_v42  ;;  %v2085_v42 = vor.u32 %v2191_v31, %v2084_v30  ;;  %v2053_v30 = vor.u32 %v2183_v20, %v2052_v19  ;;  %v1175_v31 = vpack.c.b16 %v1173_v17, %v1173_v17 }
  0x6b   : > { %1124 = vmatpush.bf16.msra.mxu0 %v1861_v43  ;;  %1150 = vmatpush.bf16.msra.mxu2 %v1865_v44  ;;  %v957_v43 = vrot.slane %v955_v27, 1  ;;  %v2013_v44 = vor.u32 %v2173_v35, %v2012_v32  ;;  %v1982_v27 = vld [vmem:[#allocation3 + $0x228] sm:$0xf0]  ;;  %v1176_v35 = vpack.c.b16 %v1174_v21, %v1174_v21 }
  0x6c   : > { %1163 = vmatpush.bf16.msra.mxu3 %v1929_v47  ;;  %1137 = vmatpush.bf16.msra.mxu1 %v1925_v48  ;;  %v2017_v47 = vor.u32 %v2172_v36, %v2014_v37  ;;  %v2081_v48 = vor.u32 %v2188_v39, %v2078_v40  ;;  %v1985_v36 = vor.u32 %v2164_v26, %v1982_v27  ;;  %v2163_v39 = vld [vmem:[#allocation3 + $0x214] sm:$0xf0]  ;;  %v2162_v40 = vld [vmem:[#allocation3 + $0x214] sm:$0xf] }
  0x6d   : > { %v1185_v0 = vshrl.u32 %v1176_v35, 16 }
  0x6f   : > { %1125 = vmatpush.bf16.msra.mxu0 %v1853_v55  ;;  %1151 = vmatpush.bf16.msra.mxu2 %v1857_v56  ;;  %v2077_v55 = vor.u32 %v2189_v46, %v2076_v45  ;;  %v2005_v56 = vor.u32 %v2171_v50, %v2004_v49  ;;  %v1180_v45 = vshll.u32 %v1175_v31, 16  ;;  %v1187_v49 = vshll.u32 %v1176_v35, 16 }
  0x70   : > { %1164 = vmatpush.bf16.msra.mxu3 %v1921_v60  ;;  %1138 = vmatpush.bf16.msra.mxu1 %v1917_v61  ;;  %v2073_v60 = vor.u32 %v2186_v53, %v2070_v54  ;;  %v1996_v61 = vld [vmem:[#allocation3 + $0x240] sm:$0xf]  ;;  %v2161_v53 = vld [vmem:[#allocation3 + $0x204] sm:$0xf0]  ;;  %v2160_v54 = vld [vmem:[#allocation3 + $0x204] sm:$0xf] }
  0x71   : > { %v1997_v4 = vor.u32 %v2169_v62, %v1996_v61  ;;  %v1965_v61 = vor.u32 %v2161_v53, %v1964_v52  ;;  %v2028_v62 = vld [vmem:[#allocation3 + $0x280] sm:$0xf]  ;;  %v1189_v1 = vrot.slane %v1187_v49, 1 }
  0x73   : > { %1126 = vmatpush.bf16.msra.mxu0 %v1845_v5  ;;  %1152 = vmatpush.bf16.msra.mxu2 %v1849_v6  ;;  %v2060_v5 = vld [vmem:[#allocation3 + $0x2c0] sm:$0xf]  ;;  %v2185_v6 = vld [vmem:[#allocation3 + $0x2c4] sm:$0xf0] }
  0x74   : > { %1165 = vmatpush.bf16.msra.mxu3 %v1913_v11  ;;  %1139 = vmatpush.bf16.msra.mxu1 %v1909_v12  ;;  %v2167_v11 = vld [vmem:[#allocation3 + $0x234] sm:$0xf0]  ;;  %v2166_v12 = vld [vmem:[#allocation3 + $0x234] sm:$0xf]  ;;  %v2061_v16 = vor.u32 %v2185_v6, %v2060_v5  ;;  %v1190_v6 = vor.u32 %v1189_v1, %v1185_v0 }
  0x75   : > { %v1989_v18 = vor.u32 %v2167_v11, %v1988_v10  ;;  %v1993_v22 = vor.u32 %v2166_v12, %v1990_v13 }
  0x77   : > { %1127 = vmatpush.bf16.msra.mxu0 %v1837_v23  ;;  %1153 = vmatpush.bf16.msra.mxu2 %v1841_v24  ;;  %v2057_v23 = vor.u32 %v2182_v14, %v2054_v15  ;;  %v1980_v24 = vld [vmem:[#allocation3 + $0x220] sm:$0xf] }
  0x78   : > { %1166 = vmatpush.bf16.msra.mxu3 %v1905_v28  ;;  %1140 = vmatpush.bf16.msra.mxu1 %v1901_v38  ;;  %v2180_v28 = vld [vmem:[#allocation3 + $0x2a4] sm:$0xf]  ;;  %v1981_v32 = vor.u32 %v2165_v25, %v1980_v24  ;;  %v1972_v38 = vld [vmem:[#allocation3 + $0x210] sm:$0xf] }
  0x79   : > { %v1973_v46 = vor.u32 %v2163_v39, %v1972_v38 }
  0x7a   : > { %1154 = vmatmul.bf16.vlgmr.msra.gmra.mxu2 %v956_v41  ;;  %1128 = vmatmul.bf16.vlgmr.msra.gmra.mxu0 %v956_v41  ;;  %v1974_v41 = vld [vmem:[#allocation3 + $0x218] sm:$0xf0] }
  0x7b   : > { %1353 = vmatpush.bf16.msrb.mxu0 %v2021_v29  ;;  %1379 = vmatpush.bf16.msrb.mxu2 %v2025_v33  ;;  %v2046_v29 = vld [vmem:[#allocation3 + $0x2a8] sm:$0xf0]  ;;  %v2044_v33 = vld [vmem:[#allocation3 + $0x2a0] sm:$0xf]  ;;  %v1977_v50 = vor.u32 %v2162_v40, %v1974_v41 }
  0x7c   : > { %1392 = vmatpush.bf16.msrb.mxu3 %v2089_v34  ;;  %1366 = vmatpush.bf16.msrb.mxu1 %v2085_v42  ;;  %v2181_v34 = vld [vmem:[#allocation3 + $0x2a4] sm:$0xf0]  ;;  %v2049_v37 = vor.u32 %v2180_v28, %v2046_v29  ;;  %v2178_v42 = vld [vmem:[#allocation3 + $0x294] sm:$0xf] }
  0x7d   : > { %1167 = vmatmul.bf16.vlgmr.msra.gmra.mxu3 %v957_v43  ;;  %1141 = vmatmul.bf16.vlgmr.msra.gmra.mxu1 %v957_v43  ;;  %v2038_v43 = vld [vmem:[#allocation3 + $0x298] sm:$0xf0] }
  0x7e   : > { %v2041_v51 = vor.u32 %v2178_v42, %v2038_v43 }
  0x7f   : > { %1354 = vmatpush.bf16.msrb.mxu0 %v2013_v44  ;;  %1380 = vmatpush.bf16.msrb.mxu2 %v2017_v47  ;;  %v2045_v44 = vor.u32 %v2181_v34, %v2044_v33  ;;  %v2036_v47 = vld [vmem:[#allocation3 + $0x290] sm:$0xf] }
  0x80   : > { %1393 = vmatpush.bf16.msrb.mxu3 %v2081_v48  ;;  %1367 = vmatpush.bf16.msrb.mxu1 %v2077_v55  ;;  %v2179_v48 = vld [vmem:[#allocation3 + $0x294] sm:$0xf0]  ;;  %v1966_v55 = vld [vmem:[#allocation3 + $0x208] sm:$0xf0] }
  0x81   : > { %v2037_v58 = vor.u32 %v2179_v48, %v2036_v47  ;;  %v1969_v2 = vor.u32 %v2160_v54, %v1966_v55 }
  0x83   : > { %1355 = vmatpush.bf16.msrb.mxu0 %v2005_v56  ;;  %1381 = vmatpush.bf16.msrb.mxu2 %v2009_v59  ;;  %v2176_v56 = vld [vmem:[#allocation3 + $0x284] sm:$0xf]  ;;  %v1178_v59 = vshrl.u32 %v1175_v31, 16 }
  0x84   : > { %1394 = vmatpush.bf16.msrb.mxu3 %v2073_v60  ;;  %1368 = vmatpush.bf16.msrb.mxu1 %v2069_v3  ;;  %v1182_v60 = vrot.slane %v1180_v45, 1  ;;  %v2033_v3 = vor.u32 %v2176_v56, %v2030_v57 }
  0x86   : > { %v1183_v5 = vor.u32 %v1182_v60, %v1178_v59 }
  0x87   : > { %1356 = vmatpush.bf16.msrb.mxu0 %v1997_v4  ;;  %1382 = vmatpush.bf16.msrb.mxu2 %v2001_v8  ;;  %v2029_v4 = vor.u32 %v2177_v63, %v2028_v62 }
  0x88   : > { %1395 = vmatpush.bf16.msrb.mxu3 %v2065_v9  ;;  %1369 = vmatpush.bf16.msrb.mxu1 %v2061_v16 }
  0x8b   : > { %1357 = vmatpush.bf16.msrb.mxu0 %v1989_v18  ;;  %1383 = vmatpush.bf16.msrb.mxu2 %v1993_v22 }
  0x8c   : > { %1396 = vmatpush.bf16.msrb.mxu3 %v2057_v23  ;;  %1370 = vmatpush.bf16.msrb.mxu1 %v2053_v30 }
  0x8f   : > { %1358 = vmatpush.bf16.msrb.mxu0 %v1981_v32  ;;  %1384 = vmatpush.bf16.msrb.mxu2 %v1985_v36 }
  0x90   : > { %1397 = vmatpush.bf16.msrb.mxu3 %v2049_v37  ;;  %1371 = vmatpush.bf16.msrb.mxu1 %v2045_v44 }
  0x93   : > { %1359 = vmatpush.bf16.msrb.mxu0 %v1973_v46  ;;  %1385 = vmatpush.bf16.msrb.mxu2 %v1977_v50 }
  0x94   : > { %1398 = vmatpush.bf16.msrb.mxu3 %v2041_v51  ;;  %1372 = vmatpush.bf16.msrb.mxu1 %v2037_v58 }
  0x97   : > { %1360 = vmatpush.bf16.msrb.mxu0 %v1965_v61  ;;  %1386 = vmatpush.bf16.msrb.mxu2 %v1969_v2 }
  0x98   : > { %1399 = vmatpush.bf16.msrb.mxu3 %v2033_v3  ;;  %1373 = vmatpush.bf16.msrb.mxu1 %v2029_v4 }
  0x9a   : > { %1361 = vmatmul.bf16.vlgmr.msrb.gmra.mxu0 %v1183_v5  ;;  %1387 = vmatmul.bf16.vlgmr.msrb.gmra.mxu2 %v1183_v5 }
  0x9b   : > { %1400 = vmatmul.bf16.vlgmr.msrb.gmra.mxu3 %v1190_v6  ;;  %1374 = vmatmul.bf16.vlgmr.msrb.gmra.mxu1 %v1190_v6 }
  0xd6   : > { %v578_v7 = vpop.f32.mrf.mxu0 }
  0xd7   : > { %v591_v8 = vpop.f32.mrf.mxu1 }
  0xd8   : > { %v592_v16 = vadd.f32 %v591_v8, %v578_v7 }
  0xdc   : > { %v604_v9 = vpop.f32.mrf.mxu2 }
  0xdd   : > { %v617_v10 = vpop.f32.mrf.mxu3 }
  0xde   : > { %v580_v11 = vpop.f32.mrf.mxu0  ;;  %v618_v18 = vadd.f32 %v617_v10, %v604_v9 }
  0xdf   : > { %v593_v12 = vpop.f32.mrf.mxu1 }
  0xe4   : > { %v606_v13 = vpop.f32.mrf.mxu2 }
  0xe5   : > { %v619_v14 = vpop.f32.mrf.mxu3 }
  0xe6   : > { %v797_v15 = vpop.f32.mrf.mxu0 }
  0xe7   : > { %v810_v17 = vpop.f32.mrf.mxu1  ;;  %v798_v19 = vadd.f32 %v797_v15, %v592_v16 }
  0xe9   : > { %v811_v24 = vadd.f32 %v810_v17, %v798_v19 }
  0xeb   : > { %v856_v40 = vmul.f32 %v811_v24, %v811_v24  ;;  %v840_v45 = vsel %vm263_vm0, %v811_v24, 0.0 }
  0xec   : > { %v823_v20 = vpop.f32.mrf.mxu2  ;;  %v841_v51 = vrot.slane %v840_v45, 4 }
  0xed   : > { %v824_v21 = vadd.f32 %v823_v20, %v618_v18  ;;  %v836_v22 = vpop.f32.mrf.mxu3  ;;  %v858_v47 = vsel %vm263_vm0, %v856_v40, 0.0 }
  0xee   : > { %v799_v23 = vpop.f32.mrf.mxu0  ;;  %v859_v53 = vrot.slane %v858_v47, 4  ;;  %v842_v62 = vadd.f32 %v841_v51, %v840_v45 }
  0xef   : > { %v837_v25 = vadd.f32 %v836_v22, %v824_v21  ;;  %v812_v26 = vpop.f32.mrf.mxu1 }
  0xf0   : > { %v860_v5 = vadd.f32 %v859_v53, %v858_v47  ;;  %v843_v11 = vrot.slane %v842_v62, 2 }
  0xf1   : > { %v874_v27 = vpack.c.bf16 %v837_v25, %v811_v24  ;;  %v857_v41 = vmul.f32 %v837_v25, %v837_v25  ;;  %v847_v42 = vsel %vm263_vm0, %v837_v25, 0.0 }
  0xf2   : > { %v848_v48 = vrot.slane %v847_v42, 4  ;;  %v861_v18 = vrot.slane %v860_v5, 2 }
  0xf3   : > { %v876_v28 = vrot.slane %v874_v27, 2  ;;  %v865_v49 = vsel %vm263_vm0, %v857_v41, 0.0 }
  0xf4   : > { %v825_v29 = vpop.f32.mrf.mxu2  ;;  %v866_v54 = vrot.slane %v865_v49, 4  ;;  %v849_v55 = vadd.f32 %v848_v48, %v847_v42  ;;  %v1453_v48 = vlaneseq }
  0xf5   : > { %v880_v30 = vsel %vm877_vm8, %v874_v27, %v876_v28  ;;  %v838_v31 = vpop.f32.mrf.mxu3  ;;  %v844_v27 = vadd.f32 %v843_v11, %v842_v62 }
  0xf6   : > { %882 = vst [vmem:[%s2404_s13] sm:$0xf] %v880_v30  ;;  %v867_v2 = vadd.f32 %v866_v54, %v865_v49  ;;  %v850_v6 = vrot.slane %v849_v55, 2 }
  0xf7   : > { %v1129_v32 = vpop.f32.mrf.mxu0 }
  0xf8   : > { %v868_v15 = vrot.slane %v867_v2, 2  ;;  %v851_v19 = vadd.f32 %v850_v6, %v849_v55 }
  0xfa   : > { %v1142_v33 = vpop.f32.mrf.mxu1  ;;  %v869_v29 = vadd.f32 %v868_v15, %v867_v2 }
  0xfb   : > { %v1143_v43 = vadd.f32 %v1142_v33, %v1129_v32  ;;  %v862_v33 = vadd.f32 %v861_v18, %v860_v5 }
  0xfd   : > { %v1155_v34 = vpop.f32.mrf.mxu2 }
  0xff   : > { %v1131_v36 = vpop.f32.mrf.mxu0 }
 0x100   : > { %v1168_v35 = vpop.f32.mrf.mxu3 }
 0x101   : > { %v1169_v56 = vadd.f32 %v1168_v35, %v1155_v34  ;;  %v852_v34 = vrot.slane %v851_v19, 1 }
 0x102   : > { %v1144_v37 = vpop.f32.mrf.mxu1 }
 0x105   : > { %v1157_v38 = vpop.f32.mrf.mxu2 }
 0x106   : > { %v845_v38 = vrot.slane %v844_v27, 1 }
 0x108   : > { %v1170_v39 = vpop.f32.mrf.mxu3  ;;  %v846_v49 = vadd.f32 %v845_v38, %v844_v27 }
 0x109   : > { %v870_v39 = vrot.slane %v869_v29, 1 }
 0x117   : > { %v1362_v44 = vpop.f32.mrf.mxu0 }
 0x118   : > { %v1363_v46 = vadd.f32 %v1362_v44, %v1143_v43  ;;  %v1375_v50 = vpop.f32.mrf.mxu1  ;;  %v863_v43 = vrot.slane %v862_v33, 1  ;;  %v853_v44 = vadd.f32 %v852_v34, %v851_v19 }
 0x11a   : > { %v1376_v52 = vadd.f32 %v1375_v50, %v1363_v46  ;;  %v871_v50 = vadd.f32 %v870_v39, %v869_v29  ;;  %v864_v54 = vadd.f32 %v863_v43, %v862_v33 }
 0x11c   : > { %v1405_v57 = vsel %vm263_vm0, %v1376_v52, 0.0  ;;  %v1421_v58 = vmul.f32 %v1376_v52, %v1376_v52 }
 0x11d   : > { %v1406_v59 = vrot.slane %v1405_v57, 4  ;;  %v1388_v60 = vpop.f32.mrf.mxu2 }
 0x11e   : > { %v1401_v61 = vpop.f32.mrf.mxu3  ;;  %v1423_v63 = vsel %vm263_vm0, %v1421_v58, 0.0  ;;  %v1389_v0 = vadd.f32 %v1388_v60, %v1169_v56 }
 0x11f   : > { %v1364_v1 = vpop.f32.mrf.mxu0  ;;  %v1407_v3 = vadd.f32 %v1406_v59, %v1405_v57  ;;  %v1424_v4 = vrot.slane %v1423_v63, 4 }
 0x120   : > { %v1402_v7 = vadd.f32 %v1401_v61, %v1389_v0  ;;  %v1377_v10 = vpop.f32.mrf.mxu1 }
 0x121   : > { %v1408_v8 = vrot.slane %v1407_v3, 2  ;;  %v1425_v9 = vadd.f32 %v1424_v4, %v1423_v63 }
 0x122   : > { %v1412_v12 = vsel %vm263_vm0, %v1402_v7, 0.0  ;;  %v1422_v13 = vmul.f32 %v1402_v7, %v1402_v7  ;;  %v1439_v14 = vpack.c.bf16 %v1402_v7, %v1376_v52 }
 0x123   : > { %v1426_v16 = vrot.slane %v1425_v9, 2  ;;  %v1413_v17 = vrot.slane %v1412_v12, 4  ;;  %v1409_v22 = vadd.f32 %v1408_v8, %v1407_v3 }
 0x124   : > { %v1430_v20 = vsel %vm263_vm0, %v1422_v13, 0.0  ;;  %v1441_v21 = vrot.slane %v1439_v14, 2  ;;  %vm1455_vm0 = vcmp.lt.s32.totalorder %v1453_v48, 256 }
 0x125   : > { %v1414_v23 = vadd.f32 %v1413_v17, %v1412_v12  ;;  %v1431_v24 = vrot.slane %v1430_v20, 4  ;;  %v1390_v25 = vpop.f32.mrf.mxu2  ;;  %v1427_v30 = vadd.f32 %v1426_v16, %v1425_v9  ;;  %v1410_v35 = vrot.slane %v1409_v22, 1 }
 0x126   : > { %v1403_v26 = vpop.f32.mrf.mxu3  ;;  %v1444_v28 = vsel %vm877_vm8, %v1439_v14, %v1441_v21 }
 0x127   : > { %v1415_v31 = vrot.slane %v1414_v23, 2  ;;  %v1432_v32 = vadd.f32 %v1431_v24, %v1430_v20  ;;  %1446 = vst [vmem:[%s2404_s13 + $0x4] sm:$0xf] %v1444_v28  ;;  %v1428_v40 = vrot.slane %v1427_v30, 1  ;;  %v1411_v45 = vadd.f32 %v1410_v35, %v1409_v22 }
 0x129   : > { %v1416_v36 = vadd.f32 %v1415_v31, %v1414_v23  ;;  %v1433_v37 = vrot.slane %v1432_v32, 2  ;;  %v1429_v51 = vadd.f32 %v1428_v40, %v1427_v30  ;;  %v1419_v55 = vadd.f32 %v1411_v45, %v846_v49 }
 0x12b   : > { %v1417_v41 = vrot.slane %v1416_v36, 1  ;;  %v1434_v42 = vadd.f32 %v1433_v37, %v1432_v32  ;;  %v1437_v58 = vadd.f32 %v1429_v51, %v864_v54 }
 0x12d   : > { %v1418_v46 = vadd.f32 %v1417_v41, %v1416_v36  ;;  %v1435_v47 = vrot.slane %v1434_v42, 1 }
 0x12f   : > { %v1420_v52 = vadd.f32 %v1418_v46, %v853_v44  ;;  %v1436_v53 = vadd.f32 %v1435_v47, %v1434_v42 }
 0x131   : > { %v1438_v56 = vadd.f32 %v1436_v53, %v871_v50  ;;  %v1449_v57 = vrot.slane %v1420_v52, 7 }
 0x133   : > { %v1451_v59 = vsel %vm276_vm1, %v1419_v55, %v1449_v57  ;;  %v1460_v60 = vrot.slane %v1438_v56, 7 }
 0x134   : > { %1457 = vst.msk [vmem:[%s254_s16] ss:$2 sm:$0x3] %vm1455_vm0, %v1451_v59 }
 0x135   : > { %v1461_v61 = vsel %vm276_vm1, %v1437_v58, %v1460_v60 }
 0x136   : > { %2090 = vst.msk [vmem:[%s254_s16 + $0x1] ss:$2 sm:$0x3] %vm1455_vm0, %v1461_v61 }
 0x137 PF: > { %s17_s18 = sadd.s32 1, %s2285_s18  }
 0x138   : > { %p14_p7 = scmp.ge.s32.totalorder %s17_s18, 4  }
 0x13a   :  { %16 = sbr.rel (!%p14_p7) target bundleno = 1 (0x1), region = 87 }
 0x13f   :  { %1502 = vsyncpa [#allocation4], 1 }
 0x140   :  { %1504 = vsyncpa [#allocation4 + $0x1], 1 }

// kernel: generator_forward.7
= control target key start
LH: loop header
LB: loop body
LE: loop exit
PB: predicated region body
PF: predicated region fallthrough
CT: control target
= control target key end

     0   :  { %9 = vsyncpa [#allocation4], 0  ;;  %s1548_s15 = smov 0   ;;  %s1666_s0 = inlined_call_operand.vmem [shape: bf16[2,16,256], index: 0, kind: input, shape index: {}]   ;;  %s1667_s1 = inlined_call_operand.vmem [shape: f32[1,256], index: 1, kind: input, shape index: {}]   ;;  %s1668_s2 = inlined_call_operand.vmem [shape: f32[1,256], index: 2, kind: input, shape index: {}]   ;;  %s1669_s3 = inlined_call_operand.hbm [shape: bf16[2,2,256,128], index: 3, kind: input, shape index: {}]   ;;  %s1670_s4 = inlined_call_operand.vmem [shape: f32[2,16,256], index: 4, kind: output, shape index: {}]  }
   0x1 LB: > { %s152_s18 = sshll.u32 %s1669_s3, 4  ;;  %s1557_s19 = sadd.s32 4294967295, %s1518_s15   ;;  %s1518_s15 = sphi %s1548_s15, %s15_s15   ;;  %s153_s18 = int_to_ptr.hbm [resolvable:$true] %s152_s18 }
   0x2   : > { %p1106_p0 = scmp.ge.s32.totalorder %s1518_s15, 1  ;;  %p135_p1 = scmp.lt.s32.totalorder %s1518_s15, 3 }
   0x3   : > { %p1457_p2 = scmp.eq.s32.totalorder %s1557_s19, 0  ;;  %s1520_s20 = smov [#allocation3]  }
   0x4   : > { %p136_p3 = pnand %p1106_p0, %p135_p1  ;;  %s154_s21 = sshll.u32 %s1520_s20, 4  ;;  %s155_s21 = int_to_ptr.vmem [resolvable:$true] %s154_s21 }
   0x5   : > { %s1521_s22 = smov 64   ;;  %s1522_s23 = smov 4  }
   0x6   : > { %p1453_p4 = pneg %p136_p3  ;;  %178 = sbr.rel (%p136_p3) target bundleno = 230 (0xe6), region = 36 }
   0x8   : > { %p1454_p5 = pnand %p1457_p2, %p1453_p4 }
   0xa   : > { %1456 = dma.hbm_to_vmem [thread:$0]  (!%p1454_p5), %s153_s18, 8192, %s155_s21, [#allocation4], %s1521_s22, %s1521_s22, %s1522_s23  }
   0xb   : > { %1513 = dma.done.wait (%p1457_p2), [#allocation4], 8192  }
   0xc   : > { %1515 = vsyncadd (%p1457_p2), [#allocation4], 4294959104  ;;  %p205_p6 = scmp.lt.s32.totalorder %s1557_s19, 1  ;;  %v1408_v0 = vld [vmem:[#allocation3 + $0xb8] sm:$0xff]  ;;  %v1407_v4 = vld [vmem:[#allocation3 + $0xb0] sm:$0xff]  ;;  %vm246_vm0 = vcmask 1040384  }
   0xd   : > { %v1416_v1 = vld [vmem:[#allocation3 + $0xf8] sm:$0xff]  ;;  %504 = vmatpush.bf16.msra.mxu0 %v1408_v0  ;;  %v1415_v5 = vld [vmem:[#allocation3 + $0xf0] sm:$0xff]  ;;  %vm247_vm1 = vsmask.f32 256  ;;  %vm249_vm2 = vcmask 1044484   ;;  %v1406_v8 = vld [vmem:[#allocation3 + $0xa8] sm:$0xff] }
   0xe   : > { %v1392_v2 = vld [vmem:[#allocation3 + $0x38] sm:$0xff]  ;;  %518 = vmatpush.bf16.msra.mxu1 %v1416_v1  ;;  %v1391_v6 = vld [vmem:[#allocation3 + $0x30] sm:$0xff]  ;;  %s1684_s19 = smov (!%p205_p6, %s1557_s19), 1  ;;  %vm250_vm3 = vsmask.f32 4352  ;;  %v1414_v9 = vld [vmem:[#allocation3 + $0xe8] sm:$0xff] }
   0xf   : > { %v1400_v3 = vld [vmem:[#allocation3 + $0x78] sm:$0xff]  ;;  %630 = vmatpush.bf16.msra.mxu2 %v1392_v2  ;;  %v1399_v7 = vld [vmem:[#allocation3 + $0x70] sm:$0xff]  ;;  %vm256_vm4 = vsmask.f32 7938  ;;  %vm1568_vm5 = vmand %vm246_vm0, %vm247_vm1  ;;  %vm258_vm6 = vsmask.f32 7954 }
  0x10   : > { %644 = vmatpush.bf16.msra.mxu3 %v1400_v3  ;;  %v1390_v11 = vld [vmem:[#allocation3 + $0x28] sm:$0xff]  ;;  %s1381_s24 = sshll.u32 %s1684_s19, 4  ;;  %vm1574_vm7 = vmand %vm249_vm2, %vm250_vm3  ;;  %v1405_v16 = vld [vmem:[#allocation3 + $0xa0] sm:$0xff]  ;;  %vm288_vm12 = vcmask 1043456   ;;  %vm290_vm13 = vcmask 1047556   ;;  %s1382_s6 = sshll.u32 %s1684_s19, 5 }
  0x11   : > { %505 = vmatpush.bf16.msra.mxu0 %v1407_v4  ;;  %v1398_v12 = vld [vmem:[#allocation3 + $0x68] sm:$0xff]  ;;  %vm1580_vm8 = vmand %vm246_vm0, %vm256_vm4  ;;  %v1413_v17 = vld [vmem:[#allocation3 + $0xe0] sm:$0xff]  ;;  %s209_s27 = scalar_lea.vmem %s1666_s0, %s1381_s24  ;;  %vm266_vm15 = vsmask.f32 4368  ;;  %s214_s9 = scalar_lea.vmem %s1670_s4, %s1382_s6 }
  0x12   : > { %519 = vmatpush.bf16.msra.mxu1 %v1415_v5  ;;  %vm1586_vm9 = vmand %vm249_vm2, %vm258_vm6  ;;  %v1389_v18 = vld [vmem:[#allocation3 + $0x20] sm:$0xff]  ;;  %v1404_v20 = vld [vmem:[#allocation3 + $0x98] sm:$0xff] }
  0x13   : > { %631 = vmatpush.bf16.msra.mxu2 %v1391_v6  ;;  %v1397_v19 = vld [vmem:[#allocation3 + $0x60] sm:$0xff]  ;;  %vm252_vm10 = vmor %vm1574_vm7, %vm1568_vm5  ;;  %v1412_v21 = vld [vmem:[#allocation3 + $0xd8] sm:$0xff] }
  0x14   : > { %645 = vmatpush.bf16.msra.mxu3 %v1399_v7  ;;  %vm260_vm11 = vmor %vm1586_vm9, %vm1580_vm8  ;;  %v1388_v22 = vld [vmem:[#allocation3 + $0x18] sm:$0xff]  ;;  %v216_v24 = vld [vmem:[%s209_s27] sm:$0xff] }
  0x15   : > { %506 = vmatpush.bf16.msra.mxu0 %v1406_v8  ;;  %v1396_v23 = vld [vmem:[#allocation3 + $0x58] sm:$0xff]  ;;  %v217_v25 = vld [vmem:[%s209_s27 + $0x8] sm:$0xff]  ;;  %v218_v26 = vunpack.c.l.bf16 %v216_v24  ;;  %v219_v27 = vunpack.c.h.bf16 %v216_v24  ;;  %v222_v30 = vld [vmem:[%s1667_s1] sm:$0x3] }
  0x16   : > { %520 = vmatpush.bf16.msra.mxu1 %v1414_v9  ;;  %v220_v28 = vunpack.c.l.bf16 %v217_v25  ;;  %v221_v29 = vunpack.c.h.bf16 %v217_v25  ;;  %v232_v31 = vld [vmem:[%s1668_s2] sm:$0x3]  ;;  %v224_v33 = vperm.slane %v222_v30, 0  ;;  %v225_v34 = vperm.slane %v222_v30, 1  ;;  %v261_v37 = vld [vmem:[#allocation2 + $0x10] sm:$0x11]  ;;  %vm1618_vm14 = vmand %vm288_vm12, %vm256_vm4 }
  0x17   : > { %632 = vmatpush.bf16.msra.mxu2 %v1390_v11  ;;  %v253_v32 = vld [vmem:[#allocation2] sm:$0x11]  ;;  %v234_v35 = vperm.slane %v232_v31, 0  ;;  %v235_v36 = vperm.slane %v232_v31, 1  ;;  %v262_v39 = vsel %vm260_vm11, 0, %v261_v37  ;;  %v1403_v44 = vld [vmem:[#allocation3 + $0x90] sm:$0xff]  ;;  %vm1623_vm0 = vmand %vm290_vm13, %vm258_vm6 }
  0x18   : > { %646 = vmatpush.bf16.msra.mxu3 %v1398_v12  ;;  %v254_v38 = vsel %vm252_vm10, 0, %v253_v32  ;;  %v228_v40 = vmul.f32 %v224_v33, %v218_v26  ;;  %v229_v41 = vmul.f32 %v225_v34, %v219_v27  ;;  %v230_v42 = vmul.f32 %v224_v33, %v220_v28  ;;  %v1411_v45 = vld [vmem:[#allocation3 + $0xd0] sm:$0xff]  ;;  %263 = vst [vmem:[#allocation2 + $0x10] sm:$0x11] %v262_v39  ;;  %v1402_v55 = vld [vmem:[#allocation3 + $0x88] sm:$0xff]  ;;  %v1401_v2 = vld [vmem:[#allocation3 + $0x80] sm:$0xff] }
  0x19   : > { %507 = vmatpush.bf16.msra.mxu0 %v1405_v16  ;;  %v231_v43 = vmul.f32 %v225_v34, %v221_v29  ;;  %255 = vst [vmem:[#allocation2] sm:$0x11] %v254_v38  ;;  %v1387_v46 = vld [vmem:[#allocation3 + $0x10] sm:$0xff]  ;;  %v1410_v56 = vld [vmem:[#allocation3 + $0xc8] sm:$0xff]  ;;  %v1409_v3 = vld [vmem:[#allocation3 + $0xc0] sm:$0xff]  ;;  %vm745_vm4 = vcmask 1046528  }
  0x1a   : > { %521 = vmatpush.bf16.msra.mxu1 %v1413_v17  ;;  %v1395_v47 = vld [vmem:[#allocation3 + $0x50] sm:$0xff]  ;;  %v238_v48 = vadd.f32 %v234_v35, %v228_v40  ;;  %v239_v49 = vadd.f32 %v235_v36, %v229_v41  ;;  %v240_v50 = vadd.f32 %v234_v35, %v230_v42  ;;  %v1386_v58 = vld [vmem:[#allocation3 + $0x8] sm:$0xff]  ;;  %v1385_v4 = vld [vmem:[#allocation3] sm:$0xff] }
  0x1b   : > { %633 = vmatpush.bf16.msra.mxu2 %v1389_v18  ;;  %v241_v51 = vadd.f32 %v235_v36, %v231_v43  ;;  %v1394_v59 = vld [vmem:[#allocation3 + $0x48] sm:$0xff]  ;;  %v1393_v7 = vld [vmem:[#allocation3 + $0x40] sm:$0xff]  ;;  %v1440_v8 = vld [vmem:[#allocation3 + $0x1b8] sm:$0xff] }
  0x1c   : > { %647 = vmatpush.bf16.msra.mxu3 %v1397_v19  ;;  %v242_v52 = vmax.f32 %v238_v48, 0.0  ;;  %v243_v53 = vmax.f32 %v239_v49, 0.0  ;;  %v244_v54 = vmax.f32 %v240_v50, 0.0  ;;  %v1448_v9 = vld [vmem:[#allocation3 + $0x1f8] sm:$0xff]  ;;  %vm292_vm2 = vmor %vm1623_vm0, %vm1618_vm14  ;;  %v1447_v24 = vld [vmem:[#allocation3 + $0x1f0] sm:$0xff] }
  0x1d   : > { %508 = vmatpush.bf16.msra.mxu0 %v1404_v20  ;;  %v245_v57 = vmax.f32 %v241_v51, 0.0  ;;  %v1424_v12 = vld [vmem:[#allocation3 + $0x138] sm:$0xff]  ;;  %vm267_vm3 = vmor %vm247_vm1, %vm266_vm15  ;;  %v1423_v27 = vld [vmem:[#allocation3 + $0x130] sm:$0xff]  ;;  %vm381_vm1 = vsmask.f32 7424 }
  0x1e   : > { %522 = vmatpush.bf16.msra.mxu1 %v1412_v21  ;;  %v264_v60 = vpack.c.bf16 %v243_v53, %v242_v52  ;;  %v1432_v16 = vld [vmem:[#allocation3 + $0x178] sm:$0xff]  ;;  %v1431_v28 = vld [vmem:[#allocation3 + $0x170] sm:$0xff]  ;;  %v1438_v29 = vld [vmem:[#allocation3 + $0x1a8] sm:$0xff] }
  0x1f   : > { %634 = vmatpush.bf16.msra.mxu2 %v1388_v22  ;;  %v265_v61 = vpack.c.bf16 %v245_v57, %v244_v54  ;;  %v297_v19 = vld [vmem:[#allocation2 + $0x10] sm:$0x11]  ;;  %v1446_v30 = vld [vmem:[#allocation3 + $0x1e8] sm:$0xff]  ;;  %v1437_v35 = vld [vmem:[#allocation3 + $0x1a0] sm:$0xff] }
  0x20   : > { %648 = vmatpush.bf16.msra.mxu3 %v1396_v23  ;;  %v269_v63 = vshrl.u32 %v264_v60, 16  ;;  %v272_v0 = vshll.u32 %v264_v60, 16  ;;  %v293_v15 = vld [vmem:[#allocation2] sm:$0xff]  ;;  %v1439_v23 = vld [vmem:[#allocation3 + $0x1b0] sm:$0xff]  ;;  %v1445_v38 = vld [vmem:[#allocation3 + $0x1e0] sm:$0xff] }
  0x21   : > { %509 = vmatpush.bf16.msra.mxu0 %v1403_v44  ;;  %v277_v5 = vshrl.u32 %v265_v61, 16  ;;  %v280_v6 = vshll.u32 %v265_v61, 16  ;;  %v1422_v31 = vld [vmem:[#allocation3 + $0x128] sm:$0xff]  ;;  %v1421_v44 = vld [vmem:[#allocation3 + $0x120] sm:$0xff]  ;;  %v1444_v57 = vld [vmem:[#allocation3 + $0x1d8] sm:$0xff] }
  0x22   : > { %523 = vmatpush.bf16.msra.mxu1 %v1411_v45  ;;  %v271_v11 = vrot.slane %v269_v63, 7  ;;  %v1430_v32 = vld [vmem:[#allocation3 + $0x168] sm:$0xff]  ;;  %v1429_v45 = vld [vmem:[#allocation3 + $0x160] sm:$0xff]  ;;  %v1420_v61 = vld [vmem:[#allocation3 + $0x118] sm:$0xff] }
  0x23   : > { %635 = vmatpush.bf16.msra.mxu2 %v1387_v46  ;;  %v279_v14 = vrot.slane %v277_v5, 7  ;;  %v1428_v62 = vld [vmem:[#allocation3 + $0x158] sm:$0xff] }
  0x24   : > { %649 = vmatpush.bf16.msra.mxu3 %v1395_v47  ;;  %v274_v17 = vor.u32 %v272_v0, %v271_v11  ;;  %v275_v18 = vrot.slane %v271_v11, 4  ;;  %v1427_v11 = vld [vmem:[#allocation3 + $0x150] sm:$0xff] }
  0x25   : > { %510 = vmatpush.bf16.msra.mxu0 %v1402_v55  ;;  %v282_v20 = vor.u32 %v280_v6, %v279_v14  ;;  %v284_v21 = vrot.slane %v279_v14, 4 }
  0x26   : > { %524 = vmatpush.bf16.msra.mxu1 %v1410_v56  ;;  %v294_v22 = vsel %vm292_vm2, %v274_v17, %v293_v15  ;;  %v1436_v56 = vld [vmem:[#allocation3 + $0x198] sm:$0xff] }
  0x27   : > { %636 = vmatpush.bf16.msra.mxu2 %v1386_v58  ;;  %v1633_v25 = vsel %vm267_vm3, %v275_v18, %v282_v20  ;;  %295 = vst [vmem:[#allocation2] sm:$0xff] %v294_v22  ;;  %v298_v26 = vsel %vm252_vm10, %v284_v21, %v297_v19  ;;  %v879_v10 = vunpack.c.l.b16 %v294_v22  ;;  %v880_v40 = vunpack.c.h.b16 %v294_v22  ;;  %v1434_v20 = vld [vmem:[#allocation3 + $0x188] sm:$0xff] }
  0x28   : > { %650 = vmatpush.bf16.msra.mxu3 %v1394_v59  ;;  %296 = vst [vmem:[#allocation2 + $0x8] sm:$0xff] %v1633_v25  ;;  %v737_v13 = vunpack.c.l.b16 %v1633_v25  ;;  %v738_v39 = vunpack.c.h.b16 %v1633_v25  ;;  %v1442_v21 = vld [vmem:[#allocation3 + $0x1c8] sm:$0xff] }
  0x29   : > { %511 = vmatpush.bf16.msra.mxu0 %v1401_v2  ;;  %299 = vst [vmem:[#allocation2 + $0x10] sm:$0x11] %v298_v26 }
  0x2a   : > { %525 = vmatpush.bf16.msra.mxu1 %v1409_v3  ;;  %v1645_v49 = vpack.c.b16 %v737_v13, %v879_v10  ;;  %v882_v58 = vpack.c.b16 %v738_v39, %v880_v40  ;;  %v1433_v10 = vld [vmem:[#allocation3 + $0x180] sm:$0xff] }
  0x2b   : > { %637 = vmatpush.bf16.msra.mxu2 %v1385_v4 }
  0x2c   : > { %651 = vmatpush.bf16.msra.mxu3 %v1393_v7  ;;  %v1435_v7 = vld [vmem:[#allocation3 + $0x190] sm:$0xff]  ;;  %v898_v17 = vshll.u32 %v882_v58, 16  ;;  %v896_v26 = vshrl.u32 %v882_v58, 16 }
  0x2d   : > { %850 = vmatpush.bf16.msrb.mxu0 %v1440_v8  ;;  %v1443_v8 = vld [vmem:[#allocation3 + $0x1d0] sm:$0xff] }
  0x2e   : > { %864 = vmatpush.bf16.msrb.mxu1 %v1448_v9  ;;  %v1117_v33 = vld [vmem:[#allocation2] sm:$0xf]  ;;  %v1383_v34 = vld [vmem:[#allocation2 + $0x4] sm:$0xf]  ;;  %v1419_v9 = vld [vmem:[#allocation3 + $0x110] sm:$0xff] }
  0x2f   : > { %1005 = vmatpush.bf16.msrb.mxu2 %v1424_v12  ;;  %v1384_v36 = vld [vmem:[#allocation2 + $0x4] sm:$0xf0]  ;;  %v1119_v37 = vld [vmem:[#allocation2 + $0x8] sm:$0xf0]  ;;  %v698_v12 = vld [vmem:[#allocation2] sm:$0xee] }
  0x30   : > { %1019 = vmatpush.bf16.msrb.mxu3 %v1432_v16  ;;  %v1118_v41 = vor.u32 %v1384_v36, %v1117_v33  ;;  %v1122_v42 = vor.u32 %v1383_v34, %v1119_v37  ;;  %v334_v43 = vld [vmem:[#allocation2 + $0x10] sm:$0x11]  ;;  %v886_v16 = vshll.u32 %v1645_v49, 16  ;;  %v735_v22 = vunpack.c.l.b16 %v698_v12  ;;  %v1441_v33 = vld [vmem:[#allocation3 + $0x1c0] sm:$0xff] }
  0x31   : > { %851 = vmatpush.bf16.msrb.mxu0 %v1439_v23  ;;  %v375_v46 = vunpack.c.l.b16 %v334_v43  ;;  %v376_v47 = vunpack.c.h.b16 %v334_v43  ;;  %v664_v48 = vld [vmem:[#allocation2 + $0x10] sm:$0x11]  ;;  %v736_v23 = vunpack.c.h.b16 %v698_v12  ;;  %v1417_v36 = vld [vmem:[#allocation3 + $0x100] sm:$0xff] }
  0x32   : > { %865 = vmatpush.bf16.msrb.mxu1 %v1447_v24  ;;  %638 = vmatmul.bf16.vlgmr.msra.gmra.mxu2 %v1118_v41  ;;  %v383_v50 = vshrl.u32 %v1118_v41, 16  ;;  %v385_v51 = vshll.u32 %v1118_v41, 16  ;;  %v395_v52 = vshrl.u32 %v1122_v42, 16  ;;  %v397_v53 = vshll.u32 %v1122_v42, 16  ;;  %v1425_v37 = vld [vmem:[#allocation3 + $0x140] sm:$0xff] }
  0x33   : > { %1006 = vmatpush.bf16.msrb.mxu2 %v1423_v27  ;;  %652 = vmatmul.bf16.vlgmr.msra.gmra.mxu3 %v1122_v42  ;;  %v379_v54 = vpack.c.b16 %v375_v46, %v375_v46  ;;  %v380_v55 = vpack.c.b16 %v376_v47, %v376_v47  ;;  %v739_v63 = vunpack.c.l.b16 %v664_v48  ;;  %v740_v0 = vunpack.c.h.b16 %v664_v48  ;;  %v1418_v27 = vld [vmem:[#allocation3 + $0x108] sm:$0xff] }
  0x34   : > { %1020 = vmatpush.bf16.msrb.mxu3 %v1431_v28  ;;  %v387_v59 = vrot.slane %v385_v51, 1  ;;  %v399_v60 = vrot.slane %v397_v53, 1  ;;  %v884_v24 = vshrl.u32 %v1645_v49, 16  ;;  %v1426_v28 = vld [vmem:[#allocation3 + $0x148] sm:$0xff]  ;;  %v741_v34 = vpack.c.b16 %v737_v13, %v735_v22 }
  0x35   : > { %852 = vmatpush.bf16.msrb.mxu0 %v1438_v29  ;;  %v390_v1 = vshll.u32 %v379_v54, 16  ;;  %v402_v2 = vshll.u32 %v380_v55, 16  ;;  %v743_v14 = vpack.c.b16 %v739_v63, %v739_v63  ;;  %v744_v15 = vpack.c.b16 %v740_v0, %v740_v0 }
  0x36   : > { %866 = vmatpush.bf16.msrb.mxu1 %v1446_v30  ;;  %v388_v3 = vor.u32 %v387_v59, %v383_v50  ;;  %v400_v4 = vor.u32 %v399_v60, %v395_v52  ;;  %v888_v29 = vrot.slane %v886_v16, 1  ;;  %v746_v43 = vrot.slane %v741_v34, 1 }
  0x37   : > { %1007 = vmatpush.bf16.msrb.mxu2 %v1422_v31  ;;  %v392_v5 = vrot.slane %v390_v1, 1  ;;  %v404_v6 = vrot.slane %v402_v2, 1  ;;  %v891_v30 = vshll.u32 %v743_v14, 16  ;;  %v900_v31 = vrot.slane %v898_v17, 1 }
  0x38   : > { %1021 = vmatpush.bf16.msrb.mxu3 %v1430_v32  ;;  %v903_v32 = vshll.u32 %v744_v15, 16  ;;  %v750_v46 = vrot.slane %v744_v15, 1 }
  0x39   : > { %853 = vmatpush.bf16.msrb.mxu0 %v1437_v35  ;;  %v393_v18 = vsel %vm381_vm1, %v388_v3, %v392_v5  ;;  %v405_v19 = vsel %vm381_vm1, %v400_v4, %v404_v6  ;;  %v742_v35 = vpack.c.b16 %v738_v39, %v736_v23  ;;  %v893_v40 = vrot.slane %v891_v30, 1 }
  0x3a   : > { %867 = vmatpush.bf16.msrb.mxu1 %v1445_v38  ;;  %512 = vmatmul.bf16.vlgmr.msra.gmra.mxu0 %v393_v18  ;;  %v889_v38 = vor.u32 %v888_v29, %v884_v24  ;;  %v901_v41 = vor.u32 %v900_v31, %v896_v26  ;;  %v905_v42 = vrot.slane %v903_v32, 1 }
  0x3b   : > { %1008 = vmatpush.bf16.msrb.mxu2 %v1421_v44  ;;  %526 = vmatmul.bf16.vlgmr.msra.gmra.mxu1 %v405_v19  ;;  %v747_v44 = vrot.slane %v743_v14, 1 }
  0x3c   : > { %1022 = vmatpush.bf16.msrb.mxu3 %v1429_v45  ;;  %v749_v45 = vrot.slane %v742_v35, 1  ;;  %v894_v25 = vsel %vm381_vm1, %v889_v38, %v893_v40  ;;  %v906_v13 = vsel %vm381_vm1, %v901_v41, %v905_v42 }
  0x3d   : > { %854 = vmatpush.bf16.msrb.mxu0 %v1436_v56  ;;  %v748_v39 = vsel %vm745_vm4, %v746_v43, %v747_v44 }
  0x3e   : > { %868 = vmatpush.bf16.msrb.mxu1 %v1444_v57  ;;  %v751_v47 = vsel %vm745_vm4, %v749_v45, %v750_v46 }
  0x3f   : > { %1009 = vmatpush.bf16.msrb.mxu2 %v1420_v61 }
  0x40   : > { %1023 = vmatpush.bf16.msrb.mxu3 %v1428_v62 }
  0x41   : > { %855 = vmatpush.bf16.msrb.mxu0 %v1435_v7 }
  0x42   : > { %869 = vmatpush.bf16.msrb.mxu1 %v1443_v8 }
  0x43   : > { %1010 = vmatpush.bf16.msrb.mxu2 %v1419_v9 }
  0x44   : > { %1024 = vmatpush.bf16.msrb.mxu3 %v1427_v11 }
  0x45   : > { %856 = vmatpush.bf16.msrb.mxu0 %v1434_v20 }
  0x46   : > { %870 = vmatpush.bf16.msrb.mxu1 %v1442_v21 }
  0x47   : > { %1011 = vmatpush.bf16.msrb.mxu2 %v1418_v27 }
  0x48   : > { %1025 = vmatpush.bf16.msrb.mxu3 %v1426_v28 }
  0x49   : > { %857 = vmatpush.bf16.msrb.mxu0 %v1433_v10 }
  0x4a   : > { %871 = vmatpush.bf16.msrb.mxu1 %v1441_v33 }
  0x4b   : > { %1012 = vmatpush.bf16.msrb.mxu2 %v1417_v36 }
  0x4c   : > { %1026 = vmatpush.bf16.msrb.mxu3 %v1425_v37  ;;  %858 = vmatmul.bf16.vlgmr.msrb.gmra.mxu0 %v748_v39 }
  0x4d   : > { %872 = vmatmul.bf16.vlgmr.msrb.gmra.mxu1 %v751_v47 }
  0x4e   : > { %1013 = vmatmul.bf16.vlgmr.msrb.gmra.mxu2 %v894_v25 }
  0x4f   : > { %1027 = vmatmul.bf16.vlgmr.msrb.gmra.mxu3 %v906_v13 }
  0xb5   : > { %v639_v48 = vpop.f32.mrf.mxu2 }
  0xb6   : > { %v653_v49 = vpop.f32.mrf.mxu3 }
  0xb7   : > { %v513_v50 = vpop.f32.mrf.mxu0 }
  0xb8   : > { %v527_v51 = vpop.f32.mrf.mxu1 }
  0xb9   : > { %v528_v52 = vadd.f32 %v527_v51, %v513_v50 }
  0xbb   : > { %v640_v53 = vadd.f32 %v639_v48, %v528_v52 }
  0xbd   : > { %v654_v54 = vadd.f32 %v653_v49, %v640_v53  ;;  %v641_v55 = vpop.f32.mrf.mxu2 }
  0xbe   : > { %v655_v59 = vpop.f32.mrf.mxu3 }
  0xbf   : > { %1470 = vtanh.f32 %v654_v54  ;;  %v515_v56 = vpop.f32.mrf.mxu0 }
  0xc0   : > { %v529_v57 = vpop.f32.mrf.mxu1 }
  0xc1   : > { %v530_v58 = vadd.f32 %v529_v57, %v515_v56 }
  0xc3   : > { %v642_v60 = vadd.f32 %v641_v55, %v530_v58 }
  0xc5   : > { %v1471_v61 = vpop.eup %1470  ;;  %v656_v62 = vadd.f32 %v655_v59, %v642_v60 }
  0xc6   : > { %660 = vst [vmem:[%s214_s9] sm:$0xff] %v1471_v61 }
  0xc7   : > { %1472 = vtanh.f32 %v656_v62 }
  0xc9   : > { %v859_v63 = vpop.f32.mrf.mxu0 }
  0xca   : > { %v873_v0 = vpop.f32.mrf.mxu1 }
  0xcb   : > { %v874_v1 = vadd.f32 %v873_v0, %v859_v63 }
  0xcd   : > { %v1473_v5 = vpop.eup %1472 }
  0xce   : > { %661 = vst [vmem:[%s214_s9 + $0x10] sm:$0xff] %v1473_v5 }
  0xd1   : > { %v1014_v2 = vpop.f32.mrf.mxu2  ;;  %v861_v7 = vpop.f32.mrf.mxu0 }
  0xd2   : > { %v1028_v3 = vpop.f32.mrf.mxu3  ;;  %v1015_v4 = vadd.f32 %v1014_v2, %v874_v1  ;;  %v875_v8 = vpop.f32.mrf.mxu1 }
  0xd3   : > { %v876_v9 = vadd.f32 %v875_v8, %v861_v7 }
  0xd4   : > { %v1029_v6 = vadd.f32 %v1028_v3, %v1015_v4 }
  0xd6   : > { %1474 = vtanh.f32 %v1029_v6 }
  0xd9   : > { %v1016_v11 = vpop.f32.mrf.mxu2 }
  0xda   : > { %v1017_v12 = vadd.f32 %v1016_v11, %v876_v9  ;;  %v1030_v14 = vpop.f32.mrf.mxu3 }
  0xdc   : > { %v1475_v15 = vpop.eup %1474  ;;  %v1031_v16 = vadd.f32 %v1030_v14, %v1017_v12 }
  0xdd   : > { %1035 = vst [vmem:[%s214_s9 + $0x8] sm:$0xff] %v1475_v15 }
  0xde   : > { %1476 = vtanh.f32 %v1031_v16 }
  0xe4   : > { %v1477_v17 = vpop.eup %1476 }
  0xe5   : > { %1036 = vst [vmem:[%s214_s9 + $0x18] sm:$0xff] %v1477_v17 }
  0xe6 PF: > { %s15_s15 = sadd.s32 1, %s1518_s15  }
  0xe7   : > { %p12_p7 = scmp.ge.s32.totalorder %s15_s15, 4  }
  0xe9   :  { %14 = sbr.rel (!%p12_p7) target bundleno = 1 (0x1), region = 74 }
  0xee   :  { %1058 = vsyncpa [#allocation4], 1 }
  0xef   :  { %1060 = vsyncpa [#allocation4 + $0x1], 1 }

// kernel: generator_forward.6
= control target key start
LH: loop header
LB: loop body
LE: loop exit
PB: predicated region body
PF: predicated region fallthrough
CT: control target
= control target key end

     0   :  { %11 = vsyncpa [#allocation4], 0  ;;  %s2299_s18 = smov 0   ;;  %s2440_s0 = inlined_call_operand.vmem [shape: bf16[2,8,256], index: 0, kind: input, shape index: {}]   ;;  %s2441_s1 = inlined_call_operand.vmem [shape: f32[1,256], index: 1, kind: input, shape index: {}]   ;;  %s2442_s2 = inlined_call_operand.vmem [shape: f32[1,256], index: 2, kind: input, shape index: {}]   ;;  %s2443_s3 = inlined_call_operand.hbm [shape: bf16[2,2,256,256], index: 3, kind: input, shape index: {}]   ;;  %s2444_s4 = inlined_call_operand.vmem [shape: bf16[2,8,512], index: 4, kind: output, shape index: {0}]   ;;  %s2445_s5 = inlined_call_operand.vmem [shape: f32[2,2,256], index: 5, kind: output, shape index: {1}]  }
   0x1 LB: > { %s180_s21 = sshll.u32 %s2443_s3, 4  ;;  %s2308_s22 = sadd.s32 4294967295, %s2264_s18   ;;  %s2264_s18 = sphi %s2299_s18, %s17_s18   ;;  %s181_s21 = int_to_ptr.hbm [resolvable:$true] %s180_s21 }
   0x2   : > { %p1546_p0 = scmp.ge.s32.totalorder %s2264_s18, 1  ;;  %p163_p1 = scmp.lt.s32.totalorder %s2264_s18, 3 }
   0x3   : > { %p2211_p2 = scmp.eq.s32.totalorder %s2308_s22, 0  ;;  %s2266_s23 = smov [#allocation3]  }
   0x4   : > { %p164_p3 = pnand %p1546_p0, %p163_p1  ;;  %s182_s24 = sshll.u32 %s2266_s23, 4  ;;  %s183_s24 = int_to_ptr.vmem [resolvable:$true] %s182_s24 }
   0x5   : > { %s2267_s25 = smov 128   ;;  %s2268_s26 = smov 8  }
   0x6   : > { %p2207_p4 = pneg %p164_p3  ;;  %206 = sbr.rel (%p164_p3) target bundleno = 300 (0x12c), region = 36 }
   0x8   : > { %p2208_p5 = pnand %p2211_p2, %p2207_p4 }
   0xa   : > { %2210 = dma.hbm_to_vmem [thread:$0]  (!%p2208_p5), %s181_s21, 16384, %s183_s24, [#allocation4], %s2267_s25, %s2267_s25, %s2268_s26  }
   0xb   : > { %2259 = dma.done.wait (%p2211_p2), [#allocation4], 16384  }
   0xc   : > { %2261 = vsyncadd (%p2211_p2), [#allocation4], 4294950912  ;;  %v1615_v0 = vld [vmem:[#allocation3 + $0x170] sm:$0xf]  ;;  %v2122_v1 = vld [vmem:[#allocation3 + $0x174] sm:$0xf0] }
   0xd   : > { %v2121_v2 = vld [vmem:[#allocation3 + $0x174] sm:$0xf]  ;;  %v1616_v3 = vor.u32 %v2122_v1, %v1615_v0  ;;  %v1617_v4 = vld [vmem:[#allocation3 + $0x178] sm:$0xf0]  ;;  %v1679_v9 = vld [vmem:[#allocation3 + $0x1f0] sm:$0xf] }
   0xe   : > { %v2137_v5 = vld [vmem:[#allocation3 + $0x1f4] sm:$0xf]  ;;  %v1681_v6 = vld [vmem:[#allocation3 + $0x1f8] sm:$0xf0]  ;;  %v1620_v7 = vor.u32 %v2121_v2, %v1617_v4  ;;  %v2138_v10 = vld [vmem:[#allocation3 + $0x1f4] sm:$0xf0] }
   0xf   : > { %v1684_v8 = vor.u32 %v2137_v5, %v1681_v6  ;;  %v1607_v11 = vld [vmem:[#allocation3 + $0x160] sm:$0xf]  ;;  %568 = vmatpush.bf16.msra.mxu0 %v1616_v3  ;;  %v1680_v12 = vor.u32 %v2138_v10, %v1679_v9  ;;  %v2120_v13 = vld [vmem:[#allocation3 + $0x164] sm:$0xf0]  ;;  %v2119_v14 = vld [vmem:[#allocation3 + $0x164] sm:$0xf] }
  0x10   : > { %v1609_v15 = vld [vmem:[#allocation3 + $0x168] sm:$0xf0]  ;;  %594 = vmatpush.bf16.msra.mxu2 %v1620_v7  ;;  %v1608_v16 = vor.u32 %v2120_v13, %v1607_v11  ;;  %v2135_v18 = vld [vmem:[#allocation3 + $0x1e4] sm:$0xf]  ;;  %v1671_v20 = vld [vmem:[#allocation3 + $0x1e0] sm:$0xf] }
  0x11   : > { %607 = vmatpush.bf16.msra.mxu3 %v1684_v8  ;;  %v1612_v17 = vor.u32 %v2119_v14, %v1609_v15  ;;  %v1673_v19 = vld [vmem:[#allocation3 + $0x1e8] sm:$0xf0]  ;;  %581 = vmatpush.bf16.msra.mxu1 %v1680_v12  ;;  %v2136_v22 = vld [vmem:[#allocation3 + $0x1e4] sm:$0xf0]  ;;  %v1599_v23 = vld [vmem:[#allocation3 + $0x150] sm:$0xf] }
  0x12   : > { %v1676_v21 = vor.u32 %v2135_v18, %v1673_v19  ;;  %v2118_v24 = vld [vmem:[#allocation3 + $0x154] sm:$0xf0]  ;;  %v1672_v25 = vor.u32 %v2136_v22, %v1671_v20  ;;  %v2117_v26 = vld [vmem:[#allocation3 + $0x154] sm:$0xf]  ;;  %v1601_v27 = vld [vmem:[#allocation3 + $0x158] sm:$0xf0] }
  0x13   : > { %v2133_v28 = vld [vmem:[#allocation3 + $0x1d4] sm:$0xf]  ;;  %569 = vmatpush.bf16.msra.mxu0 %v1608_v16  ;;  %v1600_v29 = vor.u32 %v2118_v24, %v1599_v23  ;;  %v1665_v30 = vld [vmem:[#allocation3 + $0x1d8] sm:$0xf0]  ;;  %v1663_v31 = vld [vmem:[#allocation3 + $0x1d0] sm:$0xf]  ;;  %v1604_v33 = vor.u32 %v2117_v26, %v1601_v27 }
  0x14   : > { %v2134_v32 = vld [vmem:[#allocation3 + $0x1d4] sm:$0xf0]  ;;  %595 = vmatpush.bf16.msra.mxu2 %v1612_v17  ;;  %v1668_v34 = vor.u32 %v2133_v28, %v1665_v30  ;;  %v1591_v35 = vld [vmem:[#allocation3 + $0x140] sm:$0xf]  ;;  %v2116_v36 = vld [vmem:[#allocation3 + $0x144] sm:$0xf0] }
  0x15   : > { %608 = vmatpush.bf16.msra.mxu3 %v1676_v21  ;;  %v2115_v37 = vld [vmem:[#allocation3 + $0x144] sm:$0xf]  ;;  %582 = vmatpush.bf16.msra.mxu1 %v1672_v25  ;;  %v1664_v38 = vor.u32 %v2134_v32, %v1663_v31  ;;  %v1593_v39 = vld [vmem:[#allocation3 + $0x148] sm:$0xf0]  ;;  %v1655_v42 = vld [vmem:[#allocation3 + $0x1c0] sm:$0xf]  ;;  %v1592_v44 = vor.u32 %v2116_v36, %v1591_v35 }
  0x16   : > { %v2131_v40 = vld [vmem:[#allocation3 + $0x1c4] sm:$0xf]  ;;  %v1657_v41 = vld [vmem:[#allocation3 + $0x1c8] sm:$0xf0]  ;;  %v2132_v43 = vld [vmem:[#allocation3 + $0x1c4] sm:$0xf0]  ;;  %v1596_v45 = vor.u32 %v2115_v37, %v1593_v39 }
  0x17   : > { %570 = vmatpush.bf16.msra.mxu0 %v1600_v29  ;;  %p240_p6 = scmp.lt.s32.totalorder %s2308_s22, 1  ;;  %v1660_v46 = vor.u32 %v2131_v40, %v1657_v41  ;;  %v1583_v47 = vld [vmem:[#allocation3 + $0x130] sm:$0xf]  ;;  %v2114_v48 = vld [vmem:[#allocation3 + $0x134] sm:$0xf0]  ;;  %v1656_v50 = vor.u32 %v2132_v43, %v1655_v42  ;;  %vm277_vm0 = vcmask 1040384  }
  0x18   : > { %596 = vmatpush.bf16.msra.mxu2 %v1604_v33  ;;  %v2113_v49 = vld [vmem:[#allocation3 + $0x134] sm:$0xf]  ;;  %v1585_v51 = vld [vmem:[#allocation3 + $0x138] sm:$0xf0]  ;;  %v1647_v54 = vld [vmem:[#allocation3 + $0x1b0] sm:$0xf]  ;;  %v1584_v56 = vor.u32 %v2114_v48, %v1583_v47 }
  0x19   : > { %609 = vmatpush.bf16.msra.mxu3 %v1668_v34  ;;  %583 = vmatpush.bf16.msra.mxu1 %v1664_v38  ;;  %v2129_v52 = vld [vmem:[#allocation3 + $0x1b4] sm:$0xf]  ;;  %v1649_v53 = vld [vmem:[#allocation3 + $0x1b8] sm:$0xf0]  ;;  %v2130_v55 = vld [vmem:[#allocation3 + $0x1b4] sm:$0xf0]  ;;  %v1588_v57 = vor.u32 %v2113_v49, %v1585_v51 }
  0x1a   : > { %s2457_s22 = smov (!%p240_p6, %s2308_s22), 1  ;;  %v1652_v58 = vor.u32 %v2129_v52, %v1649_v53  ;;  %v1575_v59 = vld [vmem:[#allocation3 + $0x120] sm:$0xf]  ;;  %v2112_v60 = vld [vmem:[#allocation3 + $0x124] sm:$0xf0]  ;;  %v1648_v62 = vor.u32 %v2130_v55, %v1647_v54  ;;  %vm280_vm2 = vcmask 1044484  }
  0x1b   : > { %571 = vmatpush.bf16.msra.mxu0 %v1592_v44  ;;  %v2111_v61 = vld [vmem:[#allocation3 + $0x124] sm:$0xf]  ;;  %v1577_v63 = vld [vmem:[#allocation3 + $0x128] sm:$0xf0]  ;;  %v1639_v2 = vld [vmem:[#allocation3 + $0x1a0] sm:$0xf]  ;;  %v1576_v4 = vor.u32 %v2112_v60, %v1575_v59 }
  0x1c   : > { %597 = vmatpush.bf16.msra.mxu2 %v1596_v45  ;;  %v2127_v0 = vld [vmem:[#allocation3 + $0x1a4] sm:$0xf]  ;;  %v1641_v1 = vld [vmem:[#allocation3 + $0x1a8] sm:$0xf0]  ;;  %v2128_v3 = vld [vmem:[#allocation3 + $0x1a4] sm:$0xf0]  ;;  %v1580_v6 = vor.u32 %v2111_v61, %v1577_v63 }
  0x1d   : > { %610 = vmatpush.bf16.msra.mxu3 %v1660_v46  ;;  %584 = vmatpush.bf16.msra.mxu1 %v1656_v50  ;;  %v1567_v5 = vld [vmem:[#allocation3 + $0x110] sm:$0xf]  ;;  %s2072_s27 = sshll.u32 %s2457_s22, 3  ;;  %v1644_v7 = vor.u32 %v2127_v0, %v1641_v1  ;;  %v2110_v8 = vld [vmem:[#allocation3 + $0x114] sm:$0xf0]  ;;  %v1640_v11 = vor.u32 %v2128_v3, %v1639_v2  ;;  %vm306_vm11 = vcmask 1043456  }
  0x1e   : > { %v2109_v9 = vld [vmem:[#allocation3 + $0x114] sm:$0xf]  ;;  %v1569_v10 = vld [vmem:[#allocation3 + $0x118] sm:$0xf0]  ;;  %v1631_v14 = vld [vmem:[#allocation3 + $0x190] sm:$0xf]  ;;  %v1568_v18 = vor.u32 %v2110_v8, %v1567_v5  ;;  %s244_s30 = scalar_lea.vmem %s2440_s0, %s2072_s27 }
  0x1f   : > { %572 = vmatpush.bf16.msra.mxu0 %v1584_v56  ;;  %v2125_v12 = vld [vmem:[#allocation3 + $0x194] sm:$0xf]  ;;  %v1633_v13 = vld [vmem:[#allocation3 + $0x198] sm:$0xf0]  ;;  %v2126_v15 = vld [vmem:[#allocation3 + $0x194] sm:$0xf0]  ;;  %v1572_v23 = vor.u32 %v2109_v9, %v1569_v10 }
  0x20   : > { %598 = vmatpush.bf16.msra.mxu2 %v1588_v57  ;;  %v1559_v16 = vld [vmem:[#allocation3 + $0x100] sm:$0xf]  ;;  %v2108_v17 = vld [vmem:[#allocation3 + $0x104] sm:$0xf0]  ;;  %v2107_v19 = vld [vmem:[#allocation3 + $0x104] sm:$0xf]  ;;  %v1636_v24 = vor.u32 %v2125_v12, %v1633_v13  ;;  %v1632_v28 = vor.u32 %v2126_v15, %v1631_v14 }
  0x21   : > { %611 = vmatpush.bf16.msra.mxu3 %v1652_v58  ;;  %585 = vmatpush.bf16.msra.mxu1 %v1648_v62  ;;  %v1561_v20 = vld [vmem:[#allocation3 + $0x108] sm:$0xf0]  ;;  %v2123_v21 = vld [vmem:[#allocation3 + $0x184] sm:$0xf]  ;;  %v1743_v25 = vld [vmem:[#allocation3 + $0x70] sm:$0xf]  ;;  %v1560_v35 = vor.u32 %v2108_v17, %v1559_v16 }
  0x22   : > { %v1625_v22 = vld [vmem:[#allocation3 + $0x188] sm:$0xf0]  ;;  %v2090_v26 = vld [vmem:[#allocation3 + $0x74] sm:$0xf0]  ;;  %v2089_v27 = vld [vmem:[#allocation3 + $0x74] sm:$0xf]  ;;  %v1564_v39 = vor.u32 %v2107_v19, %v1561_v20 }
  0x23   : > { %573 = vmatpush.bf16.msra.mxu0 %v1576_v4  ;;  %v1745_v29 = vld [vmem:[#allocation3 + $0x78] sm:$0xf0]  ;;  %v2105_v30 = vld [vmem:[#allocation3 + $0xf4] sm:$0xf]  ;;  %v1623_v32 = vld [vmem:[#allocation3 + $0x180] sm:$0xf]  ;;  %v1628_v40 = vor.u32 %v2123_v21, %v1625_v22  ;;  %v1744_v44 = vor.u32 %v2090_v26, %v1743_v25 }
  0x24   : > { %599 = vmatpush.bf16.msra.mxu2 %v1580_v6  ;;  %v1809_v31 = vld [vmem:[#allocation3 + $0xf8] sm:$0xf0]  ;;  %v2124_v33 = vld [vmem:[#allocation3 + $0x184] sm:$0xf0]  ;;  %v1807_v34 = vld [vmem:[#allocation3 + $0xf0] sm:$0xf]  ;;  %v1748_v45 = vor.u32 %v2089_v27, %v1745_v29 }
  0x25   : > { %612 = vmatpush.bf16.msra.mxu3 %v1644_v7  ;;  %586 = vmatpush.bf16.msra.mxu1 %v1640_v11  ;;  %v2106_v36 = vld [vmem:[#allocation3 + $0xf4] sm:$0xf0]  ;;  %v2320_v37 = vld [vmem:[#allocation3 + $0x60] sm:$0xf]  ;;  %v2088_v38 = vld [vmem:[#allocation3 + $0x64] sm:$0xf0]  ;;  %v1812_v49 = vor.u32 %v2105_v30, %v1809_v31  ;;  %v1624_v50 = vor.u32 %v2124_v33, %v1623_v32 }
  0x26   : > { %v2087_v41 = vld [vmem:[#allocation3 + $0x64] sm:$0xf]  ;;  %v1737_v42 = vld [vmem:[#allocation3 + $0x68] sm:$0xf0]  ;;  %v2324_v47 = vld [vmem:[#allocation3 + $0xe0] sm:$0xf]  ;;  %v1808_v51 = vor.u32 %v2106_v36, %v1807_v34  ;;  %v1736_v52 = vor.u32 %v2088_v38, %v2320_v37 }
  0x27   : > { %574 = vmatpush.bf16.msra.mxu0 %v1568_v18  ;;  %v2322_v43 = vld [vmem:[#allocation3 + $0xe4] sm:$0xf]  ;;  %v1801_v46 = vld [vmem:[#allocation3 + $0xe8] sm:$0xf0]  ;;  %v2326_v48 = vld [vmem:[#allocation3 + $0xe4] sm:$0xf0]  ;;  %v1740_v55 = vor.u32 %v2087_v41, %v1737_v42 }
  0x28   : > { %600 = vmatpush.bf16.msra.mxu2 %v1572_v23  ;;  %v2334_v53 = vld [vmem:[#allocation3 + $0x50] sm:$0xf]  ;;  %v2336_v54 = vld [vmem:[#allocation3 + $0x54] sm:$0xf0]  ;;  %v1804_v56 = vor.u32 %v2322_v43, %v1801_v46  ;;  %v1800_v57 = vor.u32 %v2326_v48, %v2324_v47  ;;  %v2085_v58 = vld [vmem:[#allocation3 + $0x54] sm:$0xf] }
  0x29   : > { %613 = vmatpush.bf16.msra.mxu3 %v1636_v24  ;;  %587 = vmatpush.bf16.msra.mxu1 %v1632_v28  ;;  %v1729_v59 = vld [vmem:[#allocation3 + $0x58] sm:$0xf0]  ;;  %v256_v60 = vld [vmem:[%s244_s30] sm:$0xff]  ;;  %v2102_v6 = vld [vmem:[#allocation3 + $0xd4] sm:$0xf0]  ;;  %v1728_v13 = vor.u32 %v2336_v54, %v2334_v53  ;;  %vm308_vm13 = vcmask 1047556  }
  0x2a   : > { %v259_v61 = vld [vmem:[%s2441_s1] sm:$0x3]  ;;  %v2101_v63 = vld [vmem:[#allocation3 + $0xd4] sm:$0xf]  ;;  %v1793_v0 = vld [vmem:[#allocation3 + $0xd8] sm:$0xf0]  ;;  %v257_v1 = vunpack.c.l.bf16 %v256_v60  ;;  %v258_v2 = vunpack.c.h.bf16 %v256_v60  ;;  %v1732_v18 = vor.u32 %v2085_v58, %v1729_v59 }
  0x2b   : > { %575 = vmatpush.bf16.msra.mxu0 %v1560_v35  ;;  %v267_v62 = vld [vmem:[%s2442_s2] sm:$0x3]  ;;  %v261_v3 = vperm.slane %v259_v61, 0  ;;  %v262_v4 = vperm.slane %v259_v61, 1  ;;  %vm278_vm1 = vsmask.f32 256  ;;  %v1796_v23 = vor.u32 %v2101_v63, %v1793_v0 }
  0x2c   : > { %601 = vmatpush.bf16.msra.mxu2 %v1564_v39  ;;  %v1791_v5 = vld [vmem:[#allocation3 + $0xd0] sm:$0xf]  ;;  %v269_v7 = vperm.slane %v267_v62, 0  ;;  %v270_v8 = vperm.slane %v267_v62, 1  ;;  %vm2348_vm3 = vmand %vm277_vm0, %vm278_vm1  ;;  %vm281_vm4 = vsmask.f32 4352 }
  0x2d   : > { %614 = vmatpush.bf16.msra.mxu3 %v1628_v40  ;;  %588 = vmatpush.bf16.msra.mxu1 %v1624_v50  ;;  %v265_v9 = vmul.f32 %v261_v3, %v257_v1  ;;  %v266_v10 = vmul.f32 %v262_v4, %v258_v2  ;;  %v284_v12 = vld [vmem:[#allocation2] sm:$0x11]  ;;  %vm287_vm5 = vsmask.f32 7938  ;;  %v1719_v14 = vld [vmem:[#allocation3 + $0x40] sm:$0xf]  ;;  %vm2355_vm6 = vmand %vm280_vm2, %vm281_vm4  ;;  %v1792_v28 = vor.u32 %v2102_v6, %v1791_v5 }
  0x2e   : > { %v2084_v15 = vld [vmem:[#allocation3 + $0x44] sm:$0xf0]  ;;  %v2083_v16 = vld [vmem:[#allocation3 + $0x44] sm:$0xf]  ;;  %vm289_vm7 = vsmask.f32 7954  ;;  %vm283_vm8 = vmor %vm2355_vm6, %vm2348_vm3 }
  0x2f   : > { %784 = vmatpush.bf16.msrb.mxu0 %v1744_v44  ;;  %v1721_v19 = vld [vmem:[#allocation3 + $0x48] sm:$0xf0]  ;;  %v2099_v20 = vld [vmem:[#allocation3 + $0xc4] sm:$0xf]  ;;  %v273_v21 = vadd.f32 %v269_v7, %v265_v9  ;;  %v274_v22 = vadd.f32 %v270_v8, %v266_v10  ;;  %v285_v25 = vsel %vm283_vm8, 0, %v284_v12  ;;  %vm2370_vm9 = vmand %vm277_vm0, %vm287_vm5  ;;  %v1720_v33 = vor.u32 %v2084_v15, %v1719_v14  ;;  %s2073_s10 = sshll.u32 %s2457_s22, 4 }
  0x30   : > { %810 = vmatpush.bf16.msrb.mxu2 %v1748_v45  ;;  %v1785_v24 = vld [vmem:[#allocation3 + $0xc8] sm:$0xf0]  ;;  %v292_v27 = vld [vmem:[#allocation2 + $0x8] sm:$0x11]  ;;  %286 = vst [vmem:[#allocation2] sm:$0x11] %v285_v25  ;;  %vm290_vm10 = vmand %vm280_vm2, %vm289_vm7  ;;  %v1724_v34 = vor.u32 %v2083_v16, %v1721_v19  ;;  %s2427_s13 = scalar_lea.vmem %s2444_s4, %s2073_s10 }
  0x31   : > { %823 = vmatpush.bf16.msrb.mxu3 %v1812_v49  ;;  %797 = vmatpush.bf16.msrb.mxu1 %v1808_v51  ;;  %v275_v29 = vmax.f32 %v273_v21, 0.0  ;;  %v276_v30 = vmax.f32 %v274_v22, 0.0  ;;  %v1783_v31 = vld [vmem:[#allocation3 + $0xc0] sm:$0xf]  ;;  %v2100_v32 = vld [vmem:[#allocation3 + $0xc4] sm:$0xf0]  ;;  %vm291_vm12 = vmor %vm290_vm10, %vm2370_vm9  ;;  %v1788_v39 = vor.u32 %v2099_v20, %v1785_v24 }
  0x32   : > { %v293_v35 = vsel %vm291_vm12, 0, %v292_v27  ;;  %v1711_v37 = vld [vmem:[#allocation3 + $0x30] sm:$0xf]  ;;  %v2082_v38 = vld [vmem:[#allocation3 + $0x34] sm:$0xf0]  ;;  %vm2380_vm14 = vmand %vm306_vm11, %vm287_vm5  ;;  %v1784_v43 = vor.u32 %v2100_v32, %v1783_v31  ;;  %s2074_s14 = sshll.u32 %s2457_s22, 2 }
  0x33   : > { %785 = vmatpush.bf16.msrb.mxu0 %v1736_v52  ;;  %v295_v36 = vpack.c.bf16 %v276_v30, %v275_v29  ;;  %294 = vst [vmem:[#allocation2 + $0x8] sm:$0x11] %v293_v35  ;;  %v2081_v41 = vld [vmem:[#allocation3 + $0x34] sm:$0xf]  ;;  %v1713_v42 = vld [vmem:[#allocation3 + $0x38] sm:$0xf0]  ;;  %vm2386_vm15 = vmand %vm308_vm13, %vm289_vm7  ;;  %v1712_v53 = vor.u32 %v2082_v38, %v1711_v37  ;;  %s254_s17 = scalar_lea.vmem %s2445_s5, %s2074_s14 }
  0x34   : > { %811 = vmatpush.bf16.msrb.mxu2 %v1740_v55  ;;  %v2097_v47 = vld [vmem:[#allocation3 + $0xb4] sm:$0xf]  ;;  %v1777_v48 = vld [vmem:[#allocation3 + $0xb8] sm:$0xf0]  ;;  %v1775_v49 = vld [vmem:[#allocation3 + $0xb0] sm:$0xf]  ;;  %v1716_v54 = vor.u32 %v2081_v41, %v1713_v42 }
  0x35   : > { %824 = vmatpush.bf16.msrb.mxu3 %v1804_v56  ;;  %798 = vmatpush.bf16.msrb.mxu1 %v1800_v57  ;;  %v297_v44 = vshrl.u32 %v295_v36, 16  ;;  %v300_v45 = vshll.u32 %v295_v36, 16  ;;  %v2098_v50 = vld [vmem:[#allocation3 + $0xb4] sm:$0xf0]  ;;  %v1703_v51 = vld [vmem:[#allocation3 + $0x20] sm:$0xf]  ;;  %vm310_vm1 = vmor %vm2386_vm15, %vm2380_vm14  ;;  %v1780_v58 = vor.u32 %v2097_v47, %v1777_v48 }
  0x36   : > { %v2080_v55 = vld [vmem:[#allocation3 + $0x24] sm:$0xf0]  ;;  %v2079_v56 = vld [vmem:[#allocation3 + $0x24] sm:$0xf]  ;;  %v1705_v59 = vld [vmem:[#allocation3 + $0x28] sm:$0xf0]  ;;  %v1776_v62 = vor.u32 %v2098_v50, %v1775_v49 }
  0x37   : > { %786 = vmatpush.bf16.msrb.mxu0 %v1728_v13  ;;  %v299_v52 = vrot.slane %v297_v44, 7  ;;  %v311_v57 = vld [vmem:[#allocation2] sm:$0xff]  ;;  %v2095_v63 = vld [vmem:[#allocation3 + $0xa4] sm:$0xf]  ;;  %v1769_v0 = vld [vmem:[#allocation3 + $0xa8] sm:$0xf0]  ;;  %v1704_v5 = vor.u32 %v2080_v55, %v1703_v51  ;;  %v1708_v6 = vor.u32 %v2079_v56, %v1705_v59 }
  0x38   : > { %812 = vmatpush.bf16.msrb.mxu2 %v1732_v18  ;;  %v1767_v1 = vld [vmem:[#allocation3 + $0xa0] sm:$0xf]  ;;  %v2096_v2 = vld [vmem:[#allocation3 + $0xa4] sm:$0xf0]  ;;  %v1695_v7 = vld [vmem:[#allocation3 + $0x10] sm:$0xf]  ;;  %v1772_v10 = vor.u32 %v2095_v63, %v1769_v0 }
  0x39   : > { %825 = vmatpush.bf16.msrb.mxu3 %v1796_v23  ;;  %799 = vmatpush.bf16.msrb.mxu1 %v1792_v28  ;;  %v302_v60 = vor.u32 %v300_v45, %v299_v52  ;;  %v303_v61 = vrot.slane %v299_v52, 4  ;;  %v2078_v8 = vld [vmem:[#allocation3 + $0x14] sm:$0xf0]  ;;  %v2077_v12 = vld [vmem:[#allocation3 + $0x14] sm:$0xf]  ;;  %v1768_v14 = vor.u32 %v2096_v2, %v1767_v1 }
  0x3a   : > { %v314_v4 = vld [vmem:[#allocation2 + $0x8] sm:$0x11]  ;;  %v2093_v15 = vld [vmem:[#allocation3 + $0x94] sm:$0xf]  ;;  %v1759_v18 = vld [vmem:[#allocation3 + $0x90] sm:$0xf]  ;;  %v1696_v20 = vor.u32 %v2078_v8, %v1695_v7 }
  0x3b   : > { %787 = vmatpush.bf16.msrb.mxu0 %v1720_v33  ;;  %v312_v3 = vsel %vm310_vm1, %v302_v60, %v311_v57  ;;  %v315_v9 = vsel %vm283_vm8, %v303_v61, %v314_v4  ;;  %v1697_v13 = vld [vmem:[#allocation3 + $0x18] sm:$0xf0]  ;;  %v2094_v19 = vld [vmem:[#allocation3 + $0x94] sm:$0xf0]  ;;  %v1687_v17 = vld [vmem:[#allocation3] sm:$0xf] }
  0x3c   : > { %813 = vmatpush.bf16.msrb.mxu2 %v1724_v34  ;;  %313 = vst [vmem:[#allocation2] sm:$0xff] %v312_v3  ;;  %v1761_v16 = vld [vmem:[#allocation3 + $0x98] sm:$0xf0]  ;;  %v1700_v21 = vor.u32 %v2077_v12, %v1697_v13  ;;  %v2076_v22 = vld [vmem:[#allocation3 + $0x4] sm:$0xf0]  ;;  %v1760_v25 = vor.u32 %v2094_v19, %v1759_v18  ;;  %v2399_v30 = vunpack.c.l.b16 %v312_v3  ;;  %v2401_v31 = vunpack.c.h.b16 %v312_v3 }
  0x3d   : > { %826 = vmatpush.bf16.msrb.mxu3 %v1788_v39  ;;  %800 = vmatpush.bf16.msrb.mxu1 %v1784_v43  ;;  %316 = vst [vmem:[#allocation2 + $0x8] sm:$0x11] %v315_v9  ;;  %v1764_v11 = vor.u32 %v2093_v15, %v1761_v16  ;;  %v2075_v23 = vld [vmem:[#allocation3 + $0x4] sm:$0xf]  ;;  %v1689_v24 = vld [vmem:[#allocation3 + $0x8] sm:$0xf0]  ;;  %v1688_v32 = vor.u32 %v2076_v22, %v1687_v17 }
  0x3e   : > { %v2091_v26 = vld [vmem:[#allocation3 + $0x84] sm:$0xf]  ;;  %v1753_v27 = vld [vmem:[#allocation3 + $0x88] sm:$0xf0]  ;;  %v1751_v28 = vld [vmem:[#allocation3 + $0x80] sm:$0xf]  ;;  %v1692_v33 = vor.u32 %v2075_v23, %v1689_v24 }
  0x3f   : > { %788 = vmatpush.bf16.msrb.mxu0 %v1712_v53  ;;  %v2092_v29 = vld [vmem:[#allocation3 + $0x84] sm:$0xf0]  ;;  %v1756_v35 = vor.u32 %v2091_v26, %v1753_v27  ;;  %v1871_v41 = vld [vmem:[#allocation3 + $0x370] sm:$0xf]  ;;  %v2186_v42 = vld [vmem:[#allocation3 + $0x374] sm:$0xf0] }
  0x40   : > { %814 = vmatpush.bf16.msrb.mxu2 %v1716_v54  ;;  %v1752_v38 = vor.u32 %v2092_v29, %v1751_v28  ;;  %v2185_v47 = vld [vmem:[#allocation3 + $0x374] sm:$0xf]  ;;  %v1873_v48 = vld [vmem:[#allocation3 + $0x378] sm:$0xf0]  ;;  %v1935_v53 = vld [vmem:[#allocation3 + $0x3f0] sm:$0xf]  ;;  %v1872_v57 = vor.u32 %v2186_v42, %v1871_v41 }
  0x41   : > { %827 = vmatpush.bf16.msrb.mxu3 %v1780_v58  ;;  %801 = vmatpush.bf16.msrb.mxu1 %v1776_v62  ;;  %v2201_v49 = vld [vmem:[#allocation3 + $0x3f4] sm:$0xf]  ;;  %v1937_v50 = vld [vmem:[#allocation3 + $0x3f8] sm:$0xf0]  ;;  %v2202_v54 = vld [vmem:[#allocation3 + $0x3f4] sm:$0xf0]  ;;  %v1876_v58 = vor.u32 %v2185_v47, %v1873_v48 }
  0x42   : > { %v1863_v59 = vld [vmem:[#allocation3 + $0x360] sm:$0xf]  ;;  %v2184_v60 = vld [vmem:[#allocation3 + $0x364] sm:$0xf0]  ;;  %v1940_v61 = vor.u32 %v2201_v49, %v1937_v50  ;;  %v1936_v62 = vor.u32 %v2202_v54, %v1935_v53  ;;  %v2183_v63 = vld [vmem:[#allocation3 + $0x364] sm:$0xf] }
  0x43   : > { %789 = vmatpush.bf16.msrb.mxu0 %v1704_v5  ;;  %v1865_v0 = vld [vmem:[#allocation3 + $0x368] sm:$0xf0]  ;;  %v2199_v1 = vld [vmem:[#allocation3 + $0x3e4] sm:$0xf]  ;;  %v1927_v3 = vld [vmem:[#allocation3 + $0x3e0] sm:$0xf]  ;;  %v1864_v5 = vor.u32 %v2184_v60, %v1863_v59 }
  0x44   : > { %815 = vmatpush.bf16.msrb.mxu2 %v1708_v6  ;;  %v350_v34 = vld [vmem:[#allocation2 + $0x8] sm:$0x11]  ;;  %v1929_v2 = vld [vmem:[#allocation3 + $0x3e8] sm:$0xf0]  ;;  %v2200_v4 = vld [vmem:[#allocation3 + $0x3e4] sm:$0xf0]  ;;  %v1868_v6 = vor.u32 %v2183_v63, %v1865_v0 }
  0x45   : > { %828 = vmatpush.bf16.msrb.mxu3 %v1772_v10  ;;  %802 = vmatpush.bf16.msrb.mxu1 %v1768_v14  ;;  %v388_v36 = vunpack.c.l.b16 %v350_v34  ;;  %v389_v37 = vunpack.c.h.b16 %v350_v34  ;;  %v1855_v7 = vld [vmem:[#allocation3 + $0x350] sm:$0xf]  ;;  %v2182_v8 = vld [vmem:[#allocation3 + $0x354] sm:$0xf0]  ;;  %v1932_v9 = vor.u32 %v2199_v1, %v1929_v2  ;;  %v1928_v10 = vor.u32 %v2200_v4, %v1927_v3  ;;  %v2181_v12 = vld [vmem:[#allocation3 + $0x354] sm:$0xf] }
  0x46   : > { %v1857_v13 = vld [vmem:[#allocation3 + $0x358] sm:$0xf0]  ;;  %v2197_v14 = vld [vmem:[#allocation3 + $0x3d4] sm:$0xf]  ;;  %v1919_v16 = vld [vmem:[#allocation3 + $0x3d0] sm:$0xf]  ;;  %v1856_v19 = vor.u32 %v2182_v8, %v1855_v7 }
  0x47   : > { %790 = vmatpush.bf16.msrb.mxu0 %v1696_v20  ;;  %v390_v39 = vpack.c.b16 %v388_v36, %v2399_v30  ;;  %v391_v40 = vpack.c.b16 %v389_v37, %v2401_v31  ;;  %v1921_v15 = vld [vmem:[#allocation3 + $0x3d8] sm:$0xf0]  ;;  %v2198_v18 = vld [vmem:[#allocation3 + $0x3d4] sm:$0xf0]  ;;  %v1860_v20 = vor.u32 %v2181_v12, %v1857_v13  ;;  %v2180_v17 = vld [vmem:[#allocation3 + $0x344] sm:$0xf0] }
  0x48   : > { %816 = vmatpush.bf16.msrb.mxu2 %v1700_v21  ;;  %v1847_v21 = vld [vmem:[#allocation3 + $0x340] sm:$0xf]  ;;  %v1920_v22 = vor.u32 %v2198_v18, %v1919_v16  ;;  %v2179_v23 = vld [vmem:[#allocation3 + $0x344] sm:$0xf]  ;;  %v1849_v24 = vld [vmem:[#allocation3 + $0x348] sm:$0xf0] }
  0x49   : > { %829 = vmatpush.bf16.msrb.mxu3 %v1764_v11  ;;  %803 = vmatpush.bf16.msrb.mxu1 %v1760_v25  ;;  %v393_v43 = vshrl.u32 %v390_v39, 16  ;;  %v395_v44 = vshll.u32 %v390_v39, 16  ;;  %v400_v45 = vshrl.u32 %v391_v40, 16  ;;  %v402_v46 = vshll.u32 %v391_v40, 16  ;;  %v2195_v25 = vld [vmem:[#allocation3 + $0x3c4] sm:$0xf] }
  0x4a   : > { %v1924_v11 = vor.u32 %v2197_v14, %v1921_v15  ;;  %v1913_v26 = vld [vmem:[#allocation3 + $0x3c8] sm:$0xf0]  ;;  %v1911_v27 = vld [vmem:[#allocation3 + $0x3c0] sm:$0xf]  ;;  %v2196_v28 = vld [vmem:[#allocation3 + $0x3c4] sm:$0xf0]  ;;  %v1848_v29 = vor.u32 %v2180_v17, %v1847_v21  ;;  %v620_v40 = vpack.c.b16 %v2399_v30, %v2399_v30 }
  0x4b   : > { %791 = vmatpush.bf16.msrb.mxu0 %v1688_v32  ;;  %v397_v51 = vrot.slane %v395_v44, 1  ;;  %v404_v52 = vrot.slane %v402_v46, 1  ;;  %v1852_v32 = vor.u32 %v2179_v23, %v1849_v24  ;;  %v2178_v34 = vld [vmem:[#allocation3 + $0x334] sm:$0xf0]  ;;  %v1912_v36 = vor.u32 %v2196_v28, %v1911_v27  ;;  %v2177_v37 = vld [vmem:[#allocation3 + $0x334] sm:$0xf] }
  0x4c   : > { %817 = vmatpush.bf16.msrb.mxu2 %v1692_v33  ;;  %v1839_v33 = vld [vmem:[#allocation3 + $0x330] sm:$0xf]  ;;  %v2193_v39 = vld [vmem:[#allocation3 + $0x3b4] sm:$0xf]  ;;  %v1905_v41 = vld [vmem:[#allocation3 + $0x3b8] sm:$0xf0]  ;;  %v621_v44 = vpack.c.b16 %v2401_v31, %v2401_v31 }
  0x4d   : > { %830 = vmatpush.bf16.msrb.mxu3 %v1756_v35  ;;  %804 = vmatpush.bf16.msrb.mxu1 %v1752_v38  ;;  %v398_v55 = vor.u32 %v397_v51, %v393_v43  ;;  %v405_v56 = vor.u32 %v404_v52, %v400_v45  ;;  %v1916_v35 = vor.u32 %v2195_v25, %v1913_v26  ;;  %v1841_v38 = vld [vmem:[#allocation3 + $0x338] sm:$0xf0]  ;;  %v1903_v42 = vld [vmem:[#allocation3 + $0x3b0] sm:$0xf]  ;;  %v2194_v43 = vld [vmem:[#allocation3 + $0x3b4] sm:$0xf0] }
  0x4e   : > { %v1840_v45 = vor.u32 %v2178_v34, %v1839_v33  ;;  %v1844_v46 = vor.u32 %v2177_v37, %v1841_v38  ;;  %v1831_v47 = vld [vmem:[#allocation3 + $0x320] sm:$0xf]  ;;  %v2176_v48 = vld [vmem:[#allocation3 + $0x324] sm:$0xf0]  ;;  %v1908_v49 = vor.u32 %v2193_v39, %v1905_v41  ;;  %v1904_v50 = vor.u32 %v2194_v43, %v1903_v42  ;;  %v2175_v51 = vld [vmem:[#allocation3 + $0x324] sm:$0xf] }
  0x4f   : > { %602 = vmatmul.bf16.vlgmr.msra.gmra.mxu2 %v398_v55  ;;  %576 = vmatmul.bf16.vlgmr.msra.gmra.mxu0 %v398_v55  ;;  %v1833_v52 = vld [vmem:[#allocation3 + $0x328] sm:$0xf0]  ;;  %v2191_v53 = vld [vmem:[#allocation3 + $0x3a4] sm:$0xf]  ;;  %v1895_v55 = vld [vmem:[#allocation3 + $0x3a0] sm:$0xf] }
  0x50   : > { %615 = vmatmul.bf16.vlgmr.msra.gmra.mxu3 %v405_v56  ;;  %589 = vmatmul.bf16.vlgmr.msra.gmra.mxu1 %v405_v56  ;;  %v1897_v54 = vld [vmem:[#allocation3 + $0x3a8] sm:$0xf0]  ;;  %v2192_v56 = vld [vmem:[#allocation3 + $0x3a4] sm:$0xf0]  ;;  %v1836_v59 = vor.u32 %v2175_v51, %v1833_v52  ;;  %v2174_v60 = vld [vmem:[#allocation3 + $0x314] sm:$0xf0] }
  0x51   : > { %1109 = vmatpush.bf16.msra.mxu0 %v1872_v57  ;;  %1135 = vmatpush.bf16.msra.mxu2 %v1876_v58  ;;  %v1823_v57 = vld [vmem:[#allocation3 + $0x310] sm:$0xf]  ;;  %v1832_v58 = vor.u32 %v2176_v48, %v1831_v47  ;;  %v1900_v63 = vor.u32 %v2191_v53, %v1897_v54  ;;  %v1896_v0 = vor.u32 %v2192_v56, %v1895_v55  ;;  %v2173_v1 = vld [vmem:[#allocation3 + $0x314] sm:$0xf]  ;;  %v1825_v2 = vld [vmem:[#allocation3 + $0x318] sm:$0xf0] }
  0x52   : > { %1148 = vmatpush.bf16.msra.mxu3 %v1940_v61  ;;  %1122 = vmatpush.bf16.msra.mxu1 %v1936_v62  ;;  %v2409_v61 = vld [vmem:[#allocation2 + $0x8] sm:$0x11]  ;;  %v903_v62 = vld [vmem:[#allocation2] sm:$0xee]  ;;  %v1815_v12 = vld [vmem:[#allocation3 + $0x300] sm:$0xf] }
  0x53   : > { %v2189_v3 = vld [vmem:[#allocation3 + $0x394] sm:$0xf]  ;;  %v1889_v4 = vld [vmem:[#allocation3 + $0x398] sm:$0xf0]  ;;  %v939_v7 = vunpack.c.l.b16 %v903_v62  ;;  %v941_v8 = vunpack.c.l.b16 %v2409_v61  ;;  %v2172_v13 = vld [vmem:[#allocation3 + $0x304] sm:$0xf0]  ;;  %v940_v15 = vunpack.c.h.b16 %v903_v62  ;;  %v942_v16 = vunpack.c.h.b16 %v2409_v61 }
  0x54   : > { %v2171_v14 = vld [vmem:[#allocation3 + $0x304] sm:$0xf]  ;;  %v1892_v18 = vor.u32 %v2189_v3, %v1889_v4  ;;  %v1881_v17 = vld [vmem:[#allocation3 + $0x388] sm:$0xf0]  ;;  %v2153_v23 = vld [vmem:[#allocation3 + $0x274] sm:$0xf]  ;;  %v1816_v28 = vor.u32 %v2172_v13, %v1815_v12 }
  0x55   : > { %1110 = vmatpush.bf16.msra.mxu0 %v1864_v5  ;;  %1136 = vmatpush.bf16.msra.mxu2 %v1868_v6  ;;  %v1887_v5 = vld [vmem:[#allocation3 + $0x390] sm:$0xf]  ;;  %v2190_v6 = vld [vmem:[#allocation3 + $0x394] sm:$0xf0]  ;;  %v2187_v21 = vld [vmem:[#allocation3 + $0x384] sm:$0xf]  ;;  %v943_v27 = vpack.c.b16 %v941_v8, %v939_v7  ;;  %v944_v34 = vpack.c.b16 %v942_v16, %v940_v15 }
  0x56   : > { %1149 = vmatpush.bf16.msra.mxu3 %v1932_v9  ;;  %1123 = vmatpush.bf16.msra.mxu1 %v1928_v10  ;;  %v1824_v9 = vor.u32 %v2174_v60, %v1823_v57  ;;  %v1828_v10 = vor.u32 %v2173_v1, %v1825_v2  ;;  %v2001_v24 = vld [vmem:[#allocation3 + $0x278] sm:$0xf0]  ;;  %v2169_v25 = vld [vmem:[#allocation3 + $0x2f4] sm:$0xf]  ;;  %v2188_v33 = vld [vmem:[#allocation3 + $0x384] sm:$0xf0] }
  0x57   : > { %v2065_v26 = vld [vmem:[#allocation3 + $0x2f8] sm:$0xf0]  ;;  %v2063_v37 = vld [vmem:[#allocation3 + $0x2f0] sm:$0xf]  ;;  %v2170_v38 = vld [vmem:[#allocation3 + $0x2f4] sm:$0xf0] }
  0x58   : > { %v1991_v39 = vld [vmem:[#allocation3 + $0x260] sm:$0xf]  ;;  %v2068_v41 = vor.u32 %v2169_v25, %v2065_v26  ;;  %v2152_v42 = vld [vmem:[#allocation3 + $0x264] sm:$0xf0]  ;;  %v2151_v43 = vld [vmem:[#allocation3 + $0x264] sm:$0xf] }
  0x59   : > { %1111 = vmatpush.bf16.msra.mxu0 %v1856_v19  ;;  %1137 = vmatpush.bf16.msra.mxu2 %v1860_v20  ;;  %v1888_v19 = vor.u32 %v2190_v6, %v1887_v5  ;;  %v1817_v20 = vld [vmem:[#allocation3 + $0x308] sm:$0xf0]  ;;  %v945_v48 = vrot.slane %v943_v27, 1  ;;  %v1992_v51 = vor.u32 %v2152_v42, %v1991_v39  ;;  %v2055_v52 = vld [vmem:[#allocation3 + $0x2e0] sm:$0xf] }
  0x5a   : > { %1150 = vmatpush.bf16.msra.mxu3 %v1924_v11  ;;  %1124 = vmatpush.bf16.msra.mxu1 %v1920_v22  ;;  %v1999_v11 = vld [vmem:[#allocation3 + $0x270] sm:$0xf]  ;;  %v2154_v22 = vld [vmem:[#allocation3 + $0x274] sm:$0xf0]  ;;  %v2057_v47 = vld [vmem:[#allocation3 + $0x2e8] sm:$0xf0] }
  0x5b   : > { %v2168_v53 = vld [vmem:[#allocation3 + $0x2e4] sm:$0xf0]  ;;  %v1983_v56 = vld [vmem:[#allocation3 + $0x250] sm:$0xf]  ;;  %v2150_v57 = vld [vmem:[#allocation3 + $0x254] sm:$0xf0] }
  0x5c   : > { %v2165_v60 = vld [vmem:[#allocation3 + $0x2d4] sm:$0xf]  ;;  %v2049_v62 = vld [vmem:[#allocation3 + $0x2d8] sm:$0xf0]  ;;  %v2047_v1 = vld [vmem:[#allocation3 + $0x2d0] sm:$0xf] }
  0x5d   : > { %1112 = vmatpush.bf16.msra.mxu0 %v1848_v29  ;;  %1138 = vmatpush.bf16.msra.mxu2 %v1852_v32  ;;  %v1820_v29 = vor.u32 %v2171_v14, %v1817_v20  ;;  %v1879_v32 = vld [vmem:[#allocation3 + $0x380] sm:$0xf]  ;;  %v2166_v2 = vld [vmem:[#allocation3 + $0x2d4] sm:$0xf0]  ;;  %v2052_v4 = vor.u32 %v2165_v60, %v2049_v62  ;;  %v2148_v6 = vld [vmem:[#allocation3 + $0x244] sm:$0xf0] }
  0x5e   : > { %1151 = vmatpush.bf16.msra.mxu3 %v1916_v35  ;;  %1125 = vmatpush.bf16.msra.mxu1 %v1912_v36  ;;  %v1884_v35 = vor.u32 %v2187_v21, %v1881_v17  ;;  %v2000_v36 = vor.u32 %v2154_v22, %v1999_v11  ;;  %v1975_v5 = vld [vmem:[#allocation3 + $0x240] sm:$0xf]  ;;  %v2147_v7 = vld [vmem:[#allocation3 + $0x244] sm:$0xf]  ;;  %v2041_v12 = vld [vmem:[#allocation3 + $0x2c8] sm:$0xf0]  ;;  %v2048_v13 = vor.u32 %v2166_v2, %v2047_v1 }
  0x5f   : > { %818 = vmatmul.bf16.vlgmr.msrb.gmra.mxu2 %v620_v40  ;;  %792 = vmatmul.bf16.vlgmr.msrb.gmra.mxu0 %v620_v40  ;;  %v2004_v40 = vor.u32 %v2153_v23, %v2001_v24  ;;  %v1976_v14 = vor.u32 %v2148_v6, %v1975_v5  ;;  %v2039_v15 = vld [vmem:[#allocation3 + $0x2c0] sm:$0xf]  ;;  %v1967_v21 = vld [vmem:[#allocation3 + $0x230] sm:$0xf]  ;;  %v2146_v17 = vld [vmem:[#allocation3 + $0x234] sm:$0xf0] }
  0x60   : > { %831 = vmatmul.bf16.vlgmr.msrb.gmra.mxu3 %v621_v44  ;;  %805 = vmatmul.bf16.vlgmr.msrb.gmra.mxu1 %v621_v44  ;;  %v1993_v44 = vld [vmem:[#allocation3 + $0x268] sm:$0xf0]  ;;  %v2145_v11 = vld [vmem:[#allocation3 + $0x234] sm:$0xf]  ;;  %v1969_v22 = vld [vmem:[#allocation3 + $0x238] sm:$0xf0]  ;;  %v1968_v26 = vor.u32 %v2146_v17, %v1967_v21 }
  0x61   : > { %1113 = vmatpush.bf16.msra.mxu0 %v1840_v45  ;;  %1139 = vmatpush.bf16.msra.mxu2 %v1844_v46  ;;  %v1880_v45 = vor.u32 %v2188_v33, %v1879_v32  ;;  %v2167_v46 = vld [vmem:[#allocation3 + $0x2e4] sm:$0xf]  ;;  %v1996_v54 = vor.u32 %v2151_v43, %v1993_v44  ;;  %v2161_v23 = vld [vmem:[#allocation3 + $0x2b4] sm:$0xf]  ;;  %v2033_v24 = vld [vmem:[#allocation3 + $0x2b8] sm:$0xf0]  ;;  %v1165_v44 = vpack.c.b16 %v942_v16, %v2401_v31 }
  0x62   : > { %1152 = vmatpush.bf16.msra.mxu3 %v1908_v49  ;;  %1126 = vmatpush.bf16.msra.mxu1 %v1904_v50  ;;  %v2064_v49 = vor.u32 %v2170_v38, %v2063_v37  ;;  %v946_v50 = vrot.slane %v944_v34, 1  ;;  %v2060_v55 = vor.u32 %v2167_v46, %v2057_v47  ;;  %v2031_v27 = vld [vmem:[#allocation3 + $0x2b0] sm:$0xf]  ;;  %v2036_v32 = vor.u32 %v2161_v23, %v2033_v24  ;;  %v1959_v33 = vld [vmem:[#allocation3 + $0x220] sm:$0xf] }
  0x63   : > { %v2144_v34 = vld [vmem:[#allocation3 + $0x224] sm:$0xf0]  ;;  %v2159_v37 = vld [vmem:[#allocation3 + $0x2a4] sm:$0xf]  ;;  %v2025_v38 = vld [vmem:[#allocation3 + $0x2a8] sm:$0xf0] }
  0x64   : > { %v2023_v42 = vld [vmem:[#allocation3 + $0x2a0] sm:$0xf]  ;;  %v2160_v43 = vld [vmem:[#allocation3 + $0x2a4] sm:$0xf0]  ;;  %v2028_v46 = vor.u32 %v2159_v37, %v2025_v38  ;;  %v1951_v47 = vld [vmem:[#allocation3 + $0x210] sm:$0xf] }
  0x65   : > { %1114 = vmatpush.bf16.msra.mxu0 %v1832_v58  ;;  %1140 = vmatpush.bf16.msra.mxu2 %v1836_v59  ;;  %v2149_v58 = vld [vmem:[#allocation3 + $0x254] sm:$0xf]  ;;  %v1985_v59 = vld [vmem:[#allocation3 + $0x258] sm:$0xf0]  ;;  %v1943_v16 = vld [vmem:[#allocation3 + $0x200] sm:$0xf] }
  0x66   : > { %1153 = vmatpush.bf16.msra.mxu3 %v1900_v63  ;;  %1127 = vmatpush.bf16.msra.mxu1 %v1896_v0  ;;  %v2056_v63 = vor.u32 %v2168_v53, %v2055_v52  ;;  %v1984_v0 = vor.u32 %v2150_v57, %v1983_v56  ;;  %v1988_v3 = vor.u32 %v2149_v58, %v1985_v59  ;;  %v2017_v52 = vld [vmem:[#allocation3 + $0x298] sm:$0xf0]  ;;  %v1176_v56 = vshll.u32 %v1165_v44, 16  ;;  %v2140_v57 = vld [vmem:[#allocation3 + $0x204] sm:$0xf0] }
  0x67   : > { %v2139_v58 = vld [vmem:[#allocation3 + $0x204] sm:$0xf]  ;;  %v1945_v59 = vld [vmem:[#allocation3 + $0x208] sm:$0xf0]  ;;  %v1944_v2 = vor.u32 %v2140_v57, %v1943_v16  ;;  %v1174_v5 = vshrl.u32 %v1165_v44, 16 }
  0x68   : > { %v2155_v60 = vld [vmem:[#allocation3 + $0x284] sm:$0xf]  ;;  %v2009_v62 = vld [vmem:[#allocation3 + $0x288] sm:$0xf0]  ;;  %v1178_v6 = vrot.slane %v1176_v56, 1 }
  0x69   : > { %1115 = vmatpush.bf16.msra.mxu0 %v1824_v9  ;;  %1141 = vmatpush.bf16.msra.mxu2 %v1828_v10  ;;  %v1977_v9 = vld [vmem:[#allocation3 + $0x248] sm:$0xf0]  ;;  %v2163_v10 = vld [vmem:[#allocation3 + $0x2c4] sm:$0xf] }
  0x6a   : > { %1154 = vmatpush.bf16.msra.mxu3 %v1892_v18  ;;  %1128 = vmatpush.bf16.msra.mxu1 %v1888_v19  ;;  %v2164_v18 = vld [vmem:[#allocation3 + $0x2c4] sm:$0xf0]  ;;  %v1980_v19 = vor.u32 %v2147_v7, %v1977_v9  ;;  %v2044_v20 = vor.u32 %v2163_v10, %v2041_v12  ;;  %v1948_v7 = vor.u32 %v2139_v58, %v1945_v59 }
  0x6b   : > { %v2040_v25 = vor.u32 %v2164_v18, %v2039_v15  ;;  %v2012_v9 = vor.u32 %v2155_v60, %v2009_v62 }
  0x6d   : > { %1116 = vmatpush.bf16.msra.mxu0 %v1816_v28  ;;  %1142 = vmatpush.bf16.msra.mxu2 %v1820_v29  ;;  %v2162_v28 = vld [vmem:[#allocation3 + $0x2b4] sm:$0xf0]  ;;  %v1972_v29 = vor.u32 %v2145_v11, %v1969_v22 }
  0x6e   : > { %1155 = vmatpush.bf16.msra.mxu3 %v1884_v35  ;;  %1129 = vmatpush.bf16.msra.mxu1 %v1880_v45  ;;  %v2143_v35 = vld [vmem:[#allocation3 + $0x224] sm:$0xf]  ;;  %v2032_v39 = vor.u32 %v2162_v28, %v2031_v27 }
  0x70   : > { %1143 = vmatmul.bf16.vlgmr.msra.gmra.mxu2 %v945_v48  ;;  %1117 = vmatmul.bf16.vlgmr.msra.gmra.mxu0 %v945_v48  ;;  %v2142_v48 = vld [vmem:[#allocation3 + $0x214] sm:$0xf0] }
  0x71   : > { %1342 = vmatpush.bf16.msrb.mxu0 %v2000_v36  ;;  %1368 = vmatpush.bf16.msrb.mxu2 %v2004_v40  ;;  %v1961_v36 = vld [vmem:[#allocation3 + $0x228] sm:$0xf0]  ;;  %v1164_v40 = vpack.c.b16 %v941_v8, %v2399_v30  ;;  %v2024_v30 = vor.u32 %v2160_v43, %v2023_v42  ;;  %v1952_v53 = vor.u32 %v2142_v48, %v1951_v47 }
  0x72   : > { %1381 = vmatpush.bf16.msrb.mxu3 %v2068_v41  ;;  %1355 = vmatpush.bf16.msrb.mxu1 %v2064_v49  ;;  %v1960_v41 = vor.u32 %v2144_v34, %v1959_v33  ;;  %v1964_v45 = vor.u32 %v2143_v35, %v1961_v36  ;;  %v2141_v49 = vld [vmem:[#allocation3 + $0x214] sm:$0xf] }
  0x73   : > { %1156 = vmatmul.bf16.vlgmr.msra.gmra.mxu3 %v946_v50  ;;  %1130 = vmatmul.bf16.vlgmr.msra.gmra.mxu1 %v946_v50  ;;  %v1953_v50 = vld [vmem:[#allocation3 + $0x218] sm:$0xf0]  ;;  %v1169_v8 = vshll.u32 %v1164_v40, 16 }
  0x74   : > { %v1956_v31 = vor.u32 %v2141_v49, %v1953_v50 }
  0x75   : > { %1343 = vmatpush.bf16.msrb.mxu0 %v1992_v51  ;;  %1369 = vmatpush.bf16.msrb.mxu2 %v1996_v54  ;;  %v2157_v51 = vld [vmem:[#allocation3 + $0x294] sm:$0xf]  ;;  %v2015_v54 = vld [vmem:[#allocation3 + $0x290] sm:$0xf]  ;;  %v1171_v1 = vrot.slane %v1169_v8, 1 }
  0x76   : > { %1382 = vmatpush.bf16.msrb.mxu3 %v2060_v55  ;;  %1356 = vmatpush.bf16.msrb.mxu1 %v2056_v63  ;;  %v2158_v55 = vld [vmem:[#allocation3 + $0x294] sm:$0xf0]  ;;  %v2020_v61 = vor.u32 %v2157_v51, %v2017_v52 }
  0x77   : > { %v2016_v63 = vor.u32 %v2158_v55, %v2015_v54 }
  0x79   : > { %1344 = vmatpush.bf16.msrb.mxu0 %v1984_v0  ;;  %1370 = vmatpush.bf16.msrb.mxu2 %v1988_v3  ;;  %v1167_v0 = vshrl.u32 %v1164_v40, 16  ;;  %v2007_v3 = vld [vmem:[#allocation3 + $0x280] sm:$0xf] }
  0x7a   : > { %1383 = vmatpush.bf16.msrb.mxu3 %v2052_v4  ;;  %1357 = vmatpush.bf16.msrb.mxu1 %v2048_v13  ;;  %v2156_v4 = vld [vmem:[#allocation3 + $0x284] sm:$0xf0]  ;;  %v1179_v13 = vor.u32 %v1178_v6, %v1174_v5 }
  0x7b   : > { %v2008_v10 = vor.u32 %v2156_v4, %v2007_v3  ;;  %v1172_v12 = vor.u32 %v1171_v1, %v1167_v0 }
  0x7d   : > { %1345 = vmatpush.bf16.msrb.mxu0 %v1976_v14  ;;  %1371 = vmatpush.bf16.msrb.mxu2 %v1980_v19 }
  0x7e   : > { %1384 = vmatpush.bf16.msrb.mxu3 %v2044_v20  ;;  %1358 = vmatpush.bf16.msrb.mxu1 %v2040_v25 }
  0x81   : > { %1346 = vmatpush.bf16.msrb.mxu0 %v1968_v26  ;;  %1372 = vmatpush.bf16.msrb.mxu2 %v1972_v29 }
  0x82   : > { %1385 = vmatpush.bf16.msrb.mxu3 %v2036_v32  ;;  %1359 = vmatpush.bf16.msrb.mxu1 %v2032_v39 }
  0x85   : > { %1347 = vmatpush.bf16.msrb.mxu0 %v1960_v41  ;;  %1373 = vmatpush.bf16.msrb.mxu2 %v1964_v45 }
  0x86   : > { %1386 = vmatpush.bf16.msrb.mxu3 %v2028_v46  ;;  %1360 = vmatpush.bf16.msrb.mxu1 %v2024_v30 }
  0x89   : > { %1348 = vmatpush.bf16.msrb.mxu0 %v1952_v53  ;;  %1374 = vmatpush.bf16.msrb.mxu2 %v1956_v31 }
  0x8a   : > { %1387 = vmatpush.bf16.msrb.mxu3 %v2020_v61  ;;  %1361 = vmatpush.bf16.msrb.mxu1 %v2016_v63 }
  0x8d   : > { %1349 = vmatpush.bf16.msrb.mxu0 %v1944_v2  ;;  %1375 = vmatpush.bf16.msrb.mxu2 %v1948_v7 }
  0x8e   : > { %1388 = vmatpush.bf16.msrb.mxu3 %v2012_v9  ;;  %1362 = vmatpush.bf16.msrb.mxu1 %v2008_v10 }
  0x90   : > { %1350 = vmatmul.bf16.vlgmr.msrb.gmra.mxu0 %v1172_v12  ;;  %1376 = vmatmul.bf16.vlgmr.msrb.gmra.mxu2 %v1172_v12 }
  0x91   : > { %1389 = vmatmul.bf16.vlgmr.msrb.gmra.mxu3 %v1179_v13  ;;  %1363 = vmatmul.bf16.vlgmr.msrb.gmra.mxu1 %v1179_v13 }
  0xcc   : > { %v577_v14 = vpop.f32.mrf.mxu0 }
  0xcd   : > { %v590_v15 = vpop.f32.mrf.mxu1 }
  0xce   : > { %v591_v24 = vadd.f32 %v590_v15, %v577_v14 }
  0xd2   : > { %v603_v18 = vpop.f32.mrf.mxu2 }
  0xd3   : > { %v616_v19 = vpop.f32.mrf.mxu3 }
  0xd4   : > { %v579_v20 = vpop.f32.mrf.mxu0  ;;  %v617_v25 = vadd.f32 %v616_v19, %v603_v18 }
  0xd5   : > { %v592_v21 = vpop.f32.mrf.mxu1 }
  0xda   : > { %v605_v17 = vpop.f32.mrf.mxu2 }
  0xdb   : > { %v618_v11 = vpop.f32.mrf.mxu3 }
  0xdc   : > { %v793_v22 = vpop.f32.mrf.mxu0 }
  0xdd   : > { %v806_v23 = vpop.f32.mrf.mxu1  ;;  %v794_v26 = vadd.f32 %v793_v22, %v591_v24 }
  0xdf   : > { %v807_v35 = vadd.f32 %v806_v23, %v794_v26 }
  0xe1   : > { %v850_v50 = vmul.f32 %v807_v35, %v807_v35  ;;  %v836_v30 = vrot.slane %v807_v35, 4 }
  0xe2   : > { %v819_v27 = vpop.f32.mrf.mxu2 }
  0xe3   : > { %v820_v28 = vadd.f32 %v819_v27, %v617_v25  ;;  %v832_v29 = vpop.f32.mrf.mxu3  ;;  %v852_v55 = vrot.slane %v850_v50, 4  ;;  %v837_v57 = vadd.f32 %v836_v30, %v807_v35 }
  0xe4   : > { %v795_v32 = vpop.f32.mrf.mxu0 }
  0xe5   : > { %v833_v33 = vadd.f32 %v832_v29, %v820_v28  ;;  %v808_v34 = vpop.f32.mrf.mxu1  ;;  %v853_v2 = vadd.f32 %v852_v55, %v850_v50  ;;  %v838_v7 = vrot.slane %v837_v57, 2 }
  0xe7   : > { %v866_v36 = vpack.c.bf16 %v833_v33, %v807_v35  ;;  %v851_v48 = vmul.f32 %v833_v33, %v833_v33  ;;  %v842_v51 = vrot.slane %v833_v33, 4  ;;  %v854_v15 = vrot.slane %v853_v2, 2 }
  0xe8   : > { %v839_v11 = vadd.f32 %v838_v7, %v837_v57 }
  0xe9   : > { %867 = vst [vmem:[%s2427_s13] sm:$0xff] %v866_v36  ;;  %v858_v53 = vrot.slane %v851_v48, 4  ;;  %v843_v56 = vadd.f32 %v842_v51, %v833_v33  ;;  %v855_v28 = vadd.f32 %v854_v15, %v853_v2 }
  0xea   : > { %v821_v37 = vpop.f32.mrf.mxu2  ;;  %v840_v35 = vrot.slane %v839_v11, 1 }
  0xeb   : > { %v834_v38 = vpop.f32.mrf.mxu3  ;;  %v859_v60 = vadd.f32 %v858_v53, %v851_v48  ;;  %v844_v3 = vrot.slane %v843_v56, 2 }
  0xed   : > { %v1118_v39 = vpop.f32.mrf.mxu0  ;;  %v860_v10 = vrot.slane %v859_v60, 2  ;;  %v845_v18 = vadd.f32 %v844_v3, %v843_v56 }
  0xef   : > { %v861_v24 = vadd.f32 %v860_v10, %v859_v60  ;;  %v846_v29 = vrot.slane %v845_v18, 1 }
  0xf0   : > { %v1131_v40 = vpop.f32.mrf.mxu1 }
  0xf1   : > { %v1132_v47 = vadd.f32 %v1131_v40, %v1118_v39  ;;  %v862_v36 = vrot.slane %v861_v24, 1  ;;  %v856_v40 = vrot.slane %v855_v28, 1 }
  0xf3   : > { %v1144_v41 = vpop.f32.mrf.mxu2  ;;  %v857_v51 = vadd.f32 %v856_v40, %v855_v28 }
  0xf5   : > { %v1120_v43 = vpop.f32.mrf.mxu0 }
  0xf6   : > { %v1157_v42 = vpop.f32.mrf.mxu3 }
  0xf7   : > { %v1158_v31 = vadd.f32 %v1157_v42, %v1144_v41  ;;  %v847_v41 = vadd.f32 %v846_v29, %v845_v18 }
  0xf8   : > { %v1133_v44 = vpop.f32.mrf.mxu1 }
  0xfb   : > { %v1146_v45 = vpop.f32.mrf.mxu2 }
  0xfc   : > { %v1432_v45 = vlaneseq }
  0xfe   : > { %v1159_v46 = vpop.f32.mrf.mxu3  ;;  %vm1434_vm2 = vcmp.lt.s32.totalorder %v1432_v45, 256 }
  0xff   : > { %v841_v46 = vadd.f32 %v840_v35, %v839_v11 }
 0x10d   : > { %v1351_v49 = vpop.f32.mrf.mxu0 }
 0x10e   : > { %v1352_v52 = vadd.f32 %v1351_v49, %v1132_v47  ;;  %v1364_v8 = vpop.f32.mrf.mxu1  ;;  %v863_v47 = vadd.f32 %v862_v36, %v861_v24 }
 0x110   : > { %v1365_v54 = vadd.f32 %v1364_v8, %v1352_v52 }
 0x112   : > { %v1394_v61 = vrot.slane %v1365_v54, 4  ;;  %v1408_v16 = vmul.f32 %v1365_v54, %v1365_v54 }
 0x113   : > { %v1377_v58 = vpop.f32.mrf.mxu2 }
 0x114   : > { %v1390_v59 = vpop.f32.mrf.mxu3  ;;  %v1395_v62 = vadd.f32 %v1394_v61, %v1365_v54  ;;  %v1410_v63 = vrot.slane %v1408_v16, 4  ;;  %v1378_v0 = vadd.f32 %v1377_v58, %v1158_v31 }
 0x115   : > { %v1353_v1 = vpop.f32.mrf.mxu0 }
 0x116   : > { %v1396_v4 = vrot.slane %v1395_v62, 2  ;;  %v1411_v5 = vadd.f32 %v1410_v63, %v1408_v16  ;;  %v1391_v6 = vadd.f32 %v1390_v59, %v1378_v0  ;;  %v1366_v9 = vpop.f32.mrf.mxu1 }
 0x118   : > { %v1412_v12 = vrot.slane %v1411_v5, 2  ;;  %v1400_v13 = vrot.slane %v1391_v6, 4  ;;  %v1409_v14 = vmul.f32 %v1391_v6, %v1391_v6  ;;  %v1424_v19 = vpack.c.bf16 %v1391_v6, %v1365_v54 }
 0x119   : > { %v1397_v20 = vadd.f32 %v1396_v4, %v1395_v62 }
 0x11a   : > { %v1401_v21 = vadd.f32 %v1400_v13, %v1391_v6  ;;  %v1416_v17 = vrot.slane %v1409_v14, 4  ;;  %1425 = vst [vmem:[%s2427_s13 + $0x8] sm:$0xff] %v1424_v19  ;;  %v1413_v25 = vadd.f32 %v1412_v12, %v1411_v5 }
 0x11b   : > { %v1379_v22 = vpop.f32.mrf.mxu2  ;;  %v1398_v32 = vrot.slane %v1397_v20, 1 }
 0x11c   : > { %v1392_v23 = vpop.f32.mrf.mxu3  ;;  %v1402_v26 = vrot.slane %v1401_v21, 2  ;;  %v1417_v27 = vadd.f32 %v1416_v17, %v1409_v14  ;;  %v1414_v37 = vrot.slane %v1413_v25, 1 }
 0x11d   : > { %v1399_v42 = vadd.f32 %v1398_v32, %v1397_v20 }
 0x11e   : > { %v1403_v33 = vadd.f32 %v1402_v26, %v1401_v21  ;;  %v1418_v34 = vrot.slane %v1417_v27, 2  ;;  %v1415_v48 = vadd.f32 %v1414_v37, %v1413_v25 }
 0x11f   : > { %v1406_v52 = vadd.f32 %v1399_v42, %v841_v46 }
 0x120   : > { %v1404_v38 = vrot.slane %v1403_v33, 1  ;;  %v1419_v39 = vadd.f32 %v1418_v34, %v1417_v27  ;;  %v1422_v53 = vadd.f32 %v1415_v48, %v857_v51 }
 0x122   : > { %v1405_v43 = vadd.f32 %v1404_v38, %v1403_v33  ;;  %v1420_v44 = vrot.slane %v1419_v39, 1 }
 0x124   : > { %v1407_v49 = vadd.f32 %v1405_v43, %v847_v41  ;;  %v1421_v50 = vadd.f32 %v1420_v44, %v1419_v39 }
 0x126   : > { %v1423_v30 = vadd.f32 %v1421_v50, %v863_v47  ;;  %v1428_v8 = vrot.slane %v1407_v49, 7 }
 0x128   : > { %v1430_v54 = vsel %vm277_vm0, %v1406_v52, %v1428_v8  ;;  %v1439_v55 = vrot.slane %v1423_v30, 7 }
 0x129   : > { %1436 = vst.msk [vmem:[%s254_s17] ss:$2 sm:$0x3] %vm1434_vm2, %v1430_v54 }
 0x12a   : > { %v1440_v56 = vsel %vm277_vm0, %v1422_v53, %v1439_v55 }
 0x12b   : > { %2069 = vst.msk [vmem:[%s254_s17 + $0x1] ss:$2 sm:$0x3] %vm1434_vm2, %v1440_v56 }
 0x12c PF: > { %s17_s18 = sadd.s32 1, %s2264_s18  }
 0x12d   : > { %p14_p7 = scmp.ge.s32.totalorder %s17_s18, 4  }
 0x12f   :  { %16 = sbr.rel (!%p14_p7) target bundleno = 1 (0x1), region = 87 }
 0x134   :  { %1481 = vsyncpa [#allocation4], 1 }
 0x135   :  { %1483 = vsyncpa [#allocation4 + $0x1], 1 }

</bundles_post_ra>
